<compile_context>
chip_gen: v5e
topology: v5e:2x2
jax: 0.10.0
libtpu: 0.0.40
codegen_flags: <defaults>
</compile_context>

<pallas_src>
import jax
import jax.numpy as jnp
from jax.experimental import pallas as pl
from jax.experimental.pallas import tpu as pltpu

INPUT_DIM = 1024     # original: 7864320
OUTPUT_DIM = 512     # original: 6291456

LAYER_DIMS = [
    (INPUT_DIM, 256),   # enc1
    (256, 128),         # enc2
    (128, 64),          # enc3
    (64, 32),           # enc4
    (32, 16),           # enc5
    (16, 32),           # dec1
    (32, 64),           # dec2
    (64, 128),          # dec3
    (128, 256),         # dec4
    (256, OUTPUT_DIM),  # dec5
]

# --- static packing geometry for the 8 middle layers (enc2..dec4) -----------
MID_LAYERS = LAYER_DIMS[1:-1]
MID_ROW_OFFSETS = []
_off = 0
for _k, _n in MID_LAYERS:
    MID_ROW_OFFSETS.append(_off)
    _off += _k
MID_ROWS = ((_off + 15) // 16) * 16          # 720 (already 16-aligned for bf16)
MID_LANES = max(n for _, n in MID_LAYERS)    # 256
BIAS_LANES = max(n for _, n in LAYER_DIMS)   # 512 (== OUTPUT_DIM here)
N_LAYERS = len(LAYER_DIMS)


def fused_mlp_kernel(x_ref, w_first_ref, mid_ref, w_last_ref, bias_ref, o_ref):
    """Entire 10-layer MLP forward in one kernel, fully resident in VMEM.

    x_ref       : (B, INPUT_DIM)        f32
    w_first_ref : (INPUT_DIM, 256)      bf16   (pre-transposed enc1 weight)
    mid_ref     : (MID_ROWS, MID_LANES) bf16   (8 middle weights, row-packed)
    w_last_ref  : (256, OUTPUT_DIM)     bf16   (pre-transposed dec5 weight)
    bias_ref    : (10, BIAS_LANES)      f32    (all biases, zero-padded rows)
    o_ref       : (B, OUTPUT_DIM)       f32
    """

    def layer(h, w_bf16, layer_idx, n_out):
        b = bias_ref[layer_idx:layer_idx + 1, 0:n_out]          # (1, n_out) f32
        acc = jnp.dot(h.astype(jnp.bfloat16), w_bf16,
                      preferred_element_type=jnp.float32)       # MXU bf16, f32 acc
        return jnp.maximum(acc + b, 0.0)

    h = x_ref[...]                                              # (B, INPUT_DIM) f32

    # enc1 (large first layer, separate operand)
    h = layer(h, w_first_ref[...], 0, LAYER_DIMS[0][1])

    # enc2 .. dec4 (packed slab; static, 16-aligned row offsets => free views)
    for li in range(1, N_LAYERS - 1):
        k, n = LAYER_DIMS[li]
        r0 = MID_ROW_OFFSETS[li - 1]
        h = layer(h, mid_ref[r0:r0 + k, 0:n], li, n)

    # dec5 (large last layer, separate operand)
    h = layer(h, w_last_ref[...], N_LAYERS - 1, LAYER_DIMS[-1][1])

    o_ref[...] = h.astype(o_ref.dtype)


def fused_reg_net(x, w_first, mid_slab, w_last, bias_slab):
    B = x.shape[0]
    vmem = pltpu.MemorySpace.VMEM
    return pl.pallas_call(
        fused_mlp_kernel,
        out_shape=jax.ShapeDtypeStruct((B, OUTPUT_DIM), x.dtype),
        in_specs=[pl.BlockSpec(memory_space=vmem)] * 5,
        out_specs=pl.BlockSpec(memory_space=vmem),
    )(x, w_first, mid_slab, w_last, bias_slab)


reg_net_forward = jax.jit(fused_reg_net)


def init_params(key):
    """PyTorch nn.Linear default init: U[-1/sqrt(fan_in), 1/sqrt(fan_in)]."""
    params = []
    for fan_in, fan_out in LAYER_DIMS:
        kw, kb, key = jax.random.split(key, 3)
        bound = 1.0 / jnp.sqrt(jnp.float32(fan_in))
        w = jax.random.uniform(
            kw, (fan_out, fan_in), jnp.float32, minval=-bound, maxval=bound
        )
        b = jax.random.uniform(
            kb, (fan_out,), jnp.float32, minval=-bound, maxval=bound
        )
        params.append((w, b))
    return params


def to_kernel_params(params):
    """Host-side, one-time packing:
      * enc1 / dec5 weights: transpose to (K, N) and cast to bf16.
      * middle 8 weights: transpose, cast to bf16, pack into one padded slab.
      * all 10 biases: one zero-padded (10, BIAS_LANES) f32 slab.
    """
    w_first = jnp.asarray(params[0][0].T, dtype=jnp.bfloat16)       # (K0, 256)
    w_last = jnp.asarray(params[-1][0].T, dtype=jnp.bfloat16)       # (256, N9)

    mid = jnp.zeros((MID_ROWS, MID_LANES), jnp.bfloat16)
    for (w, _), r0, (k, n) in zip(params[1:-1], MID_ROW_OFFSETS, MID_LAYERS):
        mid = mid.at[r0:r0 + k, 0:n].set(w.T.astype(jnp.bfloat16))

    bias = jnp.zeros((N_LAYERS, BIAS_LANES), jnp.float32)
    for i, (_, b) in enumerate(params):
        bias = bias.at[i, 0:b.shape[0]].set(b)

    return w_first, mid, w_last, bias


def reg_net_reference(x, params):
    """Pure-JAX reference mirroring the kernel's bf16-weight / f32-accumulate
    math (PyTorch semantics: relu(x @ W.T + b) per layer)."""
    h = x
    for w, b in params:
        wt = w.T.astype(jnp.bfloat16)
        h = jnp.maximum(
            jnp.dot(h.astype(jnp.bfloat16), wt,
                    preferred_element_type=jnp.float32) + b,
            0.0,
        )
    return h


if __name__ == "__main__":
    key = jax.random.PRNGKey(0)
    key_x, key_p = jax.random.split(key)

    B = 128  # amortizes the shared weight load; better MXU row utilization
    x = jax.random.normal(key_x, (B, INPUT_DIM), jnp.float32)
    params = init_params(key_p)
    kernel_params = to_kernel_params(params)

    out = reg_net_forward(x, *kernel_params)
    out = jax.block_until_ready(out)

    ref = reg_net_reference(x, params)
    assert out.shape == (B, OUTPUT_DIM), out.shape
    assert jnp.allclose(out, ref, atol=1e-2, rtol=1e-2), "mismatch vs reference"

    print("KERNEL_OK")
</pallas_src>

<mosaic_0001>
module attributes {stable_mosaic.version = 11 : i64} {
  func.func @fused_mlp_kernel(%arg0: memref<128x1024xf32, #tpu.memory_space<vmem>>, %arg1: memref<1024x256xbf16, #tpu.memory_space<vmem>>, %arg2: memref<720x256xbf16, #tpu.memory_space<vmem>>, %arg3: memref<256x512xbf16, #tpu.memory_space<vmem>>, %arg4: memref<10x512xf32, #tpu.memory_space<vmem>>, %arg5: memref<128x512xf32, #tpu.memory_space<vmem>>) attributes {dimension_semantics = [], scalar_prefetch = 0 : i64, scratch_operands = 0 : i64, tpu.core_type = #tpu.core_type<tc>} {
    %c0 = arith.constant 0 : index
    %c0_0 = arith.constant 0 : index
    %0 = vector.load %arg0[%c0, %c0_0] : memref<128x1024xf32, #tpu.memory_space<vmem>>, vector<128x1024xf32>
    %c0_1 = arith.constant 0 : index
    %c0_2 = arith.constant 0 : index
    %1 = vector.load %arg1[%c0_1, %c0_2] : memref<1024x256xbf16, #tpu.memory_space<vmem>>, vector<1024x256xbf16>
    %c0_3 = arith.constant 0 : index
    %c0_4 = arith.constant 0 : index
    %2 = vector.load %arg4[%c0_3, %c0_4] : memref<10x512xf32, #tpu.memory_space<vmem>>, vector<1x256xf32>
    %3 = arith.truncf %0 : vector<128x1024xf32> to vector<128x1024xbf16>
    %cst = arith.constant dense<0.000000e+00> : vector<128x256xf32>
    %4 = tpu.matmul %3, %1, %cst {dimension_numbers = #tpu.dot_dimension_numbers<[1], [0], [0], [1], [0, 0, 1, 1], [], []>} : vector<128x1024xbf16>, vector<1024x256xbf16>, vector<128x256xf32> -> vector<128x256xf32>
    %5 = vector.broadcast %2 : vector<1x256xf32> to vector<128x256xf32>
    %6 = arith.addf %4, %5 : vector<128x256xf32>
    %cst_5 = arith.constant 0.000000e+00 : f32
    %7 = vector.broadcast %cst_5 : f32 to vector<128x256xf32>
    %8 = arith.maximumf %6, %7 : vector<128x256xf32>
    %c0_6 = arith.constant 0 : index
    %c0_7 = arith.constant 0 : index
    %9 = vector.load %arg2[%c0_6, %c0_7] : memref<720x256xbf16, #tpu.memory_space<vmem>>, vector<256x128xbf16>
    %c1 = arith.constant 1 : index
    %c0_8 = arith.constant 0 : index
    %10 = vector.load %arg4[%c1, %c0_8] : memref<10x512xf32, #tpu.memory_space<vmem>>, vector<1x128xf32>
    %11 = arith.truncf %8 : vector<128x256xf32> to vector<128x256xbf16>
    %cst_9 = arith.constant dense<0.000000e+00> : vector<128x128xf32>
    %12 = tpu.matmul %11, %9, %cst_9 {dimension_numbers = #tpu.dot_dimension_numbers<[1], [0], [0], [1], [0, 0, 1, 1], [], []>} : vector<128x256xbf16>, vector<256x128xbf16>, vector<128x128xf32> -> vector<128x128xf32>
    %13 = vector.broadcast %10 : vector<1x128xf32> to vector<128x128xf32>
    %14 = arith.addf %12, %13 : vector<128x128xf32>
    %cst_10 = arith.constant 0.000000e+00 : f32
    %15 = vector.broadcast %cst_10 : f32 to vector<128x128xf32>
    %16 = arith.maximumf %14, %15 : vector<128x128xf32>
    %c256 = arith.constant 256 : index
    %c0_11 = arith.constant 0 : index
    %17 = vector.load %arg2[%c256, %c0_11] : memref<720x256xbf16, #tpu.memory_space<vmem>>, vector<128x64xbf16>
    %c2 = arith.constant 2 : index
    %c0_12 = arith.constant 0 : index
    %18 = vector.load %arg4[%c2, %c0_12] : memref<10x512xf32, #tpu.memory_space<vmem>>, vector<1x64xf32>
    %19 = arith.truncf %16 : vector<128x128xf32> to vector<128x128xbf16>
    %cst_13 = arith.constant dense<0.000000e+00> : vector<128x64xf32>
    %20 = tpu.matmul %19, %17, %cst_13 {dimension_numbers = #tpu.dot_dimension_numbers<[1], [0], [0], [1], [0, 0, 1, 1], [], []>} : vector<128x128xbf16>, vector<128x64xbf16>, vector<128x64xf32> -> vector<128x64xf32>
    %21 = vector.broadcast %18 : vector<1x64xf32> to vector<128x64xf32>
    %22 = arith.addf %20, %21 : vector<128x64xf32>
    %cst_14 = arith.constant 0.000000e+00 : f32
    %23 = vector.broadcast %cst_14 : f32 to vector<128x64xf32>
    %24 = arith.maximumf %22, %23 : vector<128x64xf32>
    %c384 = arith.constant 384 : index
    %c0_15 = arith.constant 0 : index
    %25 = vector.load %arg2[%c384, %c0_15] : memref<720x256xbf16, #tpu.memory_space<vmem>>, vector<64x32xbf16>
    %c3 = arith.constant 3 : index
    %c0_16 = arith.constant 0 : index
    %26 = vector.load %arg4[%c3, %c0_16] : memref<10x512xf32, #tpu.memory_space<vmem>>, vector<1x32xf32>
    %27 = arith.truncf %24 : vector<128x64xf32> to vector<128x64xbf16>
    %cst_17 = arith.constant dense<0.000000e+00> : vector<128x32xf32>
    %28 = tpu.matmul %27, %25, %cst_17 {dimension_numbers = #tpu.dot_dimension_numbers<[1], [0], [0], [1], [0, 0, 1, 1], [], []>} : vector<128x64xbf16>, vector<64x32xbf16>, vector<128x32xf32> -> vector<128x32xf32>
    %29 = vector.broadcast %26 : vector<1x32xf32> to vector<128x32xf32>
    %30 = arith.addf %28, %29 : vector<128x32xf32>
    %cst_18 = arith.constant 0.000000e+00 : f32
    %31 = vector.broadcast %cst_18 : f32 to vector<128x32xf32>
    %32 = arith.maximumf %30, %31 : vector<128x32xf32>
    %c448 = arith.constant 448 : index
    %c0_19 = arith.constant 0 : index
    %33 = vector.load %arg2[%c448, %c0_19] : memref<720x256xbf16, #tpu.memory_space<vmem>>, vector<32x16xbf16>
    %c4 = arith.constant 4 : index
    %c0_20 = arith.constant 0 : index
    %34 = vector.load %arg4[%c4, %c0_20] : memref<10x512xf32, #tpu.memory_space<vmem>>, vector<1x16xf32>
    %35 = arith.truncf %32 : vector<128x32xf32> to vector<128x32xbf16>
    %cst_21 = arith.constant dense<0.000000e+00> : vector<128x16xf32>
    %36 = tpu.matmul %35, %33, %cst_21 {dimension_numbers = #tpu.dot_dimension_numbers<[1], [0], [0], [1], [0, 0, 1, 1], [], []>} : vector<128x32xbf16>, vector<32x16xbf16>, vector<128x16xf32> -> vector<128x16xf32>
    %37 = vector.broadcast %34 : vector<1x16xf32> to vector<128x16xf32>
    %38 = arith.addf %36, %37 : vector<128x16xf32>
    %cst_22 = arith.constant 0.000000e+00 : f32
    %39 = vector.broadcast %cst_22 : f32 to vector<128x16xf32>
    %40 = arith.maximumf %38, %39 : vector<128x16xf32>
    %c480 = arith.constant 480 : index
    %c0_23 = arith.constant 0 : index
    %41 = vector.load %arg2[%c480, %c0_23] : memref<720x256xbf16, #tpu.memory_space<vmem>>, vector<16x32xbf16>
    %c5 = arith.constant 5 : index
    %c0_24 = arith.constant 0 : index
    %42 = vector.load %arg4[%c5, %c0_24] : memref<10x512xf32, #tpu.memory_space<vmem>>, vector<1x32xf32>
    %43 = arith.truncf %40 : vector<128x16xf32> to vector<128x16xbf16>
    %cst_25 = arith.constant dense<0.000000e+00> : vector<128x32xf32>
    %44 = tpu.matmul %43, %41, %cst_25 {dimension_numbers = #tpu.dot_dimension_numbers<[1], [0], [0], [1], [0, 0, 1, 1], [], []>} : vector<128x16xbf16>, vector<16x32xbf16>, vector<128x32xf32> -> vector<128x32xf32>
    %45 = vector.broadcast %42 : vector<1x32xf32> to vector<128x32xf32>
    %46 = arith.addf %44, %45 : vector<128x32xf32>
    %cst_26 = arith.constant 0.000000e+00 : f32
    %47 = vector.broadcast %cst_26 : f32 to vector<128x32xf32>
    %48 = arith.maximumf %46, %47 : vector<128x32xf32>
    %c496 = arith.constant 496 : index
    %c0_27 = arith.constant 0 : index
    %49 = vector.load %arg2[%c496, %c0_27] : memref<720x256xbf16, #tpu.memory_space<vmem>>, vector<32x64xbf16>
    %c6 = arith.constant 6 : index
    %c0_28 = arith.constant 0 : index
    %50 = vector.load %arg4[%c6, %c0_28] : memref<10x512xf32, #tpu.memory_space<vmem>>, vector<1x64xf32>
    %51 = arith.truncf %48 : vector<128x32xf32> to vector<128x32xbf16>
    %cst_29 = arith.constant dense<0.000000e+00> : vector<128x64xf32>
    %52 = tpu.matmul %51, %49, %cst_29 {dimension_numbers = #tpu.dot_dimension_numbers<[1], [0], [0], [1], [0, 0, 1, 1], [], []>} : vector<128x32xbf16>, vector<32x64xbf16>, vector<128x64xf32> -> vector<128x64xf32>
    %53 = vector.broadcast %50 : vector<1x64xf32> to vector<128x64xf32>
    %54 = arith.addf %52, %53 : vector<128x64xf32>
    %cst_30 = arith.constant 0.000000e+00 : f32
    %55 = vector.broadcast %cst_30 : f32 to vector<128x64xf32>
    %56 = arith.maximumf %54, %55 : vector<128x64xf32>
    %c528 = arith.constant 528 : index
    %c0_31 = arith.constant 0 : index
    %57 = vector.load %arg2[%c528, %c0_31] : memref<720x256xbf16, #tpu.memory_space<vmem>>, vector<64x128xbf16>
    %c7 = arith.constant 7 : index
    %c0_32 = arith.constant 0 : index
    %58 = vector.load %arg4[%c7, %c0_32] : memref<10x512xf32, #tpu.memory_space<vmem>>, vector<1x128xf32>
    %59 = arith.truncf %56 : vector<128x64xf32> to vector<128x64xbf16>
    %cst_33 = arith.constant dense<0.000000e+00> : vector<128x128xf32>
    %60 = tpu.matmul %59, %57, %cst_33 {dimension_numbers = #tpu.dot_dimension_numbers<[1], [0], [0], [1], [0, 0, 1, 1], [], []>} : vector<128x64xbf16>, vector<64x128xbf16>, vector<128x128xf32> -> vector<128x128xf32>
    %61 = vector.broadcast %58 : vector<1x128xf32> to vector<128x128xf32>
    %62 = arith.addf %60, %61 : vector<128x128xf32>
    %cst_34 = arith.constant 0.000000e+00 : f32
    %63 = vector.broadcast %cst_34 : f32 to vector<128x128xf32>
    %64 = arith.maximumf %62, %63 : vector<128x128xf32>
    %c592 = arith.constant 592 : index
    %c0_35 = arith.constant 0 : index
    %65 = vector.load %arg2[%c592, %c0_35] : memref<720x256xbf16, #tpu.memory_space<vmem>>, vector<128x256xbf16>
    %c8 = arith.constant 8 : index
    %c0_36 = arith.constant 0 : index
    %66 = vector.load %arg4[%c8, %c0_36] : memref<10x512xf32, #tpu.memory_space<vmem>>, vector<1x256xf32>
    %67 = arith.truncf %64 : vector<128x128xf32> to vector<128x128xbf16>
    %cst_37 = arith.constant dense<0.000000e+00> : vector<128x256xf32>
    %68 = tpu.matmul %67, %65, %cst_37 {dimension_numbers = #tpu.dot_dimension_numbers<[1], [0], [0], [1], [0, 0, 1, 1], [], []>} : vector<128x128xbf16>, vector<128x256xbf16>, vector<128x256xf32> -> vector<128x256xf32>
    %69 = vector.broadcast %66 : vector<1x256xf32> to vector<128x256xf32>
    %70 = arith.addf %68, %69 : vector<128x256xf32>
    %cst_38 = arith.constant 0.000000e+00 : f32
    %71 = vector.broadcast %cst_38 : f32 to vector<128x256xf32>
    %72 = arith.maximumf %70, %71 : vector<128x256xf32>
    %c0_39 = arith.constant 0 : index
    %c0_40 = arith.constant 0 : index
    %73 = vector.load %arg3[%c0_39, %c0_40] : memref<256x512xbf16, #tpu.memory_space<vmem>>, vector<256x512xbf16>
    %c9 = arith.constant 9 : index
    %c0_41 = arith.constant 0 : index
    %74 = vector.load %arg4[%c9, %c0_41] : memref<10x512xf32, #tpu.memory_space<vmem>>, vector<1x512xf32>
    %75 = arith.truncf %72 : vector<128x256xf32> to vector<128x256xbf16>
    %cst_42 = arith.constant dense<0.000000e+00> : vector<128x512xf32>
    %76 = tpu.matmul %75, %73, %cst_42 {dimension_numbers = #tpu.dot_dimension_numbers<[1], [0], [0], [1], [0, 0, 1, 1], [], []>} : vector<128x256xbf16>, vector<256x512xbf16>, vector<128x512xf32> -> vector<128x512xf32>
    %77 = vector.broadcast %74 : vector<1x512xf32> to vector<128x512xf32>
    %78 = arith.addf %76, %77 : vector<128x512xf32>
    %cst_43 = arith.constant 0.000000e+00 : f32
    %79 = vector.broadcast %cst_43 : f32 to vector<128x512xf32>
    %80 = arith.maximumf %78, %79 : vector<128x512xf32>
    %c0_44 = arith.constant 0 : index
    %c0_45 = arith.constant 0 : index
    %81 = vector.load %arg5[%c0_44, %c0_45] : memref<128x512xf32, #tpu.memory_space<vmem>>, vector<128x512xf32>
    tpu.vector_store %arg5[%c0_44, %c0_45], %80 {strides = array<i32>} : memref<128x512xf32, #tpu.memory_space<vmem>>, vector<128x512xf32>,
    return
  }
}

</mosaic_0001>

<bundles_post_ra>
// kernel: fused_reg_net.1
= control target key start
LH: loop header
LB: loop body
LE: loop exit
PB: predicated region body
PF: predicated region fallthrough
CT: control target
= control target key end

     0   :  { %10 = vsyncpa [#allocation3], 0  ;;  %s6475_s0 = inlined_call_operand.hbm [shape: f32[128,1024], index: 0, kind: input, shape index: {}]   ;;  %s6476_s1 = inlined_call_operand.hbm [shape: bf16[1024,256], index: 1, kind: input, shape index: {}]   ;;  %s6477_s2 = inlined_call_operand.hbm [shape: bf16[720,256], index: 2, kind: input, shape index: {}]   ;;  %s6478_s3 = inlined_call_operand.hbm [shape: bf16[256,512], index: 3, kind: input, shape index: {}]   ;;  %s6479_s4 = inlined_call_operand.hbm [shape: f32[10,512], index: 4, kind: input, shape index: {}]   ;;  %s6480_s5 = inlined_call_operand.hbm [shape: f32[128,512], index: 5, kind: output, shape index: {}]  }
   0x1   :  { %11 = vsyncpa [#allocation6], 0 }
   0x2   :  { %12 = vsyncpa [#allocation9], 0  ;;  %s31_s20 = sshll.u32 %s6476_s1, 4  ;;  %s32_s20 = int_to_ptr.hbm [resolvable:$true] %s31_s20 }
   0x3   :  { %13 = vsyncpa [#allocation4], 0  ;;  %s5517_s21 = smov [#allocation5]   ;;  %s57_s25 = sshll.u32 %s6478_s3, 4  ;;  %s58_s25 = int_to_ptr.hbm [resolvable:$true] %s57_s25 }
   0x4   :  { %s33_s22 = sshll.u32 %s5517_s21, 4  ;;  %s5518_s26 = smov 128   ;;  %s34_s22 = int_to_ptr.vmem [resolvable:$true] %s33_s22 }
   0x5   :  { %s5519_s27 = smov 8   ;;  %s5520_s28 = smov [#allocation8]  }
   0x6   :  { %39 = dma.hbm_to_vmem [thread:$0]  %s32_s20, 16384, %s34_s22, [#allocation6], %s5518_s26, %s5518_s26, %s5519_s27  }
   0x7   :  { %s59_s29 = sshll.u32 %s5520_s28, 4  ;;  %s5521_s30 = smov 256   ;;  %s60_s29 = int_to_ptr.vmem [resolvable:$true] %s59_s29 }
   0x8   :  { %s5522_s6 = smov 16   ;;  %s18_s8 = sshll.u32 %s6475_s0, 4  ;;  %s19_s8 = int_to_ptr.hbm [resolvable:$true] %s18_s8 }
   0x9   :  { %65 = dma.hbm_to_vmem [thread:$0]  %s58_s25, 8192, %s60_s29, [#allocation9], %s5521_s30, %s5521_s30, %s5522_s6  }
   0xa   :  { %s5523_s9 = smov [#allocation2]   ;;  %s44_s12 = sshll.u32 %s6477_s2, 4  ;;  %s45_s12 = int_to_ptr.hbm [resolvable:$true] %s44_s12 }
   0xb   :  { %s20_s10 = sshll.u32 %s5523_s9, 4  ;;  %s5524_s13 = smov 1024   ;;  %s21_s10 = int_to_ptr.vmem [resolvable:$true] %s20_s10 }
   0xc   :  { %s5525_s14 = smov 64   ;;  %s5526_s15 = smov [#allocation7]  }
   0xd   :  { %26 = dma.hbm_to_vmem [thread:$0]  %s19_s8, 16384, %s21_s10, [#allocation3], %s5524_s13, %s5524_s13, %s5525_s14  }
   0xe   :  { %s46_s16 = sshll.u32 %s5526_s15, 4  ;;  %s70_s19 = sshll.u32 %s6479_s4, 4  ;;  %s47_s16 = int_to_ptr.vmem [resolvable:$true] %s46_s16  ;;  %s71_s19 = int_to_ptr.hbm [resolvable:$true] %s70_s19 }
   0xf   :  { %52 = dma.hbm_to_vmem [thread:$0]  %s45_s12, 11520, %s47_s16, [#allocation6], %s5518_s26, %s5518_s26, %s5519_s27  }
  0x10   :  { %s5527_s0 = smov [#allocation10]   ;;  %s5528_s21 = smov 512  }
  0x11   :  { %s72_s20 = sshll.u32 %s5527_s0, 4  ;;  %s5529_s22 = smov 32   ;;  %s73_s20 = int_to_ptr.vmem [resolvable:$true] %s72_s20 }
  0x12   :  { %78 = dma.hbm_to_vmem [thread:$0]  %s71_s19, 1024, %s73_s20, [#allocation9], %s5528_s21, %s5528_s21, %s5529_s22  }
  0x13   :  { %5509 = dma.done.wait [#allocation3], 16384  }
  0x14   :  { %5510 = vsyncadd [#allocation3], 4294950912 }
  0x15   :  { %5511 = dma.done.wait [#allocation6], 27904  }
  0x16   :  { %5512 = vsyncadd [#allocation6], 4294939392 }
  0x17   :  { %5513 = dma.done.wait [#allocation9], 9216  }
  0x18   :  { %5514 = vsyncadd [#allocation9], 4294958080  ;;  %v4127_v0 = vld [vmem:[#allocation5 + $0x70] sm:$0xf]  ;;  %v5104_v1 = vld [vmem:[#allocation5 + $0x74] sm:$0xf0] }
  0x19   :  { %v4191_v2 = vld [vmem:[#allocation5 + $0xf0] sm:$0xf]  ;;  %v4128_v3 = vor.u32 %v5104_v1, %v4127_v0  ;;  %v5120_v4 = vld [vmem:[#allocation5 + $0xf4] sm:$0xf0]  ;;  %v4119_v5 = vld [vmem:[#allocation5 + $0x60] sm:$0xf] }
  0x1a   :  { %v5102_v6 = vld [vmem:[#allocation5 + $0x64] sm:$0xf0]  ;;  %v4192_v7 = vor.u32 %v5120_v4, %v4191_v2  ;;  %v4183_v8 = vld [vmem:[#allocation5 + $0xe0] sm:$0xf]  ;;  %v4111_v12 = vld [vmem:[#allocation5 + $0x50] sm:$0xf] }
  0x1b   :  { %v5118_v9 = vld [vmem:[#allocation5 + $0xe4] sm:$0xf0]  ;;  %1066 = vmatpush.bf16.msra.mxu0 %v4128_v3  ;;  %5334 = vmatpush.bf16.msra.mxu2 %v4128_v3  ;;  %v4120_v10 = vor.u32 %v5102_v6, %v4119_v5  ;;  %v5100_v13 = vld [vmem:[#allocation5 + $0x54] sm:$0xf0]  ;;  %v4175_v14 = vld [vmem:[#allocation5 + $0xd0] sm:$0xf] }
  0x1c   :  { %5342 = vmatpush.bf16.msra.mxu3 %v4192_v7  ;;  %v4184_v11 = vor.u32 %v5118_v9, %v4183_v8  ;;  %1115 = vmatpush.bf16.msra.mxu1 %v4192_v7  ;;  %v5116_v15 = vld [vmem:[#allocation5 + $0xd4] sm:$0xf0]  ;;  %v4112_v16 = vor.u32 %v5100_v13, %v4111_v12  ;;  %v4103_v18 = vld [vmem:[#allocation5 + $0x40] sm:$0xf]  ;;  %v5098_v19 = vld [vmem:[#allocation5 + $0x44] sm:$0xf0] }
  0x1d   :  { %v4176_v17 = vor.u32 %v5116_v15, %v4175_v14  ;;  %v4167_v20 = vld [vmem:[#allocation5 + $0xc0] sm:$0xf]  ;;  %v5114_v21 = vld [vmem:[#allocation5 + $0xc4] sm:$0xf0]  ;;  %v4104_v22 = vor.u32 %v5098_v19, %v4103_v18  ;;  %v4095_v24 = vld [vmem:[#allocation5 + $0x30] sm:$0xf] }
  0x1e   :  { %v4168_v23 = vor.u32 %v5114_v21, %v4167_v20  ;;  %v5096_v25 = vld [vmem:[#allocation5 + $0x34] sm:$0xf0]  ;;  %v4159_v26 = vld [vmem:[#allocation5 + $0xb0] sm:$0xf]  ;;  %v4087_v30 = vld [vmem:[#allocation5 + $0x20] sm:$0xf] }
  0x1f   :  { %1067 = vmatpush.bf16.msra.mxu0 %v4120_v10  ;;  %5335 = vmatpush.bf16.msra.mxu2 %v4120_v10  ;;  %v5112_v27 = vld [vmem:[#allocation5 + $0xb4] sm:$0xf0]  ;;  %v4096_v28 = vor.u32 %v5096_v25, %v4095_v24  ;;  %v5094_v31 = vld [vmem:[#allocation5 + $0x24] sm:$0xf0]  ;;  %v4151_v32 = vld [vmem:[#allocation5 + $0xa0] sm:$0xf] }
  0x20   :  { %5343 = vmatpush.bf16.msra.mxu3 %v4184_v11  ;;  %1116 = vmatpush.bf16.msra.mxu1 %v4184_v11  ;;  %v4160_v29 = vor.u32 %v5112_v27, %v4159_v26  ;;  %v5110_v33 = vld [vmem:[#allocation5 + $0xa4] sm:$0xf0]  ;;  %v4088_v34 = vor.u32 %v5094_v31, %v4087_v30  ;;  %v4079_v36 = vld [vmem:[#allocation5 + $0x10] sm:$0xf]  ;;  %v5092_v37 = vld [vmem:[#allocation5 + $0x14] sm:$0xf0] }
  0x21   :  { %v4152_v35 = vor.u32 %v5110_v33, %v4151_v32  ;;  %v4143_v38 = vld [vmem:[#allocation5 + $0x90] sm:$0xf]  ;;  %v5108_v39 = vld [vmem:[#allocation5 + $0x94] sm:$0xf0]  ;;  %v4080_v40 = vor.u32 %v5092_v37, %v4079_v36  ;;  %v4071_v42 = vld [vmem:[#allocation5] sm:$0xf] }
  0x22   :  { %v4144_v41 = vor.u32 %v5108_v39, %v4143_v38  ;;  %v5090_v43 = vld [vmem:[#allocation5 + $0x4] sm:$0xf0]  ;;  %v4135_v44 = vld [vmem:[#allocation5 + $0x80] sm:$0xf]  ;;  %v4255_v46 = vld [vmem:[#allocation5 + $0x170] sm:$0xf] }
  0x23   :  { %1068 = vmatpush.bf16.msra.mxu0 %v4112_v16  ;;  %5336 = vmatpush.bf16.msra.mxu2 %v4112_v16  ;;  %v5106_v45 = vld [vmem:[#allocation5 + $0x84] sm:$0xf0]  ;;  %v5136_v47 = vld [vmem:[#allocation5 + $0x174] sm:$0xf0]  ;;  %v100_v48 = vld [vmem:[#allocation2] sm:$0xff]  ;;  %v4072_v51 = vor.u32 %v5090_v43, %v4071_v42  ;;  %vm2320_vm0 = vcmask 523264  }
  0x24   :  { %5344 = vmatpush.bf16.msra.mxu3 %v4176_v17  ;;  %1117 = vmatpush.bf16.msra.mxu1 %v4176_v17  ;;  %v4319_v49 = vld [vmem:[#allocation5 + $0x1f0] sm:$0xf]  ;;  %v5152_v50 = vld [vmem:[#allocation5 + $0x1f4] sm:$0xf0]  ;;  %v108_v52 = vld [vmem:[#allocation2 + $0x40] sm:$0xff]  ;;  %v4136_v55 = vor.u32 %v5106_v45, %v4135_v44  ;;  %v4256_v58 = vor.u32 %v5136_v47, %v4255_v46  ;;  %vm2435_vm1 = vcmask 261120  }
  0x25   :  { %v164_v53 = vld [vmem:[#allocation2 + $0x200] sm:$0xff]  ;;  %v165_v56 = vld [vmem:[#allocation2 + $0x208] sm:$0xff]  ;;  %v4320_v60 = vor.u32 %v5152_v50, %v4319_v49  ;;  %v5579_v0 = vpack.c.bf16 %v108_v52, %v100_v48  ;;  %v4239_v7 = vld [vmem:[#allocation5 + $0x150] sm:$0xf]  ;;  %vm2542_vm2 = vcmask 130048   ;;  %s5530_s2 = smov [#allocation11]  }
  0x26   :  { %v172_v54 = vld [vmem:[#allocation2 + $0x240] sm:$0xff]  ;;  %v173_v57 = vld [vmem:[#allocation2 + $0x248] sm:$0xff]  ;;  %v5132_v9 = vld [vmem:[#allocation5 + $0x154] sm:$0xf0]  ;;  %s4052_s4 = sshll.u32 %s5530_s2, 4  ;;  %s4054_s25 = sshll.u32 %s6480_s5, 4  ;;  %s4053_s4 = int_to_ptr.vmem [resolvable:$true] %s4052_s4  ;;  %s4055_s25 = int_to_ptr.hbm [resolvable:$true] %s4054_s25 }
  0x27   :  { %1069 = vmatpush.bf16.msra.mxu0 %v4104_v22  ;;  %5337 = vmatpush.bf16.msra.mxu2 %v4104_v22  ;;  %v4247_v59 = vld [vmem:[#allocation5 + $0x160] sm:$0xf]  ;;  %v5134_v61 = vld [vmem:[#allocation5 + $0x164] sm:$0xf0]  ;;  %v5581_v1 = vpack.c.bf16 %v172_v54, %v164_v53  ;;  %v5583_v4 = vpack.c.bf16 %v173_v57, %v165_v56  ;;  %v4383_v10 = vld [vmem:[#allocation5 + $0x270] sm:$0xf]  ;;  %v4240_v15 = vor.u32 %v5132_v9, %v4239_v7 }
  0x28   :  { %5345 = vmatpush.bf16.msra.mxu3 %v4168_v23  ;;  %1118 = vmatpush.bf16.msra.mxu1 %v4168_v23  ;;  %v101_v62 = vld [vmem:[#allocation2 + $0x8] sm:$0xff]  ;;  %v4311_v2 = vld [vmem:[#allocation5 + $0x1e0] sm:$0xf]  ;;  %v4248_v5 = vor.u32 %v5134_v61, %v4247_v59  ;;  %v5168_v11 = vld [vmem:[#allocation5 + $0x274] sm:$0xf0] }
  0x29   :  { %v109_v63 = vld [vmem:[#allocation2 + $0x48] sm:$0xff]  ;;  %v4303_v12 = vld [vmem:[#allocation5 + $0x1d0] sm:$0xf]  ;;  %v5148_v13 = vld [vmem:[#allocation5 + $0x1d4] sm:$0xf0]  ;;  %v4384_v14 = vor.u32 %v5168_v11, %v4383_v10 }
  0x2a   :  { %v5150_v3 = vld [vmem:[#allocation5 + $0x1e4] sm:$0xf0]  ;;  %v5585_v6 = vpack.c.bf16 %v109_v63, %v101_v62  ;;  %v4375_v16 = vld [vmem:[#allocation5 + $0x260] sm:$0xf]  ;;  %v4304_v18 = vor.u32 %v5148_v13, %v4303_v12  ;;  %v4367_v24 = vld [vmem:[#allocation5 + $0x250] sm:$0xf] }
  0x2b   :  { %1070 = vmatpush.bf16.msra.mxu0 %v4096_v28  ;;  %5338 = vmatpush.bf16.msra.mxu2 %v4096_v28  ;;  %v4312_v8 = vor.u32 %v5150_v3, %v4311_v2  ;;  %v5166_v17 = vld [vmem:[#allocation5 + $0x264] sm:$0xf0]  ;;  %v4231_v19 = vld [vmem:[#allocation5 + $0x140] sm:$0xf]  ;;  %v5164_v25 = vld [vmem:[#allocation5 + $0x254] sm:$0xf0] }
  0x2c   :  { %5346 = vmatpush.bf16.msra.mxu3 %v4160_v29  ;;  %1119 = vmatpush.bf16.msra.mxu1 %v4160_v29  ;;  %v5130_v20 = vld [vmem:[#allocation5 + $0x144] sm:$0xf0]  ;;  %v4295_v21 = vld [vmem:[#allocation5 + $0x1c0] sm:$0xf]  ;;  %v4376_v22 = vor.u32 %v5166_v17, %v4375_v16  ;;  %v4447_v27 = vld [vmem:[#allocation5 + $0x2f0] sm:$0xf] }
  0x2d   :  { %v5146_v23 = vld [vmem:[#allocation5 + $0x1c4] sm:$0xf0]  ;;  %v4232_v26 = vor.u32 %v5130_v20, %v4231_v19  ;;  %v5184_v28 = vld [vmem:[#allocation5 + $0x2f4] sm:$0xf0]  ;;  %v116_v29 = vld [vmem:[#allocation2 + $0x80] sm:$0xff] }
  0x2e   :  { %v4296_v30 = vor.u32 %v5146_v23, %v4295_v21  ;;  %v4223_v31 = vld [vmem:[#allocation5 + $0x130] sm:$0xf]  ;;  %v5128_v32 = vld [vmem:[#allocation5 + $0x134] sm:$0xf0]  ;;  %v4359_v37 = vld [vmem:[#allocation5 + $0x240] sm:$0xf] }
  0x2f   :  { %1071 = vmatpush.bf16.msra.mxu0 %v4088_v34  ;;  %5339 = vmatpush.bf16.msra.mxu2 %v4088_v34  ;;  %v4287_v33 = vld [vmem:[#allocation5 + $0x1b0] sm:$0xf]  ;;  %v4368_v34 = vor.u32 %v5164_v25, %v4367_v24  ;;  %v5144_v36 = vld [vmem:[#allocation5 + $0x1b4] sm:$0xf0]  ;;  %v5162_v38 = vld [vmem:[#allocation5 + $0x244] sm:$0xf0]  ;;  %v4224_v45 = vor.u32 %v5128_v32, %v4223_v31 }
  0x30   :  { %5347 = vmatpush.bf16.msra.mxu3 %v4152_v35  ;;  %1120 = vmatpush.bf16.msra.mxu1 %v4152_v35  ;;  %v4448_v35 = vor.u32 %v5184_v28, %v4447_v27  ;;  %v124_v39 = vld [vmem:[#allocation2 + $0xc0] sm:$0xff]  ;;  %v181_v42 = vld [vmem:[#allocation2 + $0x288] sm:$0xff]  ;;  %v4288_v47 = vor.u32 %v5144_v36, %v4287_v33  ;;  %v4360_v50 = vor.u32 %v5162_v38, %v4359_v37  ;;  %v4351_v59 = vld [vmem:[#allocation5 + $0x230] sm:$0xf] }
  0x31   :  { %v189_v43 = vld [vmem:[#allocation2 + $0x2c8] sm:$0xff]  ;;  %v4215_v48 = vld [vmem:[#allocation5 + $0x120] sm:$0xf]  ;;  %v4207_v2 = vld [vmem:[#allocation5 + $0x110] sm:$0xf] }
  0x32   :  { %v117_v44 = vld [vmem:[#allocation2 + $0x88] sm:$0xff]  ;;  %v4279_v53 = vld [vmem:[#allocation5 + $0x1a0] sm:$0xf]  ;;  %v5124_v3 = vld [vmem:[#allocation5 + $0x114] sm:$0xf0] }
  0x33   :  { %1072 = vmatpush.bf16.msra.mxu0 %v4080_v40  ;;  %5340 = vmatpush.bf16.msra.mxu2 %v4080_v40  ;;  %v180_v40 = vld [vmem:[#allocation2 + $0x280] sm:$0xff]  ;;  %v125_v46 = vld [vmem:[#allocation2 + $0xc8] sm:$0xff]  ;;  %v4271_v7 = vld [vmem:[#allocation5 + $0x190] sm:$0xf] }
  0x34   :  { %5348 = vmatpush.bf16.msra.mxu3 %v4144_v41  ;;  %1121 = vmatpush.bf16.msra.mxu1 %v4144_v41  ;;  %v188_v41 = vld [vmem:[#allocation2 + $0x2c0] sm:$0xff]  ;;  %v5126_v49 = vld [vmem:[#allocation5 + $0x124] sm:$0xf0]  ;;  %v5597_v56 = vpack.c.bf16 %v125_v46, %v117_v44  ;;  %v5140_v9 = vld [vmem:[#allocation5 + $0x194] sm:$0xf0] }
  0x35   :  { %v5593_v52 = vpack.c.bf16 %v188_v41, %v180_v40  ;;  %v5142_v54 = vld [vmem:[#allocation5 + $0x1a4] sm:$0xf0]  ;;  %v4216_v57 = vor.u32 %v5126_v49, %v4215_v48  ;;  %v4439_v62 = vld [vmem:[#allocation5 + $0x2e0] sm:$0xf]  ;;  %v4272_v12 = vor.u32 %v5140_v9, %v4271_v7  ;;  %v4335_v19 = vld [vmem:[#allocation5 + $0x210] sm:$0xf] }
  0x36   :  { %v5182_v63 = vld [vmem:[#allocation5 + $0x2e4] sm:$0xf0]  ;;  %v4343_v10 = vld [vmem:[#allocation5 + $0x220] sm:$0xf]  ;;  %v5156_v20 = vld [vmem:[#allocation5 + $0x214] sm:$0xf0] }
  0x37   :  { %1073 = vmatpush.bf16.msra.mxu0 %v4072_v51  ;;  %5341 = vmatpush.bf16.msra.mxu2 %v4072_v51  ;;  %v5591_v51 = vpack.c.bf16 %v124_v39, %v116_v29  ;;  %v5158_v11 = vld [vmem:[#allocation5 + $0x224] sm:$0xf0]  ;;  %v4199_v16 = vld [vmem:[#allocation5 + $0x100] sm:$0xf]  ;;  %v4336_v27 = vor.u32 %v5156_v20, %v4335_v19  ;;  %v4415_v37 = vld [vmem:[#allocation5 + $0x2b0] sm:$0xf] }
  0x38   :  { %5349 = vmatpush.bf16.msra.mxu3 %v4136_v55  ;;  %1122 = vmatpush.bf16.msra.mxu1 %v4136_v55  ;;  %v5595_v55 = vpack.c.bf16 %v189_v43, %v181_v42  ;;  %v4344_v13 = vor.u32 %v5158_v11, %v4343_v10  ;;  %v4423_v21 = vld [vmem:[#allocation5 + $0x2c0] sm:$0xf]  ;;  %v5138_v25 = vld [vmem:[#allocation5 + $0x184] sm:$0xf0]  ;;  %v5176_v38 = vld [vmem:[#allocation5 + $0x2b4] sm:$0xf0] }
  0x39   :  { %v4263_v23 = vld [vmem:[#allocation5 + $0x180] sm:$0xf]  ;;  %v5154_v32 = vld [vmem:[#allocation5 + $0x204] sm:$0xf0]  ;;  %v4511_v49 = vld [vmem:[#allocation5 + $0x370] sm:$0xf] }
  0x3a   :  { %1074 = vmatmul.bf16.vlgmr.msra.gmra.mxu0 %v5579_v0  ;;  %1094 = vmatmul.bf16.vlgmr.msra.gmra.mxu2 %v5581_v1  ;;  %v4264_v28 = vor.u32 %v5138_v25, %v4263_v23  ;;  %v140_v29 = vld [vmem:[#allocation2 + $0x140] sm:$0xff]  ;;  %v205_v36 = vld [vmem:[#allocation2 + $0x348] sm:$0xff]  ;;  %v110_v25 = vld [vmem:[#allocation2 + $0x50] sm:$0xff] }
  0x3b   :  { %1164 = vmatpush.bf16.msrb.mxu2 %v4256_v58  ;;  %1143 = vmatmul.bf16.vlgmr.msra.gmra.mxu3 %v5583_v4  ;;  %v4280_v58 = vor.u32 %v5142_v54, %v4279_v53  ;;  %v4327_v31 = vld [vmem:[#allocation5 + $0x200] sm:$0xf]  ;;  %v133_v39 = vld [vmem:[#allocation2 + $0x108] sm:$0xff]  ;;  %v4575_v54 = vld [vmem:[#allocation5 + $0x3f0] sm:$0xf] }
  0x3c   :  { %1213 = vmatpush.bf16.msrb.mxu3 %v4320_v60  ;;  %1123 = vmatmul.bf16.vlgmr.msra.gmra.mxu1 %v5585_v6  ;;  %v5160_v60 = vld [vmem:[#allocation5 + $0x234] sm:$0xf0]  ;;  %v196_v33 = vld [vmem:[#allocation2 + $0x300] sm:$0xff]  ;;  %v141_v40 = vld [vmem:[#allocation2 + $0x148] sm:$0xff]  ;;  %v4328_v41 = vor.u32 %v5154_v32, %v4327_v31 }
  0x3d   :  { %1262 = vmatpush.bf16.msrb.mxu0 %v4384_v14  ;;  %1311 = vmatpush.bf16.msrb.mxu1 %v4448_v35  ;;  %v4352_v61 = vor.u32 %v5160_v60, %v4351_v59  ;;  %v4431_v14 = vld [vmem:[#allocation5 + $0x2d0] sm:$0xf]  ;;  %v197_v35 = vld [vmem:[#allocation2 + $0x308] sm:$0xff]  ;;  %v5609_v46 = vpack.c.bf16 %v141_v40, %v133_v39  ;;  %v5172_v60 = vld [vmem:[#allocation5 + $0x294] sm:$0xf0] }
  0x3e   :  { %v5607_v44 = vpack.c.bf16 %v205_v36, %v197_v35  ;;  %v5174_v48 = vld [vmem:[#allocation5 + $0x2a4] sm:$0xf0]  ;;  %v4399_v59 = vld [vmem:[#allocation5 + $0x290] sm:$0xf]  ;;  %v212_v7 = vld [vmem:[#allocation2 + $0x380] sm:$0xff] }
  0x3f   :  { %1165 = vmatpush.bf16.msrb.mxu2 %v4248_v5  ;;  %v4440_v5 = vor.u32 %v5182_v63, %v4439_v62  ;;  %v4400_v62 = vor.u32 %v5172_v60, %v4399_v59  ;;  %v4391_v63 = vld [vmem:[#allocation5 + $0x280] sm:$0xf]  ;;  %v213_v10 = vld [vmem:[#allocation2 + $0x388] sm:$0xff]  ;;  %v4495_v36 = vld [vmem:[#allocation5 + $0x350] sm:$0xf] }
  0x40   :  { %1214 = vmatpush.bf16.msrb.mxu3 %v4312_v8  ;;  %v4208_v8 = vor.u32 %v5124_v3, %v4207_v2  ;;  %v5170_v2 = vld [vmem:[#allocation5 + $0x284] sm:$0xf0]  ;;  %v148_v3 = vld [vmem:[#allocation2 + $0x180] sm:$0xff]  ;;  %v5212_v40 = vld [vmem:[#allocation5 + $0x3d4] sm:$0xf0] }
  0x41   :  { %1263 = vmatpush.bf16.msrb.mxu0 %v4376_v22  ;;  %1312 = vmatpush.bf16.msrb.mxu1 %v4440_v5  ;;  %v5178_v22 = vld [vmem:[#allocation5 + $0x2c4] sm:$0xf0]  ;;  %v156_v5 = vld [vmem:[#allocation2 + $0x1c0] sm:$0xff]  ;;  %v4392_v9 = vor.u32 %v5170_v2, %v4391_v63 }
  0x42   :  { %v221_v11 = vld [vmem:[#allocation2 + $0x3c8] sm:$0xff]  ;;  %v4567_v20 = vld [vmem:[#allocation5 + $0x3e0] sm:$0xf] }
  0x43   :  { %1166 = vmatpush.bf16.msrb.mxu2 %v4240_v15  ;;  %v5180_v15 = vld [vmem:[#allocation5 + $0x2d4] sm:$0xf0]  ;;  %v5198_v19 = vld [vmem:[#allocation5 + $0x364] sm:$0xf0]  ;;  %v4551_v2 = vld [vmem:[#allocation5 + $0x3c0] sm:$0xf] }
  0x44   :  { %1215 = vmatpush.bf16.msrb.mxu3 %v4304_v18  ;;  %v4432_v17 = vor.u32 %v5180_v15, %v4431_v14  ;;  %v5122_v18 = vld [vmem:[#allocation5 + $0x104] sm:$0xf0]  ;;  %v5615_v14 = vpack.c.bf16 %v156_v5, %v148_v3 }
  0x45   :  { %1264 = vmatpush.bf16.msrb.mxu0 %v4368_v34  ;;  %v4200_v24 = vor.u32 %v5122_v18, %v4199_v16  ;;  %v204_v34 = vld [vmem:[#allocation2 + $0x340] sm:$0xff]  ;;  %v5619_v16 = vpack.c.bf16 %v221_v11, %v213_v10  ;;  %v113_v31 = vld [vmem:[#allocation2 + $0x68] sm:$0xff] }
  0x46   :  { %1313 = vmatpush.bf16.msrb.mxu1 %v4432_v17  ;;  %v5605_v43 = vpack.c.bf16 %v204_v34, %v196_v33  ;;  %v4503_v18 = vld [vmem:[#allocation5 + $0x360] sm:$0xf]  ;;  %v5194_v63 = vld [vmem:[#allocation5 + $0x344] sm:$0xf0] }
  0x47   :  { %1167 = vmatpush.bf16.msrb.mxu2 %v4232_v26  ;;  %v132_v26 = vld [vmem:[#allocation2 + $0x100] sm:$0xff]  ;;  %v5210_v5 = vld [vmem:[#allocation5 + $0x3c4] sm:$0xf0] }
  0x48   :  { %1216 = vmatpush.bf16.msrb.mxu3 %v4296_v30  ;;  %v4424_v30 = vor.u32 %v5178_v22, %v4423_v21  ;;  %v5603_v42 = vpack.c.bf16 %v140_v29, %v132_v26  ;;  %v4504_v21 = vor.u32 %v5198_v19, %v4503_v18  ;;  %v5214_v22 = vld [vmem:[#allocation5 + $0x3e4] sm:$0xf0]  ;;  %v104_v26 = vld [vmem:[#allocation2 + $0x20] sm:$0xff]  ;;  %v111_v29 = vld [vmem:[#allocation2 + $0x58] sm:$0xff] }
  0x49   :  { %1265 = vmatpush.bf16.msrb.mxu0 %v4360_v50  ;;  %v5200_v50 = vld [vmem:[#allocation5 + $0x374] sm:$0xf0]  ;;  %v4568_v23 = vor.u32 %v5214_v22, %v4567_v20  ;;  %v136_v10 = vld [vmem:[#allocation2 + $0x120] sm:$0xff]  ;;  %v137_v18 = vld [vmem:[#allocation2 + $0x128] sm:$0xff] }
  0x4a   :  { %1079 = vmatmul.bf16.gmra.mxu0 %v5591_v51  ;;  %1099 = vmatmul.bf16.gmra.mxu2 %v5593_v52  ;;  %v144_v11 = vld [vmem:[#allocation2 + $0x160] sm:$0xff]  ;;  %v145_v19 = vld [vmem:[#allocation2 + $0x168] sm:$0xff] }
  0x4b   :  { %1168 = vmatpush.bf16.msrb.mxu2 %v4224_v45  ;;  %1148 = vmatmul.bf16.gmra.mxu3 %v5595_v55  ;;  %v4416_v45 = vor.u32 %v5176_v38, %v4415_v37  ;;  %v5196_v37 = vld [vmem:[#allocation5 + $0x354] sm:$0xf0]  ;;  %v4559_v38 = vld [vmem:[#allocation5 + $0x3d0] sm:$0xf] }
  0x4c   :  { %1217 = vmatpush.bf16.msrb.mxu3 %v4288_v47  ;;  %1128 = vmatmul.bf16.gmra.mxu1 %v5597_v56  ;;  %v4407_v47 = vld [vmem:[#allocation5 + $0x2a0] sm:$0xf]  ;;  %v4496_v39 = vor.u32 %v5196_v37, %v4495_v36 }
  0x4d   :  { %1266 = vmatpush.bf16.msrb.mxu0 %v4352_v61  ;;  %1314 = vmatpush.bf16.msrb.mxu1 %v4424_v30  ;;  %v4408_v53 = vor.u32 %v5174_v48, %v4407_v47  ;;  %v105_v30 = vld [vmem:[#allocation2 + $0x28] sm:$0xff]  ;;  %v126_v47 = vld [vmem:[#allocation2 + $0xd0] sm:$0xff]  ;;  %v120_v48 = vld [vmem:[#allocation2 + $0xa0] sm:$0xff] }
  0x4e   :  { %v5633_v35 = vpack.c.bf16 %v113_v31, %v105_v30  ;;  %v150_v30 = vld [vmem:[#allocation2 + $0x190] sm:$0xff]  ;;  %v152_v36 = vld [vmem:[#allocation2 + $0x1a0] sm:$0xff] }
  0x4f   :  { %1169 = vmatpush.bf16.msrb.mxu2 %v4216_v57  ;;  %v4512_v57 = vor.u32 %v5200_v50, %v4511_v49  ;;  %v128_v49 = vld [vmem:[#allocation2 + $0xe0] sm:$0xff]  ;;  %v119_v50 = vld [vmem:[#allocation2 + $0x98] sm:$0xff]  ;;  %v158_v31 = vld [vmem:[#allocation2 + $0x1d0] sm:$0xff] }
  0x50   :  { %1218 = vmatpush.bf16.msrb.mxu3 %v4280_v58  ;;  %v5216_v58 = vld [vmem:[#allocation5 + $0x3f4] sm:$0xf0]  ;;  %v5641_v59 = vpack.c.bf16 %v128_v49, %v120_v48  ;;  %v160_v37 = vld [vmem:[#allocation2 + $0x1e0] sm:$0xff] }
  0x51   :  { %1267 = vmatpush.bf16.msrb.mxu0 %v4344_v13  ;;  %1315 = vmatpush.bf16.msrb.mxu1 %v4416_v45  ;;  %v4576_v61 = vor.u32 %v5216_v58, %v4575_v54  ;;  %v157_v13 = vld [vmem:[#allocation2 + $0x1c8] sm:$0xff]  ;;  %v118_v45 = vld [vmem:[#allocation2 + $0x90] sm:$0xff] }
  0x52   :  { %v121_v54 = vld [vmem:[#allocation2 + $0xa8] sm:$0xff]  ;;  %v5639_v58 = vpack.c.bf16 %v126_v47, %v118_v45  ;;  %v5663_v45 = vpack.c.bf16 %v158_v31, %v150_v30  ;;  %v5665_v47 = vpack.c.bf16 %v160_v37, %v152_v36  ;;  %v5103_v30 = vld [vmem:[#allocation5 + $0x74] sm:$0xf]  ;;  %v4129_v31 = vld [vmem:[#allocation5 + $0x78] sm:$0xf0] }
  0x53   :  { %1170 = vmatpush.bf16.msrb.mxu2 %v4208_v8  ;;  %v220_v8 = vld [vmem:[#allocation2 + $0x3c0] sm:$0xff]  ;;  %v4463_v36 = vld [vmem:[#allocation5 + $0x310] sm:$0xf]  ;;  %v5188_v37 = vld [vmem:[#allocation5 + $0x314] sm:$0xf0] }
  0x54   :  { %1219 = vmatpush.bf16.msrb.mxu3 %v4272_v12  ;;  %v149_v12 = vld [vmem:[#allocation2 + $0x188] sm:$0xff]  ;;  %v5617_v15 = vpack.c.bf16 %v220_v8, %v212_v7  ;;  %v4552_v7 = vor.u32 %v5210_v5, %v4551_v2  ;;  %v134_v8 = vld [vmem:[#allocation2 + $0x110] sm:$0xff]  ;;  %6505 = vst [vmem:[#allocation16_spill] sm:$0xff] %v5665_v47 }
  0x55   :  { %1268 = vmatpush.bf16.msrb.mxu0 %v4336_v27  ;;  %1316 = vmatpush.bf16.msrb.mxu1 %v4408_v53  ;;  %v5621_v17 = vpack.c.bf16 %v157_v13, %v149_v12  ;;  %v112_v27 = vld [vmem:[#allocation2 + $0x60] sm:$0xff]  ;;  %v127_v53 = vld [vmem:[#allocation2 + $0xd8] sm:$0xff]  ;;  %v174_v5 = vld [vmem:[#allocation2 + $0x250] sm:$0xff] }
  0x56   :  { %v5629_v33 = vpack.c.bf16 %v112_v27, %v104_v26  ;;  %v5643_v60 = vpack.c.bf16 %v127_v53, %v119_v50  ;;  %v135_v12 = vld [vmem:[#allocation2 + $0x118] sm:$0xff]  ;;  %v4543_v26 = vld [vmem:[#allocation5 + $0x3b0] sm:$0xf]  ;;  %v4471_v50 = vld [vmem:[#allocation5 + $0x320] sm:$0xf] }
  0x57   :  { %1171 = vmatpush.bf16.msrb.mxu2 %v4200_v24  ;;  %v102_v24 = vld [vmem:[#allocation2 + $0x10] sm:$0xff]  ;;  %v143_v13 = vld [vmem:[#allocation2 + $0x158] sm:$0xff]  ;;  %v5190_v53 = vld [vmem:[#allocation5 + $0x324] sm:$0xf0] }
  0x58   :  { %1220 = vmatpush.bf16.msrb.mxu3 %v4264_v28  ;;  %v103_v28 = vld [vmem:[#allocation2 + $0x18] sm:$0xff]  ;;  %v5627_v32 = vpack.c.bf16 %v110_v25, %v102_v24  ;;  %v5655_v22 = vpack.c.bf16 %v143_v13, %v135_v12  ;;  %v4479_v24 = vld [vmem:[#allocation5 + $0x330] sm:$0xf]  ;;  %v177_v12 = vld [vmem:[#allocation2 + $0x268] sm:$0xff] }
  0x59   :  { %1269 = vmatpush.bf16.msrb.mxu0 %v4328_v41  ;;  %1317 = vmatpush.bf16.msrb.mxu1 %v4400_v62  ;;  %v5631_v34 = vpack.c.bf16 %v111_v29, %v103_v28  ;;  %v4560_v41 = vor.u32 %v5212_v40, %v4559_v38  ;;  %v4487_v62 = vld [vmem:[#allocation5 + $0x340] sm:$0xf]  ;;  %v5192_v25 = vld [vmem:[#allocation5 + $0x334] sm:$0xf0]  ;;  %v153_v40 = vld [vmem:[#allocation2 + $0x1a8] sm:$0xff] }
  0x5a   :  { %1084 = vmatmul.bf16.gmra.mxu0 %v5603_v42  ;;  %1104 = vmatmul.bf16.gmra.mxu2 %v5605_v43  ;;  %v4488_v3 = vor.u32 %v5194_v63, %v4487_v62  ;;  %v4480_v27 = vor.u32 %v5192_v25, %v4479_v24  ;;  %v5208_v28 = vld [vmem:[#allocation5 + $0x3b4] sm:$0xf0]  ;;  %v5206_v62 = vld [vmem:[#allocation5 + $0x3a4] sm:$0xf0] }
  0x5b   :  { %1153 = vmatmul.bf16.gmra.mxu3 %v5607_v44  ;;  %1360 = vmatpush.bf16.msra.mxu2 %v4512_v57  ;;  %v129_v57 = vld [vmem:[#allocation2 + $0xe8] sm:$0xff]  ;;  %v4544_v29 = vor.u32 %v5208_v28, %v4543_v26  ;;  %v151_v38 = vld [vmem:[#allocation2 + $0x198] sm:$0xff] }
  0x5c   :  { %1133 = vmatmul.bf16.gmra.mxu1 %v5609_v46  ;;  %1409 = vmatpush.bf16.msra.mxu3 %v4576_v61  ;;  %v5645_v61 = vpack.c.bf16 %v129_v57, %v121_v54  ;;  %v4535_v54 = vld [vmem:[#allocation5 + $0x3a0] sm:$0xf]  ;;  %v4472_v57 = vor.u32 %v5190_v53, %v4471_v50  ;;  %v356_v2 = vld [vmem:[#allocation10] ss:$8 sm:$0x3] }
  0x5d   :  { %1318 = vmatpush.bf16.msrb.mxu1 %v4392_v9  ;;  %v142_v9 = vld [vmem:[#allocation2 + $0x150] sm:$0xff]  ;;  %v4536_v63 = vor.u32 %v5206_v62, %v4535_v54  ;;  %v5675_v13 = vperm.slane %v356_v2, 0  ;;  %v5101_v54 = vld [vmem:[#allocation5 + $0x64] sm:$0xf] }
  0x5e   :  { %v5651_v20 = vpack.c.bf16 %v142_v9, %v134_v8  ;;  %v176_v8 = vld [vmem:[#allocation2 + $0x260] sm:$0xff]  ;;  %v167_v9 = vld [vmem:[#allocation2 + $0x218] sm:$0xff] }
  0x5f   :  { %1361 = vmatpush.bf16.msra.mxu2 %v4504_v21  ;;  %v5653_v21 = vpack.c.bf16 %v144_v11, %v136_v10  ;;  %v175_v10 = vld [vmem:[#allocation2 + $0x258] sm:$0xff]  ;;  %v169_v11 = vld [vmem:[#allocation2 + $0x228] sm:$0xff] }
  0x60   :  { %1410 = vmatpush.bf16.msra.mxu3 %v4568_v23  ;;  %v5657_v23 = vpack.c.bf16 %v145_v19, %v137_v18  ;;  %v5681_v25 = vpack.c.bf16 %v175_v10, %v167_v9  ;;  %v4113_v9 = vld [vmem:[#allocation5 + $0x58] sm:$0xf0] }
  0x62   :  { %6510 = vst [vmem:[#allocation21_spill] sm:$0xff] %v5681_v25 }
  0x63   :  { %1362 = vmatpush.bf16.msra.mxu2 %v4496_v39  ;;  %v159_v39 = vld [vmem:[#allocation2 + $0x1d8] sm:$0xff] }
  0x64   :  { %1411 = vmatpush.bf16.msra.mxu3 %v4560_v41  ;;  %v161_v41 = vld [vmem:[#allocation2 + $0x1e8] sm:$0xff]  ;;  %v5667_v48 = vpack.c.bf16 %v159_v39, %v151_v38  ;;  %v4132_v38 = vor.u32 %v5103_v30, %v4129_v31  ;;  %v4527_v39 = vld [vmem:[#allocation5 + $0x390] sm:$0xf]  ;;  %v184_v30 = vld [vmem:[#allocation2 + $0x2a0] sm:$0xff] }
  0x65   :  { %v5669_v49 = vpack.c.bf16 %v161_v41, %v153_v40  ;;  %v4464_v40 = vor.u32 %v5188_v37, %v4463_v36  ;;  %v5204_v41 = vld [vmem:[#allocation5 + $0x394] sm:$0xf0]  ;;  %v192_v31 = vld [vmem:[#allocation2 + $0x2e0] sm:$0xff]  ;;  %v185_v37 = vld [vmem:[#allocation2 + $0x2a8] sm:$0xff] }
  0x66   :  { %6506 = vst [vmem:[#allocation17_spill] sm:$0xff] %v5667_v48  ;;  %1458 = vmatpush.bf16.msra.mxu0 %v4132_v38  ;;  %v4528_v53 = vor.u32 %v5204_v41, %v4527_v39  ;;  %v191_v36 = vld [vmem:[#allocation2 + $0x2d8] sm:$0xff]  ;;  %v193_v38 = vld [vmem:[#allocation2 + $0x2e8] sm:$0xff] }
  0x67   :  { %1363 = vmatpush.bf16.msra.mxu2 %v4488_v3  ;;  %6507 = vst [vmem:[#allocation18_spill] sm:$0xff] %v5669_v49  ;;  %v166_v3 = vld [vmem:[#allocation2 + $0x210] sm:$0xff]  ;;  %v4105_v41 = vld [vmem:[#allocation5 + $0x48] sm:$0xf0] }
  0x68   :  { %1412 = vmatpush.bf16.msra.mxu3 %v4552_v7  ;;  %v168_v7 = vld [vmem:[#allocation2 + $0x220] sm:$0xff]  ;;  %v5677_v18 = vpack.c.bf16 %v174_v5, %v166_v3 }
  0x69   :  { %v5679_v19 = vpack.c.bf16 %v176_v8, %v168_v7  ;;  %v5099_v8 = vld [vmem:[#allocation5 + $0x54] sm:$0xf] }
  0x6a   :  { %1089 = vmatmul.bf16.gmra.mxu0 %v5615_v14  ;;  %1109 = vmatmul.bf16.gmra.mxu2 %v5617_v15  ;;  %6508 = vst [vmem:[#allocation19_spill] sm:$0xff] %v5677_v18 }
  0x6b   :  { %1158 = vmatmul.bf16.gmra.mxu3 %v5619_v16  ;;  %1364 = vmatpush.bf16.msra.mxu2 %v4480_v27  ;;  %6509 = vst [vmem:[#allocation20_spill] sm:$0xff] %v5679_v19  ;;  %v5684_v27 = vpack.c.bf16 %v177_v12, %v169_v11  ;;  %v4116_v11 = vor.u32 %v5099_v8, %v4113_v9  ;;  %v182_v12 = vld [vmem:[#allocation2 + $0x290] sm:$0xff] }
  0x6c   :  { %1138 = vmatmul.bf16.gmra.mxu1 %v5621_v17  ;;  %1413 = vmatpush.bf16.msra.mxu3 %v4544_v29 }
  0x6d   :  { %6511 = vst [vmem:[#allocation22_spill] sm:$0xff] %v5684_v27 }
  0x6f   :  { %1365 = vmatpush.bf16.msra.mxu2 %v4472_v57  ;;  %v4121_v57 = vld [vmem:[#allocation5 + $0x68] sm:$0xf0] }
  0x70   :  { %1414 = vmatpush.bf16.msra.mxu3 %v4536_v63  ;;  %v4124_v2 = vor.u32 %v5101_v54, %v4121_v57 }
  0x72   :  { %1459 = vmatpush.bf16.msra.mxu0 %v4124_v2  ;;  %v4193_v2 = vld [vmem:[#allocation5 + $0xf8] sm:$0xf0] }
  0x73   :  { %1366 = vmatpush.bf16.msra.mxu2 %v4464_v40  ;;  %v5097_v40 = vld [vmem:[#allocation5 + $0x44] sm:$0xf] }
  0x74   :  { %1415 = vmatpush.bf16.msra.mxu3 %v4528_v53 }
  0x76   :  { %1460 = vmatpush.bf16.msra.mxu0 %v4116_v11  ;;  %v5708_v11 = vpack.c.bf16 %v193_v38, %v185_v37 }
  0x78   :  { %6515 = vst [vmem:[#allocation26_spill] sm:$0xff] %v5708_v11 }
  0x7a   :  { %1172 = vmatmul.bf16.vlgmr.msrb.gmra.mxu2 %v5627_v32  ;;  %1270 = vmatmul.bf16.vlgmr.msrb.gmra.mxu0 %v5629_v33 }
  0x7b   :  { %1221 = vmatmul.bf16.vlgmr.msrb.gmra.mxu3 %v5631_v34 }
  0x7c   :  { %1319 = vmatmul.bf16.vlgmr.msrb.gmra.mxu1 %v5633_v35 }
  0x8a   :  { %1177 = vmatmul.bf16.gmra.mxu2 %v5639_v58  ;;  %1275 = vmatmul.bf16.gmra.mxu0 %v5641_v59 }
  0x8b   :  { %1226 = vmatmul.bf16.gmra.mxu3 %v5643_v60 }
  0x8c   :  { %1324 = vmatmul.bf16.gmra.mxu1 %v5645_v61 }
  0x9a   :  { %1182 = vmatmul.bf16.gmra.mxu2 %v5651_v20  ;;  %1280 = vmatmul.bf16.gmra.mxu0 %v5653_v21 }
  0x9b   :  { %1231 = vmatmul.bf16.gmra.mxu3 %v5655_v22 }
  0x9c   :  { %1329 = vmatmul.bf16.gmra.mxu1 %v5657_v23 }
  0xaa   :  { %1187 = vmatmul.bf16.gmra.mxu2 %v5663_v45  ;;  %1285 = vmatmul.bf16.gmra.mxu0 %v5665_v47 }
  0xab   :  { %1236 = vmatmul.bf16.gmra.mxu3 %v5667_v48 }
  0xac   :  { %1334 = vmatmul.bf16.gmra.mxu1 %v5669_v49 }
  0xb7   :  { %v1075_v24 = vpop.f32.mrf.mxu0 }
  0xb8   :  { %v1076_v26 = vadd.f32 %v1075_v24, %v5675_v13  ;;  %v190_v24 = vld [vmem:[#allocation2 + $0x2d0] sm:$0xff] }
  0xb9   :  { %v1124_v28 = vpop.f32.mrf.mxu1  ;;  %v5699_v57 = vpack.c.bf16 %v190_v24, %v182_v12  ;;  %v5095_v24 = vld [vmem:[#allocation5 + $0x34] sm:$0xf] }
  0xba   :  { %1192 = vmatmul.bf16.gmra.mxu2 %v5677_v18  ;;  %1290 = vmatmul.bf16.gmra.mxu0 %v5679_v19  ;;  %v5688_v29 = vadd.f32 %v1124_v28, %v1076_v26  ;;  %v183_v28 = vld [vmem:[#allocation2 + $0x298] sm:$0xff] }
  0xbb   :  { %1241 = vmatmul.bf16.gmra.mxu3 %v5681_v25  ;;  %6512 = vst [vmem:[#allocation23_spill] sm:$0xff] %v5699_v57  ;;  %v5111_v25 = vld [vmem:[#allocation5 + $0xb4] sm:$0xf] }
  0xbc   :  { %1339 = vmatmul.bf16.gmra.mxu1 %v5684_v27 }
  0xbd   :  { %v1095_v50 = vpop.f32.mrf.mxu2 }
  0xbe   :  { %v1096_v62 = vadd.f32 %v1095_v50, %v5675_v13  ;;  %v1144_v63 = vpop.f32.mrf.mxu3  ;;  %v5119_v50 = vld [vmem:[#allocation5 + $0xf4] sm:$0xf] }
  0xbf   :  { %v1077_v3 = vpop.f32.mrf.mxu0  ;;  %v4196_v8 = vor.u32 %v5119_v50, %v4193_v2  ;;  %v5202_v50 = vld [vmem:[#allocation5 + $0x384] sm:$0xf0]  ;;  %v5115_v2 = vld [vmem:[#allocation5 + $0xd4] sm:$0xf] }
  0xc0   :  { %v5693_v5 = vadd.f32 %v1144_v63, %v1096_v62  ;;  %v1078_v7 = vadd.f32 %v1077_v3, %v5675_v13  ;;  %v5701_v62 = vpack.c.bf16 %v192_v31, %v184_v30  ;;  %v4108_v63 = vor.u32 %v5097_v40, %v4105_v41  ;;  %v4097_v30 = vld [vmem:[#allocation5 + $0x38] sm:$0xf0]  ;;  %v4455_v31 = vld [vmem:[#allocation5 + $0x300] sm:$0xf]  ;;  %v4185_v40 = vld [vmem:[#allocation5 + $0xe8] sm:$0xf0] }
  0xc1   :  { %v1126_v10 = vpop.f32.mrf.mxu1  ;;  %1507 = vmatpush.bf16.msra.mxu1 %v4196_v8  ;;  %v4519_v41 = vld [vmem:[#allocation5 + $0x380] sm:$0xf] }
  0xc2   :  { %v5696_v26 = vadd.f32 %v1126_v10, %v1078_v7  ;;  %6513 = vst [vmem:[#allocation24_spill] sm:$0xff] %v5701_v62  ;;  %v5703_v7 = vpack.c.bf16 %v191_v36, %v183_v28  ;;  %1461 = vmatpush.bf16.msra.mxu0 %v4108_v63  ;;  %v5117_v28 = vld [vmem:[#allocation5 + $0xe4] sm:$0xf]  ;;  %v5186_v36 = vld [vmem:[#allocation5 + $0x304] sm:$0xf0] }
  0xc3   :  { %v4456_v37 = vor.u32 %v5186_v36, %v4455_v31  ;;  %v4188_v38 = vor.u32 %v5117_v28, %v4185_v40  ;;  %v4089_v63 = vld [vmem:[#allocation5 + $0x28] sm:$0xf0]  ;;  %v5091_v36 = vld [vmem:[#allocation5 + $0x14] sm:$0xf]  ;;  %v5113_v40 = vld [vmem:[#allocation5 + $0xc4] sm:$0xf] }
  0xc4   :  { %6514 = vst [vmem:[#allocation25_spill] sm:$0xff] %v5703_v7 }
  0xc5   :  { %v1097_v39 = vpop.f32.mrf.mxu2  ;;  %1367 = vmatpush.bf16.msra.mxu2 %v4456_v37  ;;  %1508 = vmatpush.bf16.msra.mxu1 %v4188_v38 }
  0xc6   :  { %v1098_v53 = vadd.f32 %v1097_v39, %v5675_v13  ;;  %v1146_v54 = vpop.f32.mrf.mxu3  ;;  %v4100_v39 = vor.u32 %v5095_v24, %v4097_v30  ;;  %v4177_v24 = vld [vmem:[#allocation5 + $0xd8] sm:$0xf0] }
  0xc7   :  { %v1080_v3 = vpop.f32.mrf.mxu0 }
  0xc8   :  { %v5705_v9 = vadd.f32 %v1146_v54, %v1098_v53  ;;  %v1081_v10 = vadd.f32 %v1080_v3, %v5675_v13  ;;  %1462 = vmatpush.bf16.msra.mxu0 %v4100_v39  ;;  %v4520_v54 = vor.u32 %v5202_v50, %v4519_v41  ;;  %v4081_v39 = vld [vmem:[#allocation5 + $0x18] sm:$0xf0] }
  0xc9   :  { %v1129_v27 = vpop.f32.mrf.mxu1  ;;  %v4084_v50 = vor.u32 %v5091_v36, %v4081_v39 }
  0xca   :  { %1197 = vmatmul.bf16.gmra.mxu2 %v5699_v57  ;;  %1295 = vmatmul.bf16.gmra.mxu0 %v5701_v62  ;;  %v5712_v12 = vadd.f32 %v1129_v27, %v1081_v10  ;;  %v5093_v27 = vld [vmem:[#allocation5 + $0x24] sm:$0xf]  ;;  %v206_v62 = vld [vmem:[#allocation2 + $0x350] sm:$0xff]  ;;  %v4073_v57 = vld [vmem:[#allocation5 + $0x8] sm:$0xf0] }
  0xcb   :  { %1246 = vmatmul.bf16.gmra.mxu3 %v5703_v7  ;;  %v4092_v10 = vor.u32 %v5093_v27, %v4089_v63  ;;  %v4169_v7 = vld [vmem:[#allocation5 + $0xc8] sm:$0xf0]  ;;  %v199_v27 = vld [vmem:[#allocation2 + $0x318] sm:$0xff]  ;;  %v208_v63 = vld [vmem:[#allocation2 + $0x360] sm:$0xff] }
  0xcc   :  { %1344 = vmatmul.bf16.gmra.mxu1 %v5708_v11  ;;  %1416 = vmatpush.bf16.msra.mxu3 %v4520_v54  ;;  %v4180_v11 = vor.u32 %v5115_v2, %v4177_v24  ;;  %v4172_v38 = vor.u32 %v5113_v40, %v4169_v7  ;;  %v200_v54 = vld [vmem:[#allocation2 + $0x320] sm:$0xff]  ;;  %v207_v2 = vld [vmem:[#allocation2 + $0x358] sm:$0xff] }
  0xcd   :  { %v1100_v53 = vpop.f32.mrf.mxu2  ;;  %1463 = vmatpush.bf16.msra.mxu0 %v4092_v10 }
  0xce   :  { %v1101_v3 = vadd.f32 %v1100_v53, %v5675_v13  ;;  %v1149_v8 = vpop.f32.mrf.mxu3  ;;  %v198_v53 = vld [vmem:[#allocation2 + $0x310] sm:$0xff]  ;;  %1509 = vmatpush.bf16.msra.mxu1 %v4180_v11  ;;  %v4161_v11 = vld [vmem:[#allocation5 + $0xb8] sm:$0xf0] }
  0xcf   :  { %v1082_v30 = vpop.f32.mrf.mxu0  ;;  %v5723_v39 = vpack.c.bf16 %v206_v62, %v198_v53  ;;  %v4164_v19 = vor.u32 %v5111_v25, %v4161_v11  ;;  %v4153_v62 = vld [vmem:[#allocation5 + $0xa8] sm:$0xf0]  ;;  %v5135_v25 = vld [vmem:[#allocation5 + $0x174] sm:$0xf]  ;;  %v4257_v53 = vld [vmem:[#allocation5 + $0x178] sm:$0xf0] }
  0xd0   :  { %v5717_v31 = vadd.f32 %v1149_v8, %v1101_v3  ;;  %v1083_v28 = vadd.f32 %v1082_v30, %v5675_v13  ;;  %v201_v3 = vld [vmem:[#allocation2 + $0x328] sm:$0xff]  ;;  %v5089_v30 = vld [vmem:[#allocation5 + $0x4] sm:$0xf] }
  0xd1   :  { %v1131_v41 = vpop.f32.mrf.mxu1  ;;  %v209_v8 = vld [vmem:[#allocation2 + $0x368] sm:$0xff]  ;;  %1464 = vmatpush.bf16.msra.mxu0 %v4084_v50  ;;  %6516 = vst [vmem:[#allocation27_spill] sm:$0xff] %v5723_v39  ;;  %v4076_v7 = vor.u32 %v5089_v30, %v4073_v57  ;;  %v4145_v30 = vld [vmem:[#allocation5 + $0x98] sm:$0xf0] }
  0xd2   :  { %v5720_v37 = vadd.f32 %v1131_v41, %v1083_v28  ;;  %v5725_v28 = vpack.c.bf16 %v208_v63, %v200_v54  ;;  %1510 = vmatpush.bf16.msra.mxu1 %v4172_v38  ;;  %v5727_v41 = vpack.c.bf16 %v207_v2, %v199_v27  ;;  %v5732_v49 = vpack.c.bf16 %v209_v8, %v201_v3  ;;  %v5151_v27 = vld [vmem:[#allocation5 + $0x1f4] sm:$0xf]  ;;  %v4321_v63 = vld [vmem:[#allocation5 + $0x1f8] sm:$0xf0] }
  0xd3   :  { %v4260_v54 = vor.u32 %v5135_v25, %v4257_v53  ;;  %v4324_v3 = vor.u32 %v5151_v27, %v4321_v63  ;;  %v5107_v8 = vld [vmem:[#allocation5 + $0x94] sm:$0xf]  ;;  %v216_v27 = vld [vmem:[#allocation2 + $0x3a0] sm:$0xff] }
  0xd4   :  { %6517 = vst [vmem:[#allocation28_spill] sm:$0xff] %v5725_v28  ;;  %v222_v53 = vld [vmem:[#allocation2 + $0x3d0] sm:$0xff]  ;;  %v224_v63 = vld [vmem:[#allocation2 + $0x3e0] sm:$0xff] }
  0xd5   :  { %v1102_v24 = vpop.f32.mrf.mxu2  ;;  %6518 = vst [vmem:[#allocation29_spill] sm:$0xff] %v5727_v41  ;;  %1465 = vmatpush.bf16.msra.mxu0 %v4076_v7  ;;  %1556 = vmatpush.bf16.msrb.mxu2 %v4260_v54  ;;  %v215_v54 = vld [vmem:[#allocation2 + $0x398] sm:$0xff] }
  0xd6   :  { %v1103_v10 = vadd.f32 %v1102_v24, %v5675_v13  ;;  %v1151_v36 = vpop.f32.mrf.mxu3  ;;  %6519 = vst [vmem:[#allocation30_spill] sm:$0xff] %v5732_v49  ;;  %v5109_v24 = vld [vmem:[#allocation5 + $0xa4] sm:$0xf]  ;;  %1511 = vmatpush.bf16.msra.mxu1 %v4164_v19  ;;  %1605 = vmatpush.bf16.msrb.mxu3 %v4324_v3  ;;  %v4148_v19 = vor.u32 %v5107_v8, %v4145_v30  ;;  %v217_v3 = vld [vmem:[#allocation2 + $0x3a8] sm:$0xff] }
  0xd7   :  { %v1085_v40 = vpop.f32.mrf.mxu0  ;;  %v4156_v38 = vor.u32 %v5109_v24, %v4153_v62  ;;  %v4137_v24 = vld [vmem:[#allocation5 + $0x88] sm:$0xf0]  ;;  %v214_v62 = vld [vmem:[#allocation2 + $0x390] sm:$0xff] }
  0xd8   :  { %v5729_v18 = vadd.f32 %v1151_v36, %v1103_v10  ;;  %v1086_v50 = vadd.f32 %v1085_v40, %v5675_v13  ;;  %v225_v8 = vld [vmem:[#allocation2 + $0x3e8] sm:$0xff] }
  0xd9   :  { %v1134_v48 = vpop.f32.mrf.mxu1 }
  0xda   :  { %1202 = vmatmul.bf16.gmra.mxu2 %v5723_v39  ;;  %1300 = vmatmul.bf16.gmra.mxu0 %v5725_v28  ;;  %v5736_v57 = vadd.f32 %v1134_v48, %v1086_v50  ;;  %v5105_v50 = vld [vmem:[#allocation5 + $0x84] sm:$0xf]  ;;  %v123_v39 = vld [vmem:[#allocation2 + $0xb8] sm:$0xff] }
  0xdb   :  { %1251 = vmatmul.bf16.gmra.mxu3 %v5727_v41  ;;  %1512 = vmatpush.bf16.msra.mxu1 %v4156_v38 }
  0xdc   :  { %1349 = vmatmul.bf16.gmra.mxu1 %v5732_v49  ;;  %v223_v49 = vld [vmem:[#allocation2 + $0x3d8] sm:$0xff] }
  0xdd   :  { %v1105_v2 = vpop.f32.mrf.mxu2 }
  0xde   :  { %v1106_v10 = vadd.f32 %v1105_v2, %v5675_v13  ;;  %v1154_v36 = vpop.f32.mrf.mxu3  ;;  %v4140_v2 = vor.u32 %v5105_v50, %v4137_v24  ;;  %v5756_v50 = vpack.c.bf16 %v225_v8, %v217_v3 }
  0xdf   :  { %v1087_v48 = vpop.f32.mrf.mxu0  ;;  %1513 = vmatpush.bf16.msra.mxu1 %v4148_v19 }
  0xe0   :  { %v5741_v7 = vadd.f32 %v1154_v36, %v1106_v10  ;;  %v1088_v11 = vadd.f32 %v1087_v48, %v5675_v13  ;;  %v5747_v36 = vpack.c.bf16 %v222_v53, %v214_v62  ;;  %v5749_v48 = vpack.c.bf16 %v224_v63, %v216_v27  ;;  %6523 = vst [vmem:[#allocation34_spill] sm:$0xff] %v5756_v50  ;;  %v5133_v62 = vld [vmem:[#allocation5 + $0x164] sm:$0xf]  ;;  %v4249_v53 = vld [vmem:[#allocation5 + $0x168] sm:$0xf0] }
  0xe1   :  { %v1136_v40 = vpop.f32.mrf.mxu1  ;;  %v5149_v27 = vld [vmem:[#allocation5 + $0x1e4] sm:$0xf]  ;;  %v4313_v63 = vld [vmem:[#allocation5 + $0x1e8] sm:$0xf0] }
  0xe2   :  { %v5744_v25 = vadd.f32 %v1136_v40, %v1088_v11  ;;  %6520 = vst [vmem:[#allocation31_spill] sm:$0xff] %v5747_v36  ;;  %v5751_v11 = vpack.c.bf16 %v223_v49, %v215_v54  ;;  %v4252_v49 = vor.u32 %v5133_v62, %v4249_v53  ;;  %v107_v62 = vld [vmem:[#allocation2 + $0x38] sm:$0xff] }
  0xe3   :  { %6521 = vst [vmem:[#allocation32_spill] sm:$0xff] %v5749_v48  ;;  %1514 = vmatpush.bf16.msra.mxu1 %v4140_v2  ;;  %v115_v53 = vld [vmem:[#allocation2 + $0x78] sm:$0xff] }
  0xe4   :  { %6522 = vst [vmem:[#allocation33_spill] sm:$0xff] %v5751_v11  ;;  %1557 = vmatpush.bf16.msrb.mxu2 %v4252_v49 }
  0xe5   :  { %v1107_v38 = vpop.f32.mrf.mxu2 }
  0xe6   :  { %v1108_v30 = vadd.f32 %v1107_v38, %v5675_v13  ;;  %v1156_v10 = vpop.f32.mrf.mxu3 }
  0xe7   :  { %v1090_v41 = vpop.f32.mrf.mxu0 }
  0xe8   :  { %v5753_v40 = vadd.f32 %v1156_v10, %v1108_v30  ;;  %v1091_v19 = vadd.f32 %v1090_v41, %v5675_v13  ;;  %v4316_v41 = vor.u32 %v5149_v27, %v4313_v63 }
  0xe9   :  { %v1139_v24 = vpop.f32.mrf.mxu1 }
  0xea   :  { %1207 = vmatmul.bf16.gmra.mxu2 %v5747_v36  ;;  %1305 = vmatmul.bf16.gmra.mxu0 %v5749_v48  ;;  %v5760_v38 = vadd.f32 %v1139_v24, %v1091_v19  ;;  %v5773_v36 = vpack.c.bf16 %v115_v53, %v107_v62 }
  0xeb   :  { %1256 = vmatmul.bf16.gmra.mxu3 %v5751_v11  ;;  %v106_v11 = vld [vmem:[#allocation2 + $0x30] sm:$0xff] }
  0xec   :  { %1354 = vmatmul.bf16.gmra.mxu1 %v5756_v50  ;;  %1606 = vmatpush.bf16.msrb.mxu3 %v4316_v41  ;;  %v114_v50 = vld [vmem:[#allocation2 + $0x70] sm:$0xff]  ;;  %6525 = vst [vmem:[#allocation36_spill] sm:$0xff] %v5773_v36 }
  0xed   :  { %v1110_v2 = vpop.f32.mrf.mxu2 }
  0xee   :  { %v1111_v54 = vadd.f32 %v1110_v2, %v5675_v13  ;;  %v1159_v3 = vpop.f32.mrf.mxu3  ;;  %v5771_v2 = vpack.c.bf16 %v114_v50, %v106_v11  ;;  %v4305_v11 = vld [vmem:[#allocation5 + $0x1d8] sm:$0xf0] }
  0xef   :  { %v1092_v8 = vpop.f32.mrf.mxu0 }
  0xf0   :  { %v5765_v30 = vadd.f32 %v1159_v3, %v1111_v54  ;;  %v1093_v10 = vadd.f32 %v1092_v8, %v5675_v13  ;;  %6524 = vst [vmem:[#allocation35_spill] sm:$0xff] %v5771_v2  ;;  %v5131_v3 = vld [vmem:[#allocation5 + $0x154] sm:$0xf]  ;;  %v4241_v8 = vld [vmem:[#allocation5 + $0x158] sm:$0xf0] }
  0xf1   :  { %v1141_v19 = vpop.f32.mrf.mxu1 }
  0xf2   :  { %v5768_v24 = vadd.f32 %v1141_v19, %v1093_v10 }
  0xf5   :  { %v1112_v48 = vpop.f32.mrf.mxu2 }
  0xf6   :  { %v1113_v27 = vadd.f32 %v1112_v48, %v5675_v13  ;;  %v1161_v63 = vpop.f32.mrf.mxu3  ;;  %v4244_v13 = vor.u32 %v5131_v3, %v4241_v8  ;;  %v5147_v48 = vld [vmem:[#allocation5 + $0x1d4] sm:$0xf] }
  0xf7   :  { %v1271_v49 = vpop.f32.mrf.mxu0  ;;  %v4308_v10 = vor.u32 %v5147_v48, %v4305_v11 }
  0xf8   :  { %v5775_v41 = vadd.f32 %v1161_v63, %v1113_v27  ;;  %1558 = vmatpush.bf16.msrb.mxu2 %v4244_v13 }
  0xf9   :  { %v1320_v54 = vpop.f32.mrf.mxu1  ;;  %1607 = vmatpush.bf16.msrb.mxu3 %v4308_v10  ;;  %v4233_v10 = vld [vmem:[#allocation5 + $0x148] sm:$0xf0] }
  0xfa   :  { %1368 = vmatmul.bf16.vlgmr.msra.gmra.mxu2 %v5771_v2  ;;  %1466 = vmatmul.bf16.vlgmr.msra.gmra.mxu0 %v5579_v0  ;;  %v122_v2 = vld [vmem:[#allocation2 + $0xb0] sm:$0xff] }
  0xfb   :  { %1417 = vmatmul.bf16.vlgmr.msra.gmra.mxu3 %v5773_v36  ;;  %v130_v36 = vld [vmem:[#allocation2 + $0xf0] sm:$0xff] }
  0xfc   :  { %1515 = vmatmul.bf16.vlgmr.msra.gmra.mxu1 %v5585_v6  ;;  %v131_v6 = vld [vmem:[#allocation2 + $0xf8] sm:$0xff]  ;;  %v5785_v48 = vpack.c.bf16 %v130_v36, %v122_v2  ;;  %v5145_v36 = vld [vmem:[#allocation5 + $0x1c4] sm:$0xf]  ;;  %v4297_v2 = vld [vmem:[#allocation5 + $0x1c8] sm:$0xf0] }
  0xfd   :  { %v1173_v50 = vpop.f32.mrf.mxu2  ;;  %v5787_v11 = vpack.c.bf16 %v131_v6, %v123_v39 }
  0xfe   :  { %v1174_v19 = vadd.f32 %v1173_v50, %v5688_v29  ;;  %v1222_v62 = vpop.f32.mrf.mxu3 }
  0xff   :  { %v1273_v53 = vpop.f32.mrf.mxu0 }
 0x100   :  { %v1223_v27 = vadd.f32 %v1222_v62, %v1174_v19  ;;  %v4300_v62 = vor.u32 %v5145_v36, %v4297_v2 }
 0x101   :  { %v1322_v63 = vpop.f32.mrf.mxu1 }
 0x102   :  { %v1272_v0 = vadd.f32 %v1271_v49, %v1223_v27  ;;  %1608 = vmatpush.bf16.msrb.mxu3 %v4300_v62  ;;  %v4225_v62 = vld [vmem:[#allocation5 + $0x138] sm:$0xf0] }
 0x104   :  { %v5782_v28 = vadd.f32 %v1320_v54, %v1272_v0  ;;  %v5129_v54 = vld [vmem:[#allocation5 + $0x144] sm:$0xf] }
 0x105   :  { %v1175_v3 = vpop.f32.mrf.mxu2 }
 0x106   :  { %v1176_v8 = vadd.f32 %v1175_v3, %v5696_v26  ;;  %v1224_v47 = vpop.f32.mrf.mxu3  ;;  %v4236_v26 = vor.u32 %v5129_v54, %v4233_v10  ;;  %v138_v3 = vld [vmem:[#allocation2 + $0x130] sm:$0xff] }
 0x107   :  { %v1276_v29 = vpop.f32.mrf.mxu0 }
 0x108   :  { %v1225_v13 = vadd.f32 %v1224_v47, %v1176_v8  ;;  %1559 = vmatpush.bf16.msrb.mxu2 %v4236_v26  ;;  %v146_v8 = vld [vmem:[#allocation2 + $0x170] sm:$0xff] }
 0x109   :  { %v1325_v50 = vpop.f32.mrf.mxu1  ;;  %v5799_v36 = vpack.c.bf16 %v146_v8, %v138_v3 }
 0x10a   :  { %1373 = vmatmul.bf16.gmra.mxu2 %v5785_v48  ;;  %1471 = vmatmul.bf16.gmra.mxu0 %v5591_v51  ;;  %v1274_v49 = vadd.f32 %v1273_v53, %v1225_v13  ;;  %v139_v13 = vld [vmem:[#allocation2 + $0x138] sm:$0xff] }
 0x10b   :  { %1422 = vmatmul.bf16.gmra.mxu3 %v5787_v11 }
 0x10c   :  { %v5792_v19 = vadd.f32 %v1322_v63, %v1274_v49  ;;  %1520 = vmatmul.bf16.gmra.mxu1 %v5597_v56  ;;  %v147_v56 = vld [vmem:[#allocation2 + $0x178] sm:$0xff] }
 0x10d   :  { %v1178_v39 = vpop.f32.mrf.mxu2  ;;  %v5801_v2 = vpack.c.bf16 %v147_v56, %v139_v13 }
 0x10e   :  { %v1179_v47 = vadd.f32 %v1178_v39, %v5712_v12  ;;  %v1227_v27 = vpop.f32.mrf.mxu3 }
 0x10f   :  { %v1278_v0 = vpop.f32.mrf.mxu0 }
 0x110   :  { %v1228_v51 = vadd.f32 %v1227_v27, %v1179_v47  ;;  %v5143_v27 = vld [vmem:[#allocation5 + $0x1b4] sm:$0xf] }
 0x111   :  { %v1327_v53 = vpop.f32.mrf.mxu1 }
 0x112   :  { %v1277_v6 = vadd.f32 %v1276_v29, %v1228_v51  ;;  %v4289_v51 = vld [vmem:[#allocation5 + $0x1b8] sm:$0xf0] }
 0x113   :  { %v4292_v3 = vor.u32 %v5143_v27, %v4289_v51 }
 0x114   :  { %v5796_v63 = vadd.f32 %v1325_v50, %v1277_v6  ;;  %v5127_v50 = vld [vmem:[#allocation5 + $0x134] sm:$0xf] }
 0x115   :  { %v1180_v49 = vpop.f32.mrf.mxu2  ;;  %1609 = vmatpush.bf16.msrb.mxu3 %v4292_v3  ;;  %v4217_v3 = vld [vmem:[#allocation5 + $0x128] sm:$0xf0] }
 0x116   :  { %v1181_v54 = vadd.f32 %v1180_v49, %v5720_v37  ;;  %v1229_v10 = vpop.f32.mrf.mxu3  ;;  %v4228_v37 = vor.u32 %v5127_v50, %v4225_v62 }
 0x117   :  { %v1281_v12 = vpop.f32.mrf.mxu0 }
 0x118   :  { %v1230_v26 = vadd.f32 %v1229_v10, %v1181_v54  ;;  %1560 = vmatpush.bf16.msrb.mxu2 %v4228_v37  ;;  %v154_v54 = vld [vmem:[#allocation2 + $0x1b0] sm:$0xff] }
 0x119   :  { %v1330_v39 = vpop.f32.mrf.mxu1  ;;  %v162_v10 = vld [vmem:[#allocation2 + $0x1f0] sm:$0xff] }
 0x11a   :  { %1378 = vmatmul.bf16.gmra.mxu2 %v5799_v36  ;;  %1476 = vmatmul.bf16.gmra.mxu0 %v5603_v42  ;;  %v1279_v29 = vadd.f32 %v1278_v0, %v1230_v26  ;;  %v155_v26 = vld [vmem:[#allocation2 + $0x1b8] sm:$0xff]  ;;  %v5813_v27 = vpack.c.bf16 %v162_v10, %v154_v54 }
 0x11b   :  { %1427 = vmatmul.bf16.gmra.mxu3 %v5801_v2 }
 0x11c   :  { %v5806_v47 = vadd.f32 %v1327_v53, %v1279_v29  ;;  %1525 = vmatmul.bf16.gmra.mxu1 %v5609_v46  ;;  %v163_v46 = vld [vmem:[#allocation2 + $0x1f8] sm:$0xff] }
 0x11d   :  { %v1183_v6 = vpop.f32.mrf.mxu2  ;;  %v5815_v51 = vpack.c.bf16 %v163_v46, %v155_v26 }
 0x11e   :  { %v1184_v8 = vadd.f32 %v1183_v6, %v5736_v57  ;;  %v1232_v13 = vpop.f32.mrf.mxu3 }
 0x11f   :  { %v1283_v56 = vpop.f32.mrf.mxu0 }
 0x120   :  { %v1233_v42 = vadd.f32 %v1232_v13, %v1184_v8  ;;  %v5141_v13 = vld [vmem:[#allocation5 + $0x1a4] sm:$0xf] }
 0x121   :  { %v1332_v0 = vpop.f32.mrf.mxu1 }
 0x122   :  { %v1282_v49 = vadd.f32 %v1281_v12, %v1233_v42  ;;  %v4281_v42 = vld [vmem:[#allocation5 + $0x1a8] sm:$0xf0] }
 0x123   :  { %v4284_v54 = vor.u32 %v5141_v13, %v4281_v42 }
 0x124   :  { %v5810_v53 = vadd.f32 %v1330_v39, %v1282_v49  ;;  %v5125_v39 = vld [vmem:[#allocation5 + $0x124] sm:$0xf] }
 0x125   :  { %v1185_v29 = vpop.f32.mrf.mxu2  ;;  %1610 = vmatpush.bf16.msrb.mxu3 %v4284_v54  ;;  %v5167_v54 = vld [vmem:[#allocation5 + $0x274] sm:$0xf] }
 0x126   :  { %v1186_v50 = vadd.f32 %v1185_v29, %v5744_v25  ;;  %v1234_v62 = vpop.f32.mrf.mxu3  ;;  %v4220_v25 = vor.u32 %v5125_v39, %v4217_v3 }
 0x127   :  { %v1286_v57 = vpop.f32.mrf.mxu0 }
 0x128   :  { %v1235_v37 = vadd.f32 %v1234_v62, %v1186_v50  ;;  %1561 = vmatpush.bf16.msrb.mxu2 %v4220_v25  ;;  %v170_v50 = vld [vmem:[#allocation2 + $0x230] sm:$0xff] }
 0x129   :  { %v1335_v6 = vpop.f32.mrf.mxu1  ;;  %v178_v62 = vld [vmem:[#allocation2 + $0x270] sm:$0xff] }
 0x12a   :  { %1383 = vmatmul.bf16.gmra.mxu2 %v5813_v27  ;;  %1481 = vmatmul.bf16.gmra.mxu0 %v5615_v14  ;;  %v1284_v12 = vadd.f32 %v1283_v56, %v1235_v37  ;;  %v171_v37 = vld [vmem:[#allocation2 + $0x238] sm:$0xff]  ;;  %v5827_v13 = vpack.c.bf16 %v178_v62, %v170_v50  ;;  %v5139_v50 = vld [vmem:[#allocation5 + $0x194] sm:$0xf] }
 0x12b   :  { %1432 = vmatmul.bf16.gmra.mxu3 %v5815_v51  ;;  %v4273_v62 = vld [vmem:[#allocation5 + $0x198] sm:$0xf0] }
 0x12c   :  { %v5820_v8 = vadd.f32 %v1332_v0, %v1284_v12  ;;  %1530 = vmatmul.bf16.gmra.mxu1 %v5621_v17  ;;  %v179_v17 = vld [vmem:[#allocation2 + $0x278] sm:$0xff] }
 0x12d   :  { %v1188_v49 = vpop.f32.mrf.mxu2  ;;  %v5829_v42 = vpack.c.bf16 %v179_v17, %v171_v37  ;;  %v4276_v17 = vor.u32 %v5139_v50, %v4273_v62  ;;  %v187_v50 = vld [vmem:[#allocation2 + $0x2b8] sm:$0xff] }
 0x12e   :  { %v1189_v10 = vadd.f32 %v1188_v49, %v5760_v38  ;;  %v1237_v26 = vpop.f32.mrf.mxu3  ;;  %v195_v62 = vld [vmem:[#allocation2 + $0x2f8] sm:$0xff] }
 0x12f   :  { %v1288_v46 = vpop.f32.mrf.mxu0  ;;  %6526 = vst [vmem:[#allocation37_spill] sm:$0xff] %v5829_v42  ;;  %1611 = vmatpush.bf16.msrb.mxu3 %v4276_v17 }
 0x130   :  { %v1238_v14 = vadd.f32 %v1237_v26, %v1189_v10  ;;  %v4385_v10 = vld [vmem:[#allocation5 + $0x278] sm:$0xf0]  ;;  %v5123_v26 = vld [vmem:[#allocation5 + $0x114] sm:$0xf] }
 0x131   :  { %v1337_v56 = vpop.f32.mrf.mxu1 }
 0x132   :  { %v1287_v29 = vadd.f32 %v1286_v57, %v1238_v14 }
 0x134   :  { %v5824_v0 = vadd.f32 %v1335_v6, %v1287_v29  ;;  %v4388_v6 = vor.u32 %v5167_v54, %v4385_v10  ;;  %v5163_v10 = vld [vmem:[#allocation5 + $0x254] sm:$0xf] }
 0x135   :  { %v1190_v12 = vpop.f32.mrf.mxu2 }
 0x136   :  { %v1191_v39 = vadd.f32 %v1190_v12, %v5768_v24  ;;  %v1239_v3 = vpop.f32.mrf.mxu3  ;;  %v4209_v24 = vld [vmem:[#allocation5 + $0x118] sm:$0xf0]  ;;  %1654 = vmatpush.bf16.msrb.mxu0 %v4388_v6  ;;  %v5165_v12 = vld [vmem:[#allocation5 + $0x264] sm:$0xf] }
 0x137   :  { %v1291_v38 = vpop.f32.mrf.mxu0  ;;  %v4212_v29 = vor.u32 %v5123_v26, %v4209_v24  ;;  %v186_v26 = vld [vmem:[#allocation2 + $0x2b0] sm:$0xff] }
 0x138   :  { %v1240_v25 = vadd.f32 %v1239_v3, %v1191_v39  ;;  %v4377_v39 = vld [vmem:[#allocation5 + $0x268] sm:$0xf0]  ;;  %v194_v24 = vld [vmem:[#allocation2 + $0x2f0] sm:$0xff] }
 0x139   :  { %v1340_v49 = vpop.f32.mrf.mxu1  ;;  %1562 = vmatpush.bf16.msrb.mxu2 %v4212_v29  ;;  %v4380_v3 = vor.u32 %v5165_v12, %v4377_v39  ;;  %v4361_v29 = vld [vmem:[#allocation5 + $0x248] sm:$0xf0]  ;;  %v5183_v12 = vld [vmem:[#allocation5 + $0x2f4] sm:$0xf] }
 0x13a   :  { %1388 = vmatmul.bf16.gmra.mxu2 %v5827_v13  ;;  %1486 = vmatmul.bf16.gmra.mxu0 %v5581_v1  ;;  %v1289_v57 = vadd.f32 %v1288_v46, %v1240_v25 }
 0x13b   :  { %1437 = vmatmul.bf16.gmra.mxu3 %v5829_v42  ;;  %1655 = vmatpush.bf16.msrb.mxu0 %v4380_v3  ;;  %v4449_v3 = vld [vmem:[#allocation5 + $0x2f8] sm:$0xf0] }
 0x13c   :  { %v5834_v14 = vadd.f32 %v1337_v56, %v1289_v57  ;;  %1535 = vmatmul.bf16.gmra.mxu1 %v5583_v4  ;;  %v4369_v4 = vld [vmem:[#allocation5 + $0x258] sm:$0xf0] }
 0x13d   :  { %v1193_v37 = vpop.f32.mrf.mxu2  ;;  %v4372_v6 = vor.u32 %v5163_v10, %v4369_v4  ;;  %v4452_v10 = vor.u32 %v5183_v12, %v4449_v3  ;;  %v4345_v3 = vld [vmem:[#allocation5 + $0x228] sm:$0xf0] }
 0x13e   :  { %v1194_v1 = vadd.f32 %v1193_v37, %v5693_v5  ;;  %v1242_v46 = vpop.f32.mrf.mxu3  ;;  %v5161_v37 = vld [vmem:[#allocation5 + $0x244] sm:$0xf] }
 0x13f   :  { %v1293_v25 = vpop.f32.mrf.mxu0  ;;  %1656 = vmatpush.bf16.msrb.mxu0 %v4372_v6  ;;  %1703 = vmatpush.bf16.msrb.mxu1 %v4452_v10  ;;  %v4353_v6 = vld [vmem:[#allocation5 + $0x238] sm:$0xf0]  ;;  %v5179_v10 = vld [vmem:[#allocation5 + $0x2d4] sm:$0xf] }
 0x140   :  { %v1243_v54 = vadd.f32 %v1242_v46, %v1194_v1  ;;  %v5841_v1 = vpack.c.bf16 %v194_v24, %v186_v26  ;;  %v4364_v46 = vor.u32 %v5161_v37, %v4361_v29  ;;  %v5181_v26 = vld [vmem:[#allocation5 + $0x2e4] sm:$0xf]  ;;  %v4441_v24 = vld [vmem:[#allocation5 + $0x2e8] sm:$0xf0] }
 0x141   :  { %v1342_v56 = vpop.f32.mrf.mxu1  ;;  %v5121_v37 = vld [vmem:[#allocation5 + $0x104] sm:$0xf] }
 0x142   :  { %v1292_v57 = vadd.f32 %v1291_v38, %v1243_v54  ;;  %6527 = vst [vmem:[#allocation38_spill] sm:$0xff] %v5841_v1  ;;  %v5843_v54 = vpack.c.bf16 %v195_v62, %v187_v50  ;;  %v4201_v50 = vld [vmem:[#allocation5 + $0x108] sm:$0xf0]  ;;  %v4444_v62 = vor.u32 %v5181_v26, %v4441_v24  ;;  %v4433_v26 = vld [vmem:[#allocation5 + $0x2d8] sm:$0xf0] }
 0x143   :  { %1657 = vmatpush.bf16.msrb.mxu0 %v4364_v46  ;;  %v4204_v12 = vor.u32 %v5121_v37, %v4201_v50  ;;  %v5155_v24 = vld [vmem:[#allocation5 + $0x214] sm:$0xf]  ;;  %v4337_v37 = vld [vmem:[#allocation5 + $0x218] sm:$0xf0]  ;;  %v5177_v50 = vld [vmem:[#allocation5 + $0x2c4] sm:$0xf] }
 0x144   :  { %v5838_v42 = vadd.f32 %v1340_v49, %v1292_v57  ;;  %6528 = vst [vmem:[#allocation39_spill] sm:$0xff] %v5843_v54  ;;  %v5159_v57 = vld [vmem:[#allocation5 + $0x234] sm:$0xf]  ;;  %1704 = vmatpush.bf16.msrb.mxu1 %v4444_v62 }
 0x145   :  { %v1195_v5 = vpop.f32.mrf.mxu2  ;;  %1563 = vmatpush.bf16.msrb.mxu2 %v4204_v12  ;;  %v203_v12 = vld [vmem:[#allocation2 + $0x338] sm:$0xff] }
 0x146   :  { %v1196_v17 = vadd.f32 %v1195_v5, %v5705_v9  ;;  %v1244_v39 = vpop.f32.mrf.mxu3  ;;  %v4356_v5 = vor.u32 %v5159_v57, %v4353_v6 }
 0x147   :  { %v1296_v38 = vpop.f32.mrf.mxu0 }
 0x148   :  { %v1245_v49 = vadd.f32 %v1244_v39, %v1196_v17  ;;  %1658 = vmatpush.bf16.msrb.mxu0 %v4356_v5  ;;  %v5137_v17 = vld [vmem:[#allocation5 + $0x184] sm:$0xf]  ;;  %v4265_v39 = vld [vmem:[#allocation5 + $0x188] sm:$0xf0] }
 0x149   :  { %v1345_v4 = vpop.f32.mrf.mxu1 }
 0x14a   :  { %1393 = vmatmul.bf16.gmra.mxu2 %v5841_v1  ;;  %1491 = vmatmul.bf16.gmra.mxu0 %v5593_v52  ;;  %v1294_v9 = vadd.f32 %v1293_v25, %v1245_v49  ;;  %v4268_v52 = vor.u32 %v5137_v17, %v4265_v39  ;;  %v5157_v25 = vld [vmem:[#allocation5 + $0x224] sm:$0xf]  ;;  %v4340_v17 = vor.u32 %v5155_v24, %v4337_v37  ;;  %v4425_v39 = vld [vmem:[#allocation5 + $0x2c8] sm:$0xf0]  ;;  %v210_v1 = vld [vmem:[#allocation2 + $0x370] sm:$0xff] }
 0x14b   :  { %1442 = vmatmul.bf16.gmra.mxu3 %v5843_v54  ;;  %v4348_v6 = vor.u32 %v5157_v25, %v4345_v3  ;;  %v202_v54 = vld [vmem:[#allocation2 + $0x330] sm:$0xff]  ;;  %v211_v25 = vld [vmem:[#allocation2 + $0x378] sm:$0xff]  ;;  %v5153_v3 = vld [vmem:[#allocation5 + $0x204] sm:$0xf] }
 0x14c   :  { %v5848_v29 = vadd.f32 %v1342_v56, %v1294_v9  ;;  %1540 = vmatmul.bf16.gmra.mxu1 %v5595_v55  ;;  %1612 = vmatpush.bf16.msrb.mxu3 %v4268_v52  ;;  %v4436_v9 = vor.u32 %v5179_v10, %v4433_v26  ;;  %v4329_v10 = vld [vmem:[#allocation5 + $0x208] sm:$0xf0]  ;;  %v5855_v26 = vpack.c.bf16 %v210_v1, %v202_v54  ;;  %v5199_v1 = vld [vmem:[#allocation5 + $0x374] sm:$0xf]  ;;  %v4513_v54 = vld [vmem:[#allocation5 + $0x378] sm:$0xf0] }
 0x14d   :  { %v1198_v46 = vpop.f32.mrf.mxu2  ;;  %1659 = vmatpush.bf16.msrb.mxu0 %v4348_v6  ;;  %v5857_v24 = vpack.c.bf16 %v211_v25, %v203_v12  ;;  %v4516_v12 = vor.u32 %v5199_v1, %v4513_v54  ;;  %v5215_v25 = vld [vmem:[#allocation5 + $0x3f4] sm:$0xf]  ;;  %v219_v1 = vld [vmem:[#allocation2 + $0x3b8] sm:$0xff] }
 0x14e   :  { %v1199_v49 = vadd.f32 %v1198_v46, %v5717_v31  ;;  %v1247_v57 = vpop.f32.mrf.mxu3  ;;  %1705 = vmatpush.bf16.msrb.mxu1 %v4436_v9  ;;  %v4428_v31 = vor.u32 %v5177_v50, %v4425_v39  ;;  %v4417_v9 = vld [vmem:[#allocation5 + $0x2b8] sm:$0xf0] }
 0x14f   :  { %v1298_v56 = vpop.f32.mrf.mxu0  ;;  %1752 = vmatpush.bf16.msra.mxu2 %v4516_v12  ;;  %v227_v54 = vld [vmem:[#allocation2 + $0x3f8] sm:$0xff] }
 0x150   :  { %v1248_v55 = vadd.f32 %v1247_v57, %v1199_v49  ;;  %v5175_v49 = vld [vmem:[#allocation5 + $0x2b4] sm:$0xf] }
 0x151   :  { %v1347_v5 = vpop.f32.mrf.mxu1  ;;  %1660 = vmatpush.bf16.msrb.mxu0 %v4340_v17  ;;  %v4409_v17 = vld [vmem:[#allocation5 + $0x2a8] sm:$0xf0] }
 0x152   :  { %v1297_v62 = vadd.f32 %v1296_v38, %v1248_v55  ;;  %1706 = vmatpush.bf16.msrb.mxu1 %v4428_v31  ;;  %v4332_v38 = vor.u32 %v5153_v3, %v4329_v10 }
 0x154   :  { %v5852_v46 = vadd.f32 %v1345_v4, %v1297_v62  ;;  %v4420_v4 = vor.u32 %v5175_v49, %v4417_v9  ;;  %v5173_v62 = vld [vmem:[#allocation5 + $0x2a4] sm:$0xf]  ;;  %v5171_v49 = vld [vmem:[#allocation5 + $0x294] sm:$0xf] }
 0x155   :  { %v1200_v52 = vpop.f32.mrf.mxu2  ;;  %1661 = vmatpush.bf16.msrb.mxu0 %v4332_v38  ;;  %v4412_v39 = vor.u32 %v5173_v62, %v4409_v17  ;;  %v218_v17 = vld [vmem:[#allocation2 + $0x3b0] sm:$0xff] }
 0x156   :  { %v1201_v57 = vadd.f32 %v1200_v52, %v5729_v18  ;;  %v1249_v6 = vpop.f32.mrf.mxu3  ;;  %1707 = vmatpush.bf16.msrb.mxu1 %v4420_v4  ;;  %v4577_v52 = vld [vmem:[#allocation5 + $0x3f8] sm:$0xf0]  ;;  %v5169_v4 = vld [vmem:[#allocation5 + $0x284] sm:$0xf] }
 0x157   :  { %v1301_v55 = vpop.f32.mrf.mxu0  ;;  %v4580_v10 = vor.u32 %v5215_v25, %v4577_v52 }
 0x158   :  { %v1250_v37 = vadd.f32 %v1249_v6, %v1201_v57  ;;  %v4401_v57 = vld [vmem:[#allocation5 + $0x298] sm:$0xf0] }
 0x159   :  { %v1350_v50 = vpop.f32.mrf.mxu1  ;;  %v4404_v6 = vor.u32 %v5171_v49, %v4401_v57  ;;  %1801 = vmatpush.bf16.msra.mxu3 %v4580_v10  ;;  %v5871_v10 = vpack.c.bf16 %v227_v54, %v219_v1  ;;  %v5364_v1 = vld [vmem:[#allocation10] ss:$8 sm:$0x3] }
 0x15a   :  { %1398 = vmatmul.bf16.gmra.mxu2 %v5855_v26  ;;  %1496 = vmatmul.bf16.gmra.mxu0 %v5605_v43  ;;  %v1299_v18 = vadd.f32 %v1298_v56, %v1250_v37 }
 0x15b   :  { %1447 = vmatmul.bf16.gmra.mxu3 %v5857_v24  ;;  %1708 = vmatpush.bf16.msrb.mxu1 %v4412_v39 }
 0x15c   :  { %v5862_v31 = vadd.f32 %v1347_v5, %v1299_v18  ;;  %1545 = vmatmul.bf16.gmra.mxu1 %v5607_v44  ;;  %v4393_v44 = vld [vmem:[#allocation5 + $0x288] sm:$0xf0]  ;;  %v226_v18 = vld [vmem:[#allocation2 + $0x3f0] sm:$0xff] }
 0x15d   :  { %v1203_v3 = vpop.f32.mrf.mxu2  ;;  %v4396_v62 = vor.u32 %v5169_v4, %v4393_v44  ;;  %v5869_v52 = vpack.c.bf16 %v226_v18, %v218_v17  ;;  %v4569_v4 = vld [vmem:[#allocation5 + $0x3e8] sm:$0xf0] }
 0x15e   :  { %v1204_v43 = vadd.f32 %v1203_v3, %v5741_v7  ;;  %v1252_v56 = vpop.f32.mrf.mxu3 }
 0x15f   :  { %v1303_v38 = vpop.f32.mrf.mxu0  ;;  %1709 = vmatpush.bf16.msrb.mxu1 %v4404_v6 }
 0x160   :  { %v1253_v9 = vadd.f32 %v1252_v56, %v1204_v43  ;;  %v4505_v43 = vld [vmem:[#allocation5 + $0x368] sm:$0xf0]  ;;  %v5213_v56 = vld [vmem:[#allocation5 + $0x3e4] sm:$0xf] }
 0x161   :  { %v1352_v5 = vpop.f32.mrf.mxu1 }
 0x162   :  { %v1302_v37 = vadd.f32 %v1301_v55, %v1253_v9 }
 0x163   :  { %1710 = vmatpush.bf16.msrb.mxu1 %v4396_v62  ;;  %v4572_v62 = vor.u32 %v5213_v56, %v4569_v4  ;;  %v5211_v56 = vld [vmem:[#allocation5 + $0x3d4] sm:$0xf] }
 0x164   :  { %v5866_v39 = vadd.f32 %v1350_v50, %v1302_v37 }
 0x165   :  { %v1205_v25 = vpop.f32.mrf.mxu2  ;;  %1802 = vmatpush.bf16.msra.mxu3 %v4572_v62 }
 0x166   :  { %v1206_v7 = vadd.f32 %v1205_v25, %v5753_v40  ;;  %v1254_v12 = vpop.f32.mrf.mxu3  ;;  %v5197_v40 = vld [vmem:[#allocation5 + $0x364] sm:$0xf] }
 0x167   :  { %v1306_v3 = vpop.f32.mrf.mxu0  ;;  %v4508_v9 = vor.u32 %v5197_v40, %v4505_v43  ;;  %v4497_v43 = vld [vmem:[#allocation5 + $0x358] sm:$0xf0] }
 0x168   :  { %v1255_v49 = vadd.f32 %v1254_v12, %v1206_v7 }
 0x169   :  { %v1355_v57 = vpop.f32.mrf.mxu1  ;;  %1753 = vmatpush.bf16.msra.mxu2 %v4508_v9  ;;  %v4561_v9 = vld [vmem:[#allocation5 + $0x3d8] sm:$0xf0] }
 0x16a   :  { %1403 = vmatmul.bf16.gmra.mxu2 %v5869_v52  ;;  %1501 = vmatmul.bf16.gmra.mxu0 %v5617_v15  ;;  %v1304_v55 = vadd.f32 %v1303_v38, %v1255_v49 }
 0x16b   :  { %1452 = vmatmul.bf16.gmra.mxu3 %v5871_v10 }
 0x16c   :  { %v5876_v50 = vadd.f32 %v1352_v5, %v1304_v55  ;;  %1550 = vmatmul.bf16.gmra.mxu1 %v5619_v16  ;;  %v5882_v16 = vperm.slane %v5364_v1, 1 }
 0x16d   :  { %v1208_v6 = vpop.f32.mrf.mxu2 }
 0x16e   :  { %v1209_v44 = vadd.f32 %v1208_v6, %v5765_v30  ;;  %v1257_v37 = vpop.f32.mrf.mxu3 }
 0x16f   :  { %v1308_v17 = vpop.f32.mrf.mxu0 }
 0x170   :  { %v1258_v15 = vadd.f32 %v1257_v37, %v1209_v44  ;;  %v4564_v44 = vor.u32 %v5211_v56, %v4561_v9 }
 0x171   :  { %v1357_v38 = vpop.f32.mrf.mxu1 }
 0x172   :  { %v1307_v18 = vadd.f32 %v1306_v3, %v1258_v15  ;;  %1803 = vmatpush.bf16.msra.mxu3 %v4564_v44 }
 0x174   :  { %v5880_v5 = vadd.f32 %v1355_v57, %v1307_v18  ;;  %v5195_v57 = vld [vmem:[#allocation5 + $0x354] sm:$0xf] }
 0x175   :  { %v1210_v54 = vpop.f32.mrf.mxu2 }
 0x176   :  { %v1211_v25 = vadd.f32 %v1210_v54, %v5775_v41  ;;  %v1259_v7 = vpop.f32.mrf.mxu3  ;;  %v4500_v41 = vor.u32 %v5195_v57, %v4497_v43  ;;  %v4553_v43 = vld [vmem:[#allocation5 + $0x3c8] sm:$0xf0] }
 0x177   :  { %v1467_v12 = vpop.f32.mrf.mxu0 }
 0x178   :  { %v1260_v49 = vadd.f32 %v1259_v7, %v1211_v25  ;;  %v1468_v30 = vadd.f32 %v1467_v12, %v5882_v16  ;;  %1754 = vmatpush.bf16.msra.mxu2 %v4500_v41 }
 0x179   :  { %v1516_v55 = vpop.f32.mrf.mxu1 }
 0x17a   :  { %1564 = vmatmul.bf16.vlgmr.msrb.gmra.mxu2 %v5627_v32  ;;  %1662 = vmatmul.bf16.vlgmr.msrb.gmra.mxu0 %v5629_v33  ;;  %v1309_v40 = vadd.f32 %v1308_v17, %v1260_v49  ;;  %v5888_v3 = vadd.f32 %v1516_v55, %v1468_v30  ;;  %v5193_v30 = vld [vmem:[#allocation5 + $0x344] sm:$0xf]  ;;  %v4489_v55 = vld [vmem:[#allocation5 + $0x348] sm:$0xf0] }
 0x17b   :  { %1613 = vmatmul.bf16.vlgmr.msrb.gmra.mxu3 %v5631_v34  ;;  %v4492_v57 = vor.u32 %v5193_v30, %v4489_v55 }
 0x17c   :  { %v5891_v6 = vadd.f32 %v1357_v38, %v1309_v40  ;;  %1711 = vmatmul.bf16.vlgmr.msrb.gmra.mxu1 %v5633_v35  ;;  %v5209_v40 = vld [vmem:[#allocation5 + $0x3c4] sm:$0xf] }
 0x17d   :  { %v1369_v4 = vpop.f32.mrf.mxu2  ;;  %v4556_v41 = vor.u32 %v5209_v40, %v4553_v43  ;;  %1755 = vmatpush.bf16.msra.mxu2 %v4492_v57 }
 0x17e   :  { %v1370_v32 = vadd.f32 %v1369_v4, %v5782_v28  ;;  %v1418_v37 = vpop.f32.mrf.mxu3 }
 0x17f   :  { %v1469_v33 = vpop.f32.mrf.mxu0  ;;  %1804 = vmatpush.bf16.msra.mxu3 %v4556_v41 }
 0x180   :  { %v1419_v62 = vadd.f32 %v1418_v37, %v1370_v32  ;;  %v1470_v34 = vadd.f32 %v1469_v33, %v5882_v16 }
 0x181   :  { %v1518_v17 = vpop.f32.mrf.mxu1 }
 0x182   :  { %v5896_v15 = vadd.f32 %v1518_v17, %v1470_v34  ;;  %v1850_v28 = vmax.f32 %v1419_v62, 0.0 }
 0x185   :  { %v1371_v38 = vpop.f32.mrf.mxu2 }
 0x186   :  { %v1372_v18 = vadd.f32 %v1371_v38, %v5792_v19  ;;  %v1420_v35 = vpop.f32.mrf.mxu3 }
 0x187   :  { %v1472_v1 = vpop.f32.mrf.mxu0 }
 0x188   :  { %v1421_v54 = vadd.f32 %v1420_v35, %v1372_v18  ;;  %v1473_v25 = vadd.f32 %v1472_v1, %v5882_v16  ;;  %v5191_v1 = vld [vmem:[#allocation5 + $0x334] sm:$0xf] }
 0x189   :  { %v1521_v7 = vpop.f32.mrf.mxu1 }
 0x18a   :  { %v1852_v12 = vmax.f32 %v1421_v54, 0.0  ;;  %1569 = vmatmul.bf16.gmra.mxu2 %v5639_v58  ;;  %1667 = vmatmul.bf16.gmra.mxu0 %v5641_v59  ;;  %v5902_v49 = vadd.f32 %v1521_v7, %v1473_v25  ;;  %v4481_v54 = vld [vmem:[#allocation5 + $0x338] sm:$0xf0]  ;;  %v5207_v25 = vld [vmem:[#allocation5 + $0x3b4] sm:$0xf] }
 0x18b   :  { %1618 = vmatmul.bf16.gmra.mxu3 %v5643_v60  ;;  %v4545_v7 = vld [vmem:[#allocation5 + $0x3b8] sm:$0xf0] }
 0x18c   :  { %v5905_v19 = vpack.c.bf16 %v1852_v12, %v1850_v28  ;;  %1716 = vmatmul.bf16.gmra.mxu1 %v5645_v61  ;;  %v4548_v30 = vor.u32 %v5207_v25, %v4545_v7 }
 0x18d   :  { %v1374_v56 = vpop.f32.mrf.mxu2 }
 0x18e   :  { %v1375_v9 = vadd.f32 %v1374_v56, %v5796_v63  ;;  %v1423_v58 = vpop.f32.mrf.mxu3  ;;  %1805 = vmatpush.bf16.msra.mxu3 %v4548_v30 }
 0x18f   :  { %v1474_v59 = vpop.f32.mrf.mxu0 }
 0x190   :  { %v1424_v4 = vadd.f32 %v1423_v58, %v1375_v9  ;;  %v1475_v60 = vadd.f32 %v1474_v59, %v5882_v16 }
 0x191   :  { %v1523_v44 = vpop.f32.mrf.mxu1 }
 0x192   :  { %v5910_v32 = vadd.f32 %v1523_v44, %v1475_v60  ;;  %v1854_v63 = vmax.f32 %v1424_v4, 0.0  ;;  %v6529_v44 = vld [vmem:[#allocation16_spill] sm:$0xff] }
 0x195   :  { %v1376_v37 = vpop.f32.mrf.mxu2 }
 0x196   :  { %v1377_v33 = vadd.f32 %v1376_v37, %v5806_v47  ;;  %v1425_v61 = vpop.f32.mrf.mxu3  ;;  %v4484_v47 = vor.u32 %v5191_v1, %v4481_v54 }
 0x197   :  { %v1477_v62 = vpop.f32.mrf.mxu0 }
 0x198   :  { %v1426_v34 = vadd.f32 %v1425_v61, %v1377_v33  ;;  %v1478_v17 = vadd.f32 %v1477_v62, %v5882_v16  ;;  %1756 = vmatpush.bf16.msra.mxu2 %v4484_v47  ;;  %v6530_v33 = vld [vmem:[#allocation17_spill] sm:$0xff]  ;;  %v5189_v61 = vld [vmem:[#allocation5 + $0x324] sm:$0xf]  ;;  %v4473_v62 = vld [vmem:[#allocation5 + $0x328] sm:$0xf0] }
 0x199   :  { %v1526_v38 = vpop.f32.mrf.mxu1 }
 0x19a   :  { %v1856_v18 = vmax.f32 %v1426_v34, 0.0  ;;  %1574 = vmatmul.bf16.gmra.mxu2 %v5651_v20  ;;  %1672 = vmatmul.bf16.gmra.mxu0 %v5653_v21  ;;  %v5916_v35 = vadd.f32 %v1526_v38, %v1478_v17  ;;  %v5205_v34 = vld [vmem:[#allocation5 + $0x3a4] sm:$0xf]  ;;  %v4476_v17 = vor.u32 %v5189_v61, %v4473_v62  ;;  %v4537_v38 = vld [vmem:[#allocation5 + $0x3a8] sm:$0xf0] }
 0x19b   :  { %1623 = vmatmul.bf16.gmra.mxu3 %v5655_v22  ;;  %v4540_v1 = vor.u32 %v5205_v34, %v4537_v38  ;;  %v6535_v61 = vld [vmem:[#allocation22_spill] sm:$0xff]  ;;  %v4529_v34 = vld [vmem:[#allocation5 + $0x398] sm:$0xf0] }
 0x19c   :  { %1721 = vmatmul.bf16.gmra.mxu1 %v5657_v23  ;;  %v5920_v28 = vpack.c.bf16 %v1856_v18, %v1854_v63  ;;  %1757 = vmatpush.bf16.msra.mxu2 %v4476_v17 }
 0x19d   :  { %v1379_v12 = vpop.f32.mrf.mxu2  ;;  %1806 = vmatpush.bf16.msra.mxu3 %v4540_v1  ;;  %v5223_v1 = vld [vmem:[#allocation7 + $0x64] sm:$0xf0] }
 0x19e   :  { %v1380_v55 = vadd.f32 %v1379_v12, %v5810_v53  ;;  %v1428_v20 = vpop.f32.mrf.mxu3 }
 0x19f   :  { %v1479_v21 = vpop.f32.mrf.mxu0 }
 0x1a0   :  { %v1429_v40 = vadd.f32 %v1428_v20, %v1380_v55  ;;  %v1480_v22 = vadd.f32 %v1479_v21, %v5882_v16 }
 0x1a1   :  { %v1528_v57 = vpop.f32.mrf.mxu1 }
 0x1a2   :  { %v5924_v43 = vadd.f32 %v1528_v57, %v1480_v22  ;;  %v1858_v53 = vmax.f32 %v1429_v40, 0.0 }
 0x1a5   :  { %v1381_v56 = vpop.f32.mrf.mxu2 }
 0x1a6   :  { %v1382_v23 = vadd.f32 %v1381_v56, %v5820_v8  ;;  %v1430_v41 = vpop.f32.mrf.mxu3  ;;  %v6531_v8 = vld [vmem:[#allocation18_spill] sm:$0xff] }
 0x1a7   :  { %v1482_v9 = vpop.f32.mrf.mxu0 }
 0x1a8   :  { %v1431_v58 = vadd.f32 %v1430_v41, %v1382_v23  ;;  %v1483_v59 = vadd.f32 %v1482_v9, %v5882_v16  ;;  %v5224_v23 = vld [vmem:[#allocation7 + $0x74] sm:$0xf0] }
 0x1a9   :  { %v1531_v4 = vpop.f32.mrf.mxu1 }
 0x1aa   :  { %v1860_v60 = vmax.f32 %v1431_v58, 0.0  ;;  %1579 = vmatmul.bf16.gmra.mxu2 %v5663_v45  ;;  %1677 = vmatmul.bf16.gmra.mxu0 %v6529_v44  ;;  %v5930_v37 = vadd.f32 %v1531_v4, %v1483_v59  ;;  %v6532_v58 = vld [vmem:[#allocation19_spill] sm:$0xff]  ;;  %v6533_v59 = vld [vmem:[#allocation20_spill] sm:$0xff]  ;;  %v4465_v44 = vld [vmem:[#allocation5 + $0x318] sm:$0xf0] }
 0x1ab   :  { %1628 = vmatmul.bf16.gmra.mxu3 %v6530_v33  ;;  %v5203_v33 = vld [vmem:[#allocation5 + $0x394] sm:$0xf] }
 0x1ac   :  { %1726 = vmatmul.bf16.gmra.mxu1 %v6531_v8  ;;  %v5934_v63 = vpack.c.bf16 %v1860_v60, %v1858_v53  ;;  %v6534_v60 = vld [vmem:[#allocation21_spill] sm:$0xff]  ;;  %v4532_v38 = vor.u32 %v5203_v33, %v4529_v34  ;;  %v6537_v33 = vld [vmem:[#allocation24_spill] sm:$0xff]  ;;  %v5185_v34 = vld [vmem:[#allocation5 + $0x304] sm:$0xf] }
 0x1ad   :  { %v1384_v18 = vpop.f32.mrf.mxu2 }
 0x1ae   :  { %v1385_v54 = vadd.f32 %v1384_v18, %v5824_v0  ;;  %v1433_v45 = vpop.f32.mrf.mxu3  ;;  %v4611_v0 = vld [vmem:[#allocation7 + $0x70] sm:$0xf]  ;;  %v4607_v18 = vld [vmem:[#allocation7 + $0x60] sm:$0xf]  ;;  %1807 = vmatpush.bf16.msra.mxu3 %v4532_v38  ;;  %v5201_v38 = vld [vmem:[#allocation5 + $0x384] sm:$0xf] }
 0x1af   :  { %v1484_v25 = vpop.f32.mrf.mxu0  ;;  %v4612_v53 = vor.u32 %v5224_v23, %v4611_v0 }
 0x1b0   :  { %v1434_v47 = vadd.f32 %v1433_v45, %v1385_v54  ;;  %v1485_v7 = vadd.f32 %v1484_v25, %v5882_v16  ;;  %v4608_v25 = vor.u32 %v5223_v1, %v4607_v18  ;;  %v6539_v18 = vld [vmem:[#allocation26_spill] sm:$0xff] }
 0x1b1   :  { %v1533_v12 = vpop.f32.mrf.mxu1  ;;  %2027 = vmatpush.bf16.msra.mxu0 %v4612_v53  ;;  %v5220_v53 = vld [vmem:[#allocation7 + $0x34] sm:$0xf0] }
 0x1b2   :  { %v5938_v30 = vadd.f32 %v1533_v12, %v1485_v7  ;;  %v1862_v41 = vmax.f32 %v1434_v47, 0.0 }
 0x1b5   :  { %v1386_v55 = vpop.f32.mrf.mxu2  ;;  %2028 = vmatpush.bf16.msra.mxu0 %v4608_v25 }
 0x1b6   :  { %v1387_v20 = vadd.f32 %v1386_v55, %v5834_v14  ;;  %v1435_v21 = vpop.f32.mrf.mxu3  ;;  %v5187_v14 = vld [vmem:[#allocation5 + $0x314] sm:$0xf]  ;;  %v4603_v55 = vld [vmem:[#allocation7 + $0x50] sm:$0xf] }
 0x1b7   :  { %v1487_v40 = vpop.f32.mrf.mxu0  ;;  %v4468_v62 = vor.u32 %v5187_v14, %v4465_v44  ;;  %v6536_v44 = vld [vmem:[#allocation23_spill] sm:$0xff] }
 0x1b8   :  { %v1436_v22 = vadd.f32 %v1435_v21, %v1387_v20  ;;  %v1488_v57 = vadd.f32 %v1487_v40, %v5882_v16  ;;  %v5222_v20 = vld [vmem:[#allocation7 + $0x54] sm:$0xf0] }
 0x1b9   :  { %v1536_v56 = vpop.f32.mrf.mxu1  ;;  %1758 = vmatpush.bf16.msra.mxu2 %v4468_v62  ;;  %v4604_v21 = vor.u32 %v5222_v20, %v4603_v55  ;;  %v4591_v55 = vld [vmem:[#allocation7 + $0x20] sm:$0xf]  ;;  %v5219_v20 = vld [vmem:[#allocation7 + $0x24] sm:$0xf0] }
 0x1ba   :  { %v1864_v9 = vmax.f32 %v1436_v22, 0.0  ;;  %1584 = vmatmul.bf16.gmra.mxu2 %v6532_v58  ;;  %1682 = vmatmul.bf16.gmra.mxu0 %v6533_v59  ;;  %v5944_v4 = vadd.f32 %v1536_v56, %v1488_v57  ;;  %v4599_v22 = vld [vmem:[#allocation7 + $0x40] sm:$0xf]  ;;  %v5221_v57 = vld [vmem:[#allocation7 + $0x44] sm:$0xf0] }
 0x1bb   :  { %1633 = vmatmul.bf16.gmra.mxu3 %v6534_v60  ;;  %2029 = vmatpush.bf16.msra.mxu0 %v4604_v21  ;;  %v4600_v0 = vor.u32 %v5221_v57, %v4599_v22  ;;  %v4595_v59 = vld [vmem:[#allocation7 + $0x30] sm:$0xf]  ;;  %v4592_v22 = vor.u32 %v5219_v20, %v4591_v55 }
 0x1bc   :  { %1731 = vmatmul.bf16.gmra.mxu1 %v6535_v61  ;;  %v5948_v8 = vpack.c.bf16 %v1864_v9, %v1862_v41  ;;  %v4596_v62 = vor.u32 %v5220_v53, %v4595_v59  ;;  %v5217_v59 = vld [vmem:[#allocation7 + $0x4] sm:$0xf0] }
 0x1bd   :  { %v1389_v17 = vpop.f32.mrf.mxu2 }
 0x1be   :  { %v1390_v54 = vadd.f32 %v1389_v17, %v5838_v42  ;;  %v1438_v45 = vpop.f32.mrf.mxu3  ;;  %v4457_v17 = vld [vmem:[#allocation5 + $0x308] sm:$0xf0] }
 0x1bf   :  { %v5951_v47 = vpop.f32.mrf.mxu0  ;;  %2030 = vmatpush.bf16.msra.mxu0 %v4600_v0  ;;  %v4460_v1 = vor.u32 %v5185_v34, %v4457_v17  ;;  %v4587_v0 = vld [vmem:[#allocation7 + $0x10] sm:$0xf]  ;;  %v6540_v17 = vld [vmem:[#allocation27_spill] sm:$0xff] }
 0x1c0   :  { %v1439_v7 = vadd.f32 %v1438_v45, %v1390_v54  ;;  %v4521_v54 = vld [vmem:[#allocation5 + $0x388] sm:$0xf0] }
 0x1c1   :  { %v5953_v12 = vpop.f32.mrf.mxu1  ;;  %1759 = vmatpush.bf16.msra.mxu2 %v4460_v1  ;;  %v6542_v1 = vld [vmem:[#allocation29_spill] sm:$0xff] }
 0x1c2   :  { %v1866_v60 = vmax.f32 %v1439_v7, 0.0  ;;  %v4524_v7 = vor.u32 %v5201_v38, %v4521_v54  ;;  %v6541_v38 = vld [vmem:[#allocation28_spill] sm:$0xff]  ;;  %v6543_v54 = vld [vmem:[#allocation30_spill] sm:$0xff] }
 0x1c3   :  { %2031 = vmatpush.bf16.msra.mxu0 %v4596_v62 }
 0x1c4   :  { %1808 = vmatpush.bf16.msra.mxu3 %v4524_v7 }
 0x1c5   :  { %v1391_v40 = vpop.f32.mrf.mxu2 }
 0x1c6   :  { %v1392_v56 = vadd.f32 %v1391_v40, %v5848_v29  ;;  %v1440_v42 = vpop.f32.mrf.mxu3  ;;  %v6538_v29 = vld [vmem:[#allocation25_spill] sm:$0xff] }
 0x1c7   :  { %v1492_v23 = vpop.f32.mrf.mxu0  ;;  %2032 = vmatpush.bf16.msra.mxu0 %v4592_v22 }
 0x1c8   :  { %v1441_v41 = vadd.f32 %v1440_v42, %v1392_v56  ;;  %v1493_v9 = vadd.f32 %v1492_v23, %v5882_v16  ;;  %v5218_v23 = vld [vmem:[#allocation7 + $0x14] sm:$0xf0] }
 0x1c9   :  { %v1541_v58 = vpop.f32.mrf.mxu1 }
 0x1ca   :  { %v1868_v14 = vmax.f32 %v1441_v41, 0.0  ;;  %1589 = vmatmul.bf16.gmra.mxu2 %v6536_v44  ;;  %1687 = vmatmul.bf16.gmra.mxu0 %v6537_v33  ;;  %v5959_v61 = vadd.f32 %v1541_v58, %v1493_v9  ;;  %v4588_v41 = vor.u32 %v5218_v23, %v4587_v0  ;;  %v4583_v58 = vld [vmem:[#allocation7] sm:$0xf] }
 0x1cb   :  { %1638 = vmatmul.bf16.gmra.mxu3 %v6538_v29 }
 0x1cc   :  { %1736 = vmatmul.bf16.gmra.mxu1 %v6539_v18  ;;  %v5963_v45 = vpack.c.bf16 %v1868_v14, %v1866_v60  ;;  %2033 = vmatpush.bf16.msra.mxu0 %v4588_v41  ;;  %v4584_v60 = vor.u32 %v5217_v59, %v4583_v58 }
 0x1cd   :  { %v1394_v25 = vpop.f32.mrf.mxu2 }
 0x1ce   :  { %v1395_v21 = vadd.f32 %v1394_v25, %v5852_v46  ;;  %v1443_v40 = vpop.f32.mrf.mxu3 }
 0x1cf   :  { %v5966_v57 = vpop.f32.mrf.mxu0 }
 0x1d0   :  { %v1444_v56 = vadd.f32 %v1443_v40, %v1395_v21  ;;  %2034 = vmatpush.bf16.msra.mxu0 %v4584_v60 }
 0x1d1   :  { %v5968_v42 = vpop.f32.mrf.mxu1 }
 0x1d2   :  { %v1870_v29 = vmax.f32 %v1444_v56, 0.0 }
 0x1d5   :  { %v1396_v9 = vpop.f32.mrf.mxu2 }
 0x1d6   :  { %v1397_v53 = vadd.f32 %v1396_v9, %v5862_v31  ;;  %v1445_v46 = vpop.f32.mrf.mxu3 }
 0x1d7   :  { %v1497_v14 = vpop.f32.mrf.mxu0 }
 0x1d8   :  { %v1446_v44 = vadd.f32 %v1445_v46, %v1397_v53  ;;  %v1498_v33 = vadd.f32 %v1497_v14, %v5882_v16  ;;  %v6544_v46 = vld [vmem:[#allocation31_spill] sm:$0xff]  ;;  %v6546_v14 = vld [vmem:[#allocation33_spill] sm:$0xff] }
 0x1d9   :  { %v1546_v62 = vpop.f32.mrf.mxu1 }
 0x1da   :  { %v1872_v34 = vmax.f32 %v1446_v44, 0.0  ;;  %1594 = vmatmul.bf16.gmra.mxu2 %v6540_v17  ;;  %1692 = vmatmul.bf16.gmra.mxu0 %v6541_v38  ;;  %v5974_v18 = vadd.f32 %v1546_v62, %v1498_v33  ;;  %v6547_v44 = vld [vmem:[#allocation34_spill] sm:$0xff]  ;;  %v4643_v38 = vld [vmem:[#allocation7 + $0xf0] sm:$0xf] }
 0x1db   :  { %1643 = vmatmul.bf16.gmra.mxu3 %v6542_v1  ;;  %v5232_v1 = vld [vmem:[#allocation7 + $0xf4] sm:$0xf0] }
 0x1dc   :  { %1741 = vmatmul.bf16.gmra.mxu1 %v6543_v54  ;;  %v5978_v31 = vpack.c.bf16 %v1872_v34, %v1870_v29  ;;  %v4644_v54 = vor.u32 %v5232_v1, %v4643_v38 }
 0x1dd   :  { %v1399_v25 = vpop.f32.mrf.mxu2 }
 0x1de   :  { %v1400_v7 = vadd.f32 %v1399_v25, %v5866_v39  ;;  %v1448_v55 = vpop.f32.mrf.mxu3  ;;  %v6545_v39 = vld [vmem:[#allocation32_spill] sm:$0xff]  ;;  %2076 = vmatpush.bf16.msra.mxu1 %v4644_v54 }
 0x1df   :  { %v5981_v20 = vpop.f32.mrf.mxu0 }
 0x1e0   :  { %v1449_v21 = vadd.f32 %v1448_v55, %v1400_v7 }
 0x1e1   :  { %v5983_v40 = vpop.f32.mrf.mxu1 }
 0x1e2   :  { %v1874_v59 = vmax.f32 %v1449_v21, 0.0 }
 0x1e5   :  { %v1401_v22 = vpop.f32.mrf.mxu2 }
 0x1e6   :  { %v1402_v56 = vadd.f32 %v1401_v22, %v5876_v50  ;;  %v1450_v0 = vpop.f32.mrf.mxu3 }
 0x1e7   :  { %v1502_v23 = vpop.f32.mrf.mxu0 }
 0x1e8   :  { %v1451_v41 = vadd.f32 %v1450_v0, %v1402_v56  ;;  %v1503_v9 = vadd.f32 %v1502_v23, %v5882_v16  ;;  %v6548_v23 = vld [vmem:[#allocation35_spill] sm:$0xff] }
 0x1e9   :  { %v1551_v58 = vpop.f32.mrf.mxu1 }
 0x1ea   :  { %v1876_v53 = vmax.f32 %v1451_v41, 0.0  ;;  %1599 = vmatmul.bf16.gmra.mxu2 %v6544_v46  ;;  %1697 = vmatmul.bf16.gmra.mxu0 %v6545_v39  ;;  %v5989_v60 = vadd.f32 %v1551_v58, %v1503_v9  ;;  %v5231_v39 = vld [vmem:[#allocation7 + $0xe4] sm:$0xf0] }
 0x1eb   :  { %1648 = vmatmul.bf16.gmra.mxu3 %v6546_v14 }
 0x1ec   :  { %1746 = vmatmul.bf16.gmra.mxu1 %v6547_v44  ;;  %v5993_v33 = vpack.c.bf16 %v1876_v53, %v1874_v59 }
 0x1ed   :  { %v1404_v50 = vpop.f32.mrf.mxu2 }
 0x1ee   :  { %v1405_v62 = vadd.f32 %v1404_v50, %v5880_v5  ;;  %v1453_v29 = vpop.f32.mrf.mxu3  ;;  %v6549_v5 = vld [vmem:[#allocation36_spill] sm:$0xff] }
 0x1ef   :  { %v5996_v34 = vpop.f32.mrf.mxu0 }
 0x1f0   :  { %v1454_v17 = vadd.f32 %v1453_v29, %v1405_v62 }
 0x1f2   :  { %v1878_v56 = vmax.f32 %v1454_v17, 0.0 }
 0x1f5   :  { %v1406_v25 = vpop.f32.mrf.mxu2 }
 0x1f6   :  { %v1407_v7 = vadd.f32 %v1406_v25, %v5891_v6  ;;  %v1455_v55 = vpop.f32.mrf.mxu3  ;;  %v4639_v6 = vld [vmem:[#allocation7 + $0xe0] sm:$0xf] }
 0x1f7   :  { %v1663_v21 = vpop.f32.mrf.mxu0  ;;  %v4640_v14 = vor.u32 %v5231_v39, %v4639_v6 }
 0x1f8   :  { %v1456_v22 = vadd.f32 %v1455_v55, %v1407_v7  ;;  %v4635_v7 = vld [vmem:[#allocation7 + $0xd0] sm:$0xf]  ;;  %v5230_v55 = vld [vmem:[#allocation7 + $0xd4] sm:$0xf0] }
 0x1f9   :  { %2077 = vmatpush.bf16.msra.mxu1 %v4640_v14 }
 0x1fa   :  { %v1880_v0 = vmax.f32 %v1456_v22, 0.0  ;;  %1760 = vmatmul.bf16.vlgmr.msra.gmra.mxu2 %v6548_v23  ;;  %2035 = vmatmul.bf16.vlgmr.msra.gmra.mxu0 %v5905_v19 }
 0x1fb   :  { %1809 = vmatmul.bf16.vlgmr.msra.gmra.mxu3 %v6549_v5 }
 0x1fc   :  { %v6002_v41 = vpack.c.bf16 %v1880_v0, %v1878_v56 }
 0x1fd   :  { %v1565_v9 = vpop.f32.mrf.mxu2 }
 0x1fe   :  { %v1566_v58 = vadd.f32 %v1565_v9, %v5888_v3  ;;  %v1614_v59 = vpop.f32.mrf.mxu3 }
 0x1ff   :  { %v1665_v53 = vpop.f32.mrf.mxu0 }
 0x200   :  { %v1615_v46 = vadd.f32 %v1614_v59, %v1566_v58  ;;  %v4631_v59 = vld [vmem:[#allocation7 + $0xc0] sm:$0xf] }
 0x202   :  { %v6005_v44 = vadd.f32 %v1663_v21, %v1615_v46 }
 0x205   :  { %v1567_v50 = vpop.f32.mrf.mxu2 }
 0x206   :  { %v1568_v62 = vadd.f32 %v1567_v50, %v5896_v15  ;;  %v1616_v19 = vpop.f32.mrf.mxu3  ;;  %v4636_v15 = vor.u32 %v5230_v55, %v4635_v7 }
 0x207   :  { %v1668_v29 = vpop.f32.mrf.mxu0 }
 0x208   :  { %v1617_v17 = vadd.f32 %v1616_v19, %v1568_v62  ;;  %2078 = vmatpush.bf16.msra.mxu1 %v4636_v15 }
 0x20a   :  { %1765 = vmatmul.bf16.gmra.mxu2 %v5785_v48  ;;  %2040 = vmatmul.bf16.gmra.mxu0 %v5920_v28  ;;  %v6010_v3 = vadd.f32 %v1665_v53, %v1617_v17  ;;  %v5229_v53 = vld [vmem:[#allocation7 + $0xc4] sm:$0xf0]  ;;  %v4627_v17 = vld [vmem:[#allocation7 + $0xb0] sm:$0xf] }
 0x20b   :  { %1814 = vmatmul.bf16.gmra.mxu3 %v5787_v11  ;;  %v4632_v46 = vor.u32 %v5229_v53, %v4631_v59  ;;  %v5226_v59 = vld [vmem:[#allocation7 + $0x94] sm:$0xf0]  ;;  %v6053_v53 = vpop.f32.mrf.mxu1 }
 0x20d   :  { %v1570_v38 = vpop.f32.mrf.mxu2  ;;  %2079 = vmatpush.bf16.msra.mxu1 %v4632_v46 }
 0x20e   :  { %v1571_v1 = vadd.f32 %v1570_v38, %v5902_v49  ;;  %v1619_v54 = vpop.f32.mrf.mxu3  ;;  %v5228_v38 = vld [vmem:[#allocation7 + $0xb4] sm:$0xf0] }
 0x20f   :  { %v1670_v21 = vpop.f32.mrf.mxu0 }
 0x210   :  { %v1620_v25 = vadd.f32 %v1619_v54, %v1571_v1  ;;  %v4628_v1 = vor.u32 %v5228_v38, %v4627_v17 }
 0x212   :  { %v6014_v22 = vadd.f32 %v1668_v29, %v1620_v25  ;;  %2080 = vmatpush.bf16.msra.mxu1 %v4628_v1 }
 0x215   :  { %v1572_v56 = vpop.f32.mrf.mxu2 }
 0x216   :  { %v1573_v48 = vadd.f32 %v1572_v56, %v5910_v32  ;;  %v1621_v28 = vpop.f32.mrf.mxu3 }
 0x217   :  { %v1673_v49 = vpop.f32.mrf.mxu0 }
 0x218   :  { %v1622_v0 = vadd.f32 %v1621_v28, %v1573_v48  ;;  %v4623_v48 = vld [vmem:[#allocation7 + $0xa0] sm:$0xf]  ;;  %v5227_v28 = vld [vmem:[#allocation7 + $0xa4] sm:$0xf0] }
 0x21a   :  { %1770 = vmatmul.bf16.gmra.mxu2 %v5799_v36  ;;  %2045 = vmatmul.bf16.gmra.mxu0 %v5934_v63  ;;  %v6019_v11 = vadd.f32 %v1670_v21, %v1622_v0 }
 0x21b   :  { %1819 = vmatmul.bf16.gmra.mxu3 %v5801_v2 }
 0x21d   :  { %v1575_v23 = vpop.f32.mrf.mxu2 }
 0x21e   :  { %v1576_v5 = vadd.f32 %v1575_v23, %v5916_v35  ;;  %v1624_v9 = vpop.f32.mrf.mxu3 }
 0x21f   :  { %v1675_v6 = vpop.f32.mrf.mxu0 }
 0x220   :  { %v1625_v58 = vadd.f32 %v1624_v9, %v1576_v5 }
 0x222   :  { %v6023_v32 = vadd.f32 %v1673_v49, %v1625_v58  ;;  %v4619_v58 = vld [vmem:[#allocation7 + $0x90] sm:$0xf] }
 0x223   :  { %v4620_v46 = vor.u32 %v5226_v59, %v4619_v58 }
 0x225   :  { %v1577_v36 = vpop.f32.mrf.mxu2 }
 0x226   :  { %v1578_v63 = vadd.f32 %v1577_v36, %v5924_v43  ;;  %v1626_v39 = vpop.f32.mrf.mxu3 }
 0x227   :  { %v1678_v19 = vpop.f32.mrf.mxu0 }
 0x228   :  { %v1627_v14 = vadd.f32 %v1626_v39, %v1578_v63 }
 0x22a   :  { %1775 = vmatmul.bf16.gmra.mxu2 %v5813_v27  ;;  %2050 = vmatmul.bf16.gmra.mxu0 %v5948_v8  ;;  %v6028_v2 = vadd.f32 %v1675_v6, %v1627_v14 }
 0x22b   :  { %1824 = vmatmul.bf16.gmra.mxu3 %v5815_v51 }
 0x22d   :  { %v1580_v35 = vpop.f32.mrf.mxu2 }
 0x22e   :  { %v1581_v50 = vadd.f32 %v1580_v35, %v5930_v37  ;;  %v1629_v62 = vpop.f32.mrf.mxu3  ;;  %v6550_v37 = vld [vmem:[#allocation37_spill] sm:$0xff]  ;;  %v4615_v35 = vld [vmem:[#allocation7 + $0x80] sm:$0xf] }
 0x22f   :  { %v1680_v7 = vpop.f32.mrf.mxu0 }
 0x230   :  { %v1630_v29 = vadd.f32 %v1629_v62, %v1581_v50  ;;  %v5225_v50 = vld [vmem:[#allocation7 + $0x84] sm:$0xf0] }
 0x231   :  { %v4616_v62 = vor.u32 %v5225_v50, %v4615_v35 }
 0x232   :  { %v6032_v43 = vadd.f32 %v1678_v19, %v1630_v29 }
 0x235   :  { %v1582_v54 = vpop.f32.mrf.mxu2 }
 0x236   :  { %v1583_v27 = vadd.f32 %v1582_v54, %v5938_v30  ;;  %v1631_v8 = vpop.f32.mrf.mxu3  ;;  %v4624_v30 = vor.u32 %v5227_v28, %v4623_v48 }
 0x238   :  { %v1632_v25 = vadd.f32 %v1631_v8, %v1583_v27  ;;  %2081 = vmatpush.bf16.msra.mxu1 %v4624_v30  ;;  %v4675_v8 = vld [vmem:[#allocation7 + $0x170] sm:$0xf] }
 0x23a   :  { %1780 = vmatmul.bf16.gmra.mxu2 %v5827_v13  ;;  %2055 = vmatmul.bf16.gmra.mxu0 %v5963_v45  ;;  %v6037_v51 = vadd.f32 %v1680_v7, %v1632_v25  ;;  %v6551_v13 = vld [vmem:[#allocation38_spill] sm:$0xff]  ;;  %v6552_v45 = vld [vmem:[#allocation39_spill] sm:$0xff]  ;;  %v5240_v25 = vld [vmem:[#allocation7 + $0x174] sm:$0xf0] }
 0x23b   :  { %1829 = vmatmul.bf16.gmra.mxu3 %v6550_v37  ;;  %v4676_v7 = vor.u32 %v5240_v25, %v4675_v8  ;;  %v4667_v8 = vld [vmem:[#allocation7 + $0x150] sm:$0xf]  ;;  %v5238_v25 = vld [vmem:[#allocation7 + $0x154] sm:$0xf0] }
 0x23c   :  { %2082 = vmatpush.bf16.msra.mxu1 %v4620_v46 }
 0x23d   :  { %v1585_v55 = vpop.f32.mrf.mxu2  ;;  %2214 = vmatpush.bf16.msrb.mxu2 %v4676_v7  ;;  %v4668_v7 = vor.u32 %v5238_v25, %v4667_v8 }
 0x23e   :  { %v1586_v21 = vadd.f32 %v1585_v55, %v5944_v4  ;;  %v1634_v15 = vpop.f32.mrf.mxu3 }
 0x240   :  { %v6041_v56 = vadd.f32 %v1634_v15, %v1586_v21  ;;  %2083 = vmatpush.bf16.msra.mxu1 %v4616_v62 }
 0x245   :  { %v6043_v0 = vpop.f32.mrf.mxu2 }
 0x246   :  { %v6045_v49 = vpop.f32.mrf.mxu3 }
 0x24a   :  { %1785 = vmatmul.bf16.gmra.mxu2 %v6551_v13  ;;  %2060 = vmatmul.bf16.gmra.mxu0 %v5978_v31  ;;  %v1712_v31 = vpop.f32.mrf.mxu1 }
 0x24b   :  { %1834 = vmatmul.bf16.gmra.mxu3 %v6552_v45 }
 0x24d   :  { %v1590_v23 = vpop.f32.mrf.mxu2 }
 0x24e   :  { %v1591_v4 = vadd.f32 %v1590_v23, %v5959_v61  ;;  %v1639_v5 = vpop.f32.mrf.mxu3  ;;  %v4671_v23 = vld [vmem:[#allocation7 + $0x160] sm:$0xf] }
 0x250   :  { %v6051_v9 = vadd.f32 %v1639_v5, %v1591_v4  ;;  %v5239_v4 = vld [vmem:[#allocation7 + $0x164] sm:$0xf0] }
 0x251   :  { %v4672_v5 = vor.u32 %v5239_v4, %v4671_v23  ;;  %v5237_v23 = vld [vmem:[#allocation7 + $0x144] sm:$0xf0] }
 0x252   :  { %v1714_v19 = vpop.f32.mrf.mxu1 }
 0x253   :  { %2215 = vmatpush.bf16.msrb.mxu2 %v4672_v5 }
 0x255   :  { %v6055_v6 = vpop.f32.mrf.mxu2 }
 0x256   :  { %v6057_v36 = vpop.f32.mrf.mxu3 }
 0x257   :  { %2216 = vmatpush.bf16.msrb.mxu2 %v4668_v7 }
 0x25a   :  { %1790 = vmatmul.bf16.gmra.mxu2 %v5855_v26  ;;  %2065 = vmatmul.bf16.gmra.mxu0 %v5993_v33  ;;  %v1717_v33 = vpop.f32.mrf.mxu1 }
 0x25b   :  { %1839 = vmatmul.bf16.gmra.mxu3 %v5857_v24 }
 0x25d   :  { %v1595_v61 = vpop.f32.mrf.mxu2 }
 0x25e   :  { %v1596_v63 = vadd.f32 %v1595_v61, %v5974_v18  ;;  %v1644_v39 = vpop.f32.mrf.mxu3 }
 0x260   :  { %v6063_v14 = vadd.f32 %v1644_v39, %v1596_v63 }
 0x262   :  { %v1719_v27 = vpop.f32.mrf.mxu1 }
 0x265   :  { %v6065_v29 = vpop.f32.mrf.mxu2 }
 0x266   :  { %v6067_v17 = vpop.f32.mrf.mxu3 }
 0x26a   :  { %1795 = vmatmul.bf16.gmra.mxu2 %v5869_v52  ;;  %2070 = vmatmul.bf16.gmra.mxu0 %v6002_v41  ;;  %v1722_v55 = vpop.f32.mrf.mxu1 }
 0x26b   :  { %1844 = vmatmul.bf16.gmra.mxu3 %v5871_v10  ;;  %v1713_v10 = vadd.f32 %v1712_v31, %v6005_v44  ;;  %v1718_v44 = vadd.f32 %v1717_v33, %v6014_v22  ;;  %v1723_v22 = vadd.f32 %v1722_v55, %v6023_v32 }
 0x26d   :  { %v1600_v26 = vpop.f32.mrf.mxu2 }
 0x26e   :  { %v1601_v24 = vadd.f32 %v1600_v26, %v5989_v60  ;;  %v1649_v18 = vpop.f32.mrf.mxu3  ;;  %v1715_v60 = vadd.f32 %v1714_v19, %v6010_v3  ;;  %v1720_v3 = vadd.f32 %v1719_v27, %v6019_v11  ;;  %v1683_v26 = vpop.f32.mrf.mxu0 }
 0x270   :  { %v6073_v38 = vadd.f32 %v1649_v18, %v1601_v24 }
 0x272   :  { %v1724_v59 = vpop.f32.mrf.mxu1 }
 0x275   :  { %v6075_v1 = vpop.f32.mrf.mxu2 }
 0x276   :  { %v6077_v54 = vpop.f32.mrf.mxu3  ;;  %v1685_v27 = vpop.f32.mrf.mxu0 }
 0x27a   :  { %v1727_v62 = vpop.f32.mrf.mxu1 }
 0x27b   :  { %v1728_v55 = vadd.f32 %v1727_v62, %v6032_v43  ;;  %v4659_v43 = vld [vmem:[#allocation7 + $0x130] sm:$0xf]  ;;  %v5236_v62 = vld [vmem:[#allocation7 + $0x134] sm:$0xf0] }
 0x27c   :  { %v4660_v7 = vor.u32 %v5236_v62, %v4659_v43 }
 0x27d   :  { %v1761_v52 = vpop.f32.mrf.mxu2 }
 0x27e   :  { %v1810_v41 = vpop.f32.mrf.mxu3  ;;  %v1762_v37 = vadd.f32 %v1761_v52, %v1713_v10 }
 0x280   :  { %v1811_v15 = vadd.f32 %v1810_v41, %v1762_v37  ;;  %v1725_v37 = vadd.f32 %v1724_v59, %v6028_v2  ;;  %v1490_v2 = vadd.f32 %v5951_v47, %v5882_v16  ;;  %v1684_v47 = vadd.f32 %v1683_v26, %v6041_v56 }
 0x282   :  { %v1851_v13 = vmax.f32 %v1811_v15, 0.0  ;;  %v1729_v11 = vpop.f32.mrf.mxu1 }
 0x285   :  { %v1763_v21 = vpop.f32.mrf.mxu2 }
 0x286   :  { %v1764_v48 = vadd.f32 %v1763_v21, %v1715_v60  ;;  %v1812_v28 = vpop.f32.mrf.mxu3 }
 0x288   :  { %v1813_v30 = vadd.f32 %v1812_v28, %v1764_v48 }
 0x28a   :  { %v1853_v45 = vmax.f32 %v1813_v30, 0.0  ;;  %v1732_v4 = vpop.f32.mrf.mxu1 }
 0x28c   :  { %v1916_v58 = vpack.c.bf16 %v1853_v45, %v1851_v13  ;;  %v4663_v45 = vld [vmem:[#allocation7 + $0x140] sm:$0xf] }
 0x28d   :  { %v1766_v46 = vpop.f32.mrf.mxu2  ;;  %v4664_v5 = vor.u32 %v5237_v23, %v4663_v45  ;;  %v4655_v23 = vld [vmem:[#allocation7 + $0x120] sm:$0xf] }
 0x28e   :  { %v1815_v61 = vpop.f32.mrf.mxu3  ;;  %2084 = vmatmul.bf16.vlgmr.msra.gmra.mxu1 %v1916_v58  ;;  %v1767_v31 = vadd.f32 %v1766_v46, %v1718_v44  ;;  %v1688_v46 = vpop.f32.mrf.mxu0  ;;  %v1730_v44 = vadd.f32 %v1729_v11, %v6037_v51 }
 0x28f   :  { %2217 = vmatpush.bf16.msrb.mxu2 %v4664_v5 }
 0x290   :  { %v1816_v39 = vadd.f32 %v1815_v61, %v1767_v31 }
 0x292   :  { %v1855_v24 = vmax.f32 %v1816_v39, 0.0  ;;  %v1734_v31 = vpop.f32.mrf.mxu1 }
 0x293   :  { %2218 = vmatpush.bf16.msrb.mxu2 %v4660_v7 }
 0x295   :  { %v1768_v63 = vpop.f32.mrf.mxu2 }
 0x296   :  { %v1769_v35 = vadd.f32 %v1768_v63, %v1720_v3  ;;  %v1817_v50 = vpop.f32.mrf.mxu3  ;;  %v1539_v63 = vadd.f32 %v5953_v12, %v1490_v2 }
 0x298   :  { %v1818_v19 = vadd.f32 %v1817_v50, %v1769_v35 }
 0x29a   :  { %v1857_v18 = vmax.f32 %v1818_v19, 0.0  ;;  %v1690_v19 = vpop.f32.mrf.mxu0 }
 0x29c   :  { %v1918_v52 = vpack.c.bf16 %v1857_v18, %v1855_v24  ;;  %v1588_v24 = vadd.f32 %v6043_v0, %v1539_v63  ;;  %v1495_v0 = vadd.f32 %v5966_v57, %v5882_v16  ;;  %v1689_v57 = vadd.f32 %v1688_v46, %v6051_v9 }
 0x29d   :  { %v1771_v41 = vpop.f32.mrf.mxu2 }
 0x29e   :  { %v1820_v10 = vpop.f32.mrf.mxu3  ;;  %2089 = vmatmul.bf16.gmra.mxu1 %v1918_v52  ;;  %v1772_v33 = vadd.f32 %v1771_v41, %v1723_v22  ;;  %v1637_v51 = vadd.f32 %v6045_v49, %v1588_v24  ;;  %v1733_v22 = vadd.f32 %v1732_v4, %v1684_v47 }
 0x2a0   :  { %v1821_v21 = vadd.f32 %v1820_v10, %v1772_v33  ;;  %v1737_v10 = vpop.f32.mrf.mxu1  ;;  %v1686_v11 = vadd.f32 %v1685_v27, %v1637_v51  ;;  %v5235_v27 = vld [vmem:[#allocation7 + $0x124] sm:$0xf0]  ;;  %v4647_v51 = vld [vmem:[#allocation7 + $0x100] sm:$0xf] }
 0x2a1   :  { %v4656_v5 = vor.u32 %v5235_v27, %v4655_v23 }
 0x2a2   :  { %v1859_v30 = vmax.f32 %v1821_v21, 0.0  ;;  %v1693_v33 = vpop.f32.mrf.mxu0 }
 0x2a3   :  { %2219 = vmatpush.bf16.msrb.mxu2 %v4656_v5 }
 0x2a5   :  { %v1773_v60 = vpop.f32.mrf.mxu2 }
 0x2a6   :  { %v1774_v15 = vadd.f32 %v1773_v60, %v1725_v37  ;;  %v1822_v48 = vpop.f32.mrf.mxu3  ;;  %v1735_v60 = vadd.f32 %v1734_v31, %v1686_v11 }
 0x2a8   :  { %v1823_v28 = vadd.f32 %v1822_v48, %v1774_v15  ;;  %v1544_v15 = vadd.f32 %v5968_v42, %v1495_v0 }
 0x2aa   :  { %v1861_v13 = vmax.f32 %v1823_v28, 0.0  ;;  %v1593_v48 = vadd.f32 %v6055_v6, %v1544_v15  ;;  %v1695_v4 = vpop.f32.mrf.mxu0  ;;  %v1500_v6 = vadd.f32 %v5981_v20, %v5882_v16  ;;  %v1694_v20 = vadd.f32 %v1693_v33, %v6063_v14 }
 0x2ac   :  { %v1920_v58 = vpack.c.bf16 %v1861_v13, %v1859_v30  ;;  %v1739_v30 = vpop.f32.mrf.mxu1 }
 0x2ad   :  { %v1776_v61 = vpop.f32.mrf.mxu2 }
 0x2ae   :  { %v1825_v32 = vpop.f32.mrf.mxu3  ;;  %2094 = vmatmul.bf16.gmra.mxu1 %v1920_v58  ;;  %v1777_v59 = vadd.f32 %v1776_v61, %v1728_v55  ;;  %v1642_v58 = vadd.f32 %v6057_v36, %v1593_v48  ;;  %v1738_v55 = vadd.f32 %v1737_v10, %v1689_v57 }
 0x2b0   :  { %v1826_v39 = vadd.f32 %v1825_v32, %v1777_v59  ;;  %v1691_v2 = vadd.f32 %v1690_v19, %v1642_v58  ;;  %v5234_v19 = vld [vmem:[#allocation7 + $0x114] sm:$0xf0] }
 0x2b2   :  { %v1863_v8 = vmax.f32 %v1826_v39, 0.0  ;;  %v1740_v31 = vadd.f32 %v1739_v30, %v1691_v2  ;;  %v1549_v39 = vadd.f32 %v5983_v40, %v1500_v6 }
 0x2b5   :  { %v1778_v3 = vpop.f32.mrf.mxu2 }
 0x2b6   :  { %v1779_v35 = vadd.f32 %v1778_v3, %v1730_v44  ;;  %v1827_v50 = vpop.f32.mrf.mxu3  ;;  %v1742_v44 = vpop.f32.mrf.mxu1 }
 0x2b7   :  { %v1698_v3 = vpop.f32.mrf.mxu0 }
 0x2b8   :  { %v1828_v18 = vadd.f32 %v1827_v50, %v1779_v35  ;;  %v1598_v35 = vadd.f32 %v6065_v29, %v1549_v39 }
 0x2ba   :  { %v1865_v25 = vmax.f32 %v1828_v18, 0.0  ;;  %v1647_v43 = vadd.f32 %v6067_v17, %v1598_v35 }
 0x2bc   :  { %v1922_v52 = vpack.c.bf16 %v1865_v25, %v1863_v8  ;;  %v4651_v8 = vld [vmem:[#allocation7 + $0x110] sm:$0xf]  ;;  %v1696_v10 = vadd.f32 %v1695_v4, %v1647_v43 }
 0x2bd   :  { %v1781_v41 = vpop.f32.mrf.mxu2  ;;  %v4652_v25 = vor.u32 %v5234_v19, %v4651_v8 }
 0x2be   :  { %v1830_v12 = vpop.f32.mrf.mxu3  ;;  %2099 = vmatmul.bf16.gmra.mxu1 %v1922_v52  ;;  %v1782_v37 = vadd.f32 %v1781_v41, %v1733_v22  ;;  %v1744_v7 = vpop.f32.mrf.mxu1  ;;  %v5233_v52 = vld [vmem:[#allocation7 + $0x104] sm:$0xf0]  ;;  %v1505_v22 = vadd.f32 %v5996_v34, %v5882_v16 }
 0x2bf   :  { %2220 = vmatpush.bf16.msrb.mxu2 %v4652_v25  ;;  %v1700_v41 = vpop.f32.mrf.mxu0  ;;  %v4648_v29 = vor.u32 %v5233_v52, %v4647_v51  ;;  %v1745_v14 = vadd.f32 %v1744_v7, %v1696_v10 }
 0x2c0   :  { %v1831_v56 = vadd.f32 %v1830_v12, %v1782_v37  ;;  %v1743_v12 = vadd.f32 %v1742_v44, %v1694_v20  ;;  %v1554_v17 = vadd.f32 %v6053_v53, %v1505_v22  ;;  %v4691_v44 = vld [vmem:[#allocation7 + $0x1b0] sm:$0xf] }
 0x2c2   :  { %v1867_v13 = vmax.f32 %v1831_v56, 0.0  ;;  %v1603_v15 = vadd.f32 %v6075_v1, %v1554_v17 }
 0x2c3   :  { %2221 = vmatpush.bf16.msrb.mxu2 %v4648_v29  ;;  %v4687_v29 = vld [vmem:[#allocation7 + $0x1a0] sm:$0xf] }
 0x2c4   :  { %v1652_v30 = vadd.f32 %v6077_v54, %v1603_v15 }
 0x2c5   :  { %v1783_v21 = vpop.f32.mrf.mxu2 }
 0x2c6   :  { %v1784_v26 = vadd.f32 %v1783_v21, %v1735_v60  ;;  %v1832_v49 = vpop.f32.mrf.mxu3  ;;  %v1747_v21 = vpop.f32.mrf.mxu1  ;;  %v1701_v53 = vadd.f32 %v1700_v41, %v1652_v30 }
 0x2c8   :  { %v1833_v28 = vadd.f32 %v1832_v49, %v1784_v26  ;;  %v2036_v26 = vpop.f32.mrf.mxu0 }
 0x2ca   :  { %v1869_v45 = vmax.f32 %v1833_v28, 0.0  ;;  %v1699_v28 = vadd.f32 %v1698_v3, %v6073_v38 }
 0x2cc   :  { %v1924_v61 = vpack.c.bf16 %v1869_v45, %v1867_v13  ;;  %v1748_v45 = vadd.f32 %v1747_v21, %v1699_v28 }
 0x2cd   :  { %v1786_v32 = vpop.f32.mrf.mxu2 }
 0x2ce   :  { %v1835_v42 = vpop.f32.mrf.mxu3  ;;  %2104 = vmatmul.bf16.gmra.mxu1 %v1924_v61  ;;  %v1787_v59 = vadd.f32 %v1786_v32, %v1738_v55  ;;  %v1749_v23 = vpop.f32.mrf.mxu1 }
 0x2cf   :  { %v1750_v5 = vadd.f32 %v1749_v23, %v1701_v53 }
 0x2d0   :  { %v1836_v9 = vadd.f32 %v1835_v42, %v1787_v59  ;;  %v2038_v4 = vpop.f32.mrf.mxu0  ;;  %v6111_v59 = vld [vmem:[#allocation10 + $0x1] ss:$0 sm:$0xff] }
 0x2d2   :  { %v1871_v24 = vmax.f32 %v1836_v9, 0.0  ;;  %v2039_v9 = vadd.f32 %v2038_v4, %v6111_v59  ;;  %v5242_v4 = vld [vmem:[#allocation7 + $0x194] sm:$0xf0] }
 0x2d5   :  { %v1788_v63 = vpop.f32.mrf.mxu2 }
 0x2d6   :  { %v1789_v46 = vadd.f32 %v1788_v63, %v1740_v31  ;;  %v1837_v36 = vpop.f32.mrf.mxu3  ;;  %v5244_v31 = vld [vmem:[#allocation7 + $0x1b4] sm:$0xf0]  ;;  %v2037_v63 = vadd.f32 %v2036_v26, %v6111_v59 }
 0x2d7   :  { %v4692_v3 = vor.u32 %v5244_v31, %v4691_v44 }
 0x2d8   :  { %v1838_v50 = vadd.f32 %v1837_v36, %v1789_v46  ;;  %v2041_v2 = vpop.f32.mrf.mxu0 }
 0x2d9   :  { %2349 = vmatpush.bf16.msrb.mxu3 %v4692_v3  ;;  %v2042_v25 = vadd.f32 %v2041_v2, %v6111_v59 }
 0x2da   :  { %v1873_v18 = vmax.f32 %v1838_v50, 0.0 }
 0x2dc   :  { %v1926_v62 = vpack.c.bf16 %v1873_v18, %v1871_v24 }
 0x2dd   :  { %v1791_v47 = vpop.f32.mrf.mxu2 }
 0x2de   :  { %v1840_v40 = vpop.f32.mrf.mxu3  ;;  %2109 = vmatmul.bf16.gmra.mxu1 %v1926_v62  ;;  %v1792_v11 = vadd.f32 %v1791_v47, %v1743_v12  ;;  %v5243_v12 = vld [vmem:[#allocation7 + $0x1a4] sm:$0xf0] }
 0x2df   :  { %v4688_v22 = vor.u32 %v5243_v12, %v4687_v29 }
 0x2e0   :  { %v1841_v0 = vadd.f32 %v1840_v40, %v1792_v11  ;;  %v2043_v54 = vpop.f32.mrf.mxu0 }
 0x2e1   :  { %v2044_v20 = vadd.f32 %v2043_v54, %v6111_v59  ;;  %2350 = vmatpush.bf16.msrb.mxu3 %v4688_v22 }
 0x2e2   :  { %v1875_v49 = vmax.f32 %v1841_v0, 0.0 }
 0x2e5   :  { %v1793_v33 = vpop.f32.mrf.mxu2 }
 0x2e6   :  { %v1794_v37 = vadd.f32 %v1793_v33, %v1745_v14  ;;  %v1842_v60 = vpop.f32.mrf.mxu3 }
 0x2e8   :  { %v1843_v56 = vadd.f32 %v1842_v60, %v1794_v37  ;;  %v2046_v39 = vpop.f32.mrf.mxu0 }
 0x2e9   :  { %v2047_v11 = vadd.f32 %v2046_v39, %v6111_v59 }
 0x2ea   :  { %v1877_v48 = vmax.f32 %v1843_v56, 0.0 }
 0x2ec   :  { %v1928_v16 = vpack.c.bf16 %v1877_v48, %v1875_v49 }
 0x2ed   :  { %v1796_v34 = vpop.f32.mrf.mxu2 }
 0x2ee   :  { %v1845_v13 = vpop.f32.mrf.mxu3  ;;  %2114 = vmatmul.bf16.gmra.mxu1 %v1928_v16  ;;  %v1797_v27 = vadd.f32 %v1796_v34, %v1748_v45 }
 0x2f0   :  { %v1846_v1 = vadd.f32 %v1845_v13, %v1797_v27  ;;  %v2048_v8 = vpop.f32.mrf.mxu0  ;;  %v4683_v27 = vld [vmem:[#allocation7 + $0x190] sm:$0xf] }
 0x2f1   :  { %v2049_v14 = vadd.f32 %v2048_v8, %v6111_v59 }
 0x2f2   :  { %v1879_v42 = vmax.f32 %v1846_v1, 0.0 }
 0x2f5   :  { %v1798_v57 = vpop.f32.mrf.mxu2 }
 0x2f6   :  { %v1799_v58 = vadd.f32 %v1798_v57, %v1750_v5  ;;  %v1847_v61 = vpop.f32.mrf.mxu3  ;;  %v4684_v5 = vor.u32 %v5242_v4, %v4683_v27 }
 0x2f8   :  { %v1848_v32 = vadd.f32 %v1847_v61, %v1799_v58  ;;  %v2051_v47 = vpop.f32.mrf.mxu0  ;;  %2351 = vmatpush.bf16.msrb.mxu3 %v4684_v5 }
 0x2f9   :  { %v2052_v26 = vadd.f32 %v2051_v47, %v6111_v59 }
 0x2fa   :  { %v1881_v55 = vmax.f32 %v1848_v32, 0.0 }
 0x2fc   :  { %v1930_v38 = vpack.c.bf16 %v1881_v55, %v1879_v42 }
 0x2fe   :  { %2119 = vmatmul.bf16.gmra.mxu1 %v1930_v38 }
 0x300   :  { %v2053_v10 = vpop.f32.mrf.mxu0 }
 0x301   :  { %v2054_v49 = vadd.f32 %v2053_v10, %v6111_v59 }
 0x308   :  { %v2056_v15 = vpop.f32.mrf.mxu0 }
 0x309   :  { %v2057_v57 = vadd.f32 %v2056_v15, %v6111_v59 }
 0x30b   :  { %v2085_v6 = vpop.f32.mrf.mxu1 }
 0x30c   :  { %v2086_v46 = vadd.f32 %v2085_v6, %v2037_v63 }
 0x30e   :  { %v2125_v50 = vmax.f32 %v2086_v46, 0.0 }
 0x310   :  { %v2058_v28 = vpop.f32.mrf.mxu0 }
 0x311   :  { %v2059_v1 = vadd.f32 %v2058_v28, %v6111_v59 }
 0x313   :  { %v2087_v36 = vpop.f32.mrf.mxu1 }
 0x314   :  { %v2088_v35 = vadd.f32 %v2087_v36, %v2039_v9 }
 0x316   :  { %v2126_v24 = vmax.f32 %v2088_v35, 0.0  ;;  %v4679_v35 = vld [vmem:[#allocation7 + $0x180] sm:$0xf] }
 0x318   :  { %v2158_v18 = vpack.c.bf16 %v2126_v24, %v2125_v50  ;;  %v2061_v23 = vpop.f32.mrf.mxu0  ;;  %v5241_v50 = vld [vmem:[#allocation7 + $0x184] sm:$0xf0] }
 0x319   :  { %v2062_v6 = vadd.f32 %v2061_v23, %v6111_v59  ;;  %v4680_v8 = vor.u32 %v5241_v50, %v4679_v35 }
 0x31a   :  { %2222 = vmatmul.bf16.vlgmr.msrb.gmra.mxu2 %v2158_v18 }
 0x31b   :  { %v2090_v19 = vpop.f32.mrf.mxu1  ;;  %2352 = vmatpush.bf16.msrb.mxu3 %v4680_v8 }
 0x31c   :  { %v2091_v43 = vadd.f32 %v2090_v19, %v2042_v25 }
 0x31e   :  { %v2127_v40 = vmax.f32 %v2091_v43, 0.0 }
 0x320   :  { %v2063_v38 = vpop.f32.mrf.mxu0 }
 0x321   :  { %v2064_v31 = vadd.f32 %v2063_v38, %v6111_v59 }
 0x323   :  { %v2092_v62 = vpop.f32.mrf.mxu1 }
 0x324   :  { %v2093_v7 = vadd.f32 %v2092_v62, %v2044_v20 }
 0x326   :  { %v2128_v51 = vmax.f32 %v2093_v7, 0.0 }
 0x328   :  { %v2159_v52 = vpack.c.bf16 %v2128_v51, %v2127_v40  ;;  %v2066_v44 = vpop.f32.mrf.mxu0 }
 0x329   :  { %v2067_v19 = vadd.f32 %v2066_v44, %v6111_v59 }
 0x32a   :  { %2227 = vmatmul.bf16.gmra.mxu2 %v2159_v52 }
 0x32b   :  { %v2095_v41 = vpop.f32.mrf.mxu1 }
 0x32c   :  { %v2096_v33 = vadd.f32 %v2095_v41, %v2047_v11 }
 0x32e   :  { %v2129_v37 = vmax.f32 %v2096_v33, 0.0 }
 0x330   :  { %v2068_v24 = vpop.f32.mrf.mxu0 }
 0x331   :  { %v2069_v25 = vadd.f32 %v2068_v24, %v6111_v59 }
 0x333   :  { %v2097_v17 = vpop.f32.mrf.mxu1 }
 0x334   :  { %v2098_v0 = vadd.f32 %v2097_v17, %v2049_v14 }
 0x336   :  { %v2130_v60 = vmax.f32 %v2098_v0, 0.0 }
 0x338   :  { %v2160_v21 = vpack.c.bf16 %v2130_v60, %v2129_v37  ;;  %v2071_v7 = vpop.f32.mrf.mxu0  ;;  %v4707_v37 = vld [vmem:[#allocation7 + $0x1d0] sm:$0xf]  ;;  %v5246_v60 = vld [vmem:[#allocation7 + $0x1d4] sm:$0xf0] }
 0x339   :  { %v2072_v29 = vadd.f32 %v2071_v7, %v6111_v59  ;;  %v4708_v15 = vor.u32 %v5246_v60, %v4707_v37 }
 0x33a   :  { %2232 = vmatmul.bf16.gmra.mxu2 %v2160_v21  ;;  %v6129_v21 = vld [vmem:[#allocation10 + $0x2] ss:$0 sm:$0xff] }
 0x33b   :  { %v2100_v56 = vpop.f32.mrf.mxu1  ;;  %2466 = vmatpush.bf16.msrb.mxu0 %v4708_v15  ;;  %v2287_v15 = vld [vmem:[#allocation10 + $0x3] ss:$0 sm:$0xff] }
 0x33c   :  { %v2101_v48 = vadd.f32 %v2100_v56, %v2052_v26 }
 0x33e   :  { %v2131_v34 = vmax.f32 %v2101_v48, 0.0 }
 0x340   :  { %v2073_v41 = vpop.f32.mrf.mxu0 }
 0x341   :  { %v2074_v12 = vadd.f32 %v2073_v41, %v6111_v59 }
 0x343   :  { %v2102_v30 = vpop.f32.mrf.mxu1 }
 0x344   :  { %v2103_v16 = vadd.f32 %v2102_v30, %v2054_v49 }
 0x346   :  { %v2132_v13 = vmax.f32 %v2103_v16, 0.0 }
 0x348   :  { %v2161_v45 = vpack.c.bf16 %v2132_v13, %v2131_v34 }
 0x34a   :  { %2237 = vmatmul.bf16.gmra.mxu2 %v2161_v45 }
 0x34b   :  { %v2105_v53 = vpop.f32.mrf.mxu1 }
 0x34c   :  { %v2106_v58 = vadd.f32 %v2105_v53, %v2057_v57 }
 0x34e   :  { %v2133_v42 = vmax.f32 %v2106_v58, 0.0 }
 0x353   :  { %v2107_v61 = vpop.f32.mrf.mxu1 }
 0x354   :  { %v2108_v32 = vadd.f32 %v2107_v61, %v2059_v1 }
 0x356   :  { %v2134_v55 = vmax.f32 %v2108_v32, 0.0 }
 0x358   :  { %v2162_v2 = vpack.c.bf16 %v2134_v55, %v2133_v42 }
 0x35a   :  { %2242 = vmatmul.bf16.gmra.mxu2 %v2162_v2 }
 0x35b   :  { %v2110_v54 = vpop.f32.mrf.mxu1 }
 0x35c   :  { %v2111_v3 = vadd.f32 %v2110_v54, %v2062_v6 }
 0x35e   :  { %v2135_v9 = vmax.f32 %v2111_v3, 0.0  ;;  %v5245_v3 = vld [vmem:[#allocation7 + $0x1c4] sm:$0xf0] }
 0x363   :  { %v2112_v63 = vpop.f32.mrf.mxu1 }
 0x364   :  { %v2113_v39 = vadd.f32 %v2112_v63, %v2064_v31  ;;  %v4703_v31 = vld [vmem:[#allocation7 + $0x1c0] sm:$0xf] }
 0x365   :  { %v4704_v63 = vor.u32 %v5245_v3, %v4703_v31 }
 0x366   :  { %v2136_v46 = vmax.f32 %v2113_v39, 0.0 }
 0x367   :  { %2467 = vmatpush.bf16.msrb.mxu0 %v4704_v63 }
 0x368   :  { %v2163_v36 = vpack.c.bf16 %v2136_v46, %v2135_v9 }
 0x36a   :  { %2247 = vmatmul.bf16.gmra.mxu2 %v2163_v36 }
 0x36b   :  { %v2115_v18 = vpop.f32.mrf.mxu1 }
 0x36c   :  { %v2116_v20 = vadd.f32 %v2115_v18, %v2067_v19 }
 0x36e   :  { %v2137_v47 = vmax.f32 %v2116_v20, 0.0 }
 0x373   :  { %v2117_v43 = vpop.f32.mrf.mxu1 }
 0x374   :  { %v2118_v62 = vadd.f32 %v2117_v43, %v2069_v25 }
 0x376   :  { %v2138_v40 = vmax.f32 %v2118_v62, 0.0 }
 0x378   :  { %v2164_v51 = vpack.c.bf16 %v2138_v40, %v2137_v47 }
 0x37a   :  { %2252 = vmatmul.bf16.gmra.mxu2 %v2164_v51 }
 0x37b   :  { %v2120_v52 = vpop.f32.mrf.mxu1 }
 0x37c   :  { %v2121_v10 = vadd.f32 %v2120_v52, %v2072_v29 }
 0x37e   :  { %v2139_v14 = vmax.f32 %v2121_v10, 0.0 }
 0x383   :  { %v2122_v22 = vpop.f32.mrf.mxu1 }
 0x384   :  { %v2123_v11 = vadd.f32 %v2122_v22, %v2074_v12 }
 0x386   :  { %v2140_v33 = vmax.f32 %v2123_v11, 0.0 }
 0x388   :  { %v2165_v17 = vpack.c.bf16 %v2140_v33, %v2139_v14 }
 0x38a   :  { %2257 = vmatmul.bf16.gmra.mxu2 %v2165_v17  ;;  %v4719_v17 = vld [vmem:[#allocation7 + $0x1e0] sm:$0xf] }
 0x39d   :  { %v2223_v0 = vpop.f32.mrf.mxu2 }
 0x39e   :  { %v2224_v56 = vadd.f32 %v2223_v0, %v6129_v21  ;;  %v5247_v0 = vld [vmem:[#allocation7 + $0x1e4] sm:$0xf0] }
 0x39f   :  { %v4720_v37 = vor.u32 %v5247_v0, %v4719_v17  ;;  %v6163_v17 = vld [vmem:[#allocation10 + $0x4] ss:$0 sm:$0xff] }
 0x3a0   :  { %v2263_v59 = vmax.f32 %v2224_v56, 0.0 }
 0x3a1   :  { %2574 = vmatpush.bf16.msrb.mxu1 %v4720_v37 }
 0x3a5   :  { %v2225_v26 = vpop.f32.mrf.mxu2 }
 0x3a6   :  { %v2226_v49 = vadd.f32 %v2225_v26, %v6129_v21 }
 0x3a8   :  { %v2264_v48 = vmax.f32 %v2226_v49, 0.0 }
 0x3aa   :  { %v2288_v28 = vpack.c.bf16 %v2264_v48, %v2263_v59 }
 0x3ac   :  { %4693 = vmatmul.msk.bf16.vlgmr.msrb.gmra.mxu3 %vm2320_vm0, %v2288_v28 }
 0x3ad   :  { %v2228_v30 = vpop.f32.mrf.mxu2 }
 0x3ae   :  { %v2229_v16 = vadd.f32 %v2228_v30, %v6129_v21 }
 0x3b0   :  { %v2265_v45 = vmax.f32 %v2229_v16, 0.0 }
 0x3b5   :  { %v2230_v34 = vpop.f32.mrf.mxu2 }
 0x3b6   :  { %v2231_v13 = vadd.f32 %v2230_v34, %v6129_v21 }
 0x3b8   :  { %v2266_v53 = vmax.f32 %v2231_v13, 0.0 }
 0x3ba   :  { %v2289_v23 = vpack.c.bf16 %v2266_v53, %v2265_v45 }
 0x3bc   :  { %4694 = vmatmul.msk.bf16.gmra.mxu3 %vm2320_vm0, %v2289_v23 }
 0x3bd   :  { %v2233_v27 = vpop.f32.mrf.mxu2 }
 0x3be   :  { %v2234_v4 = vadd.f32 %v2233_v27, %v6129_v21 }
 0x3c0   :  { %v2267_v1 = vmax.f32 %v2234_v4, 0.0 }
 0x3c5   :  { %v2235_v5 = vpop.f32.mrf.mxu2 }
 0x3c6   :  { %v2236_v57 = vadd.f32 %v2235_v5, %v6129_v21 }
 0x3c8   :  { %v2268_v58 = vmax.f32 %v2236_v57, 0.0 }
 0x3ca   :  { %v2290_v61 = vpack.c.bf16 %v2268_v58, %v2267_v1 }
 0x3cc   :  { %4695 = vmatmul.msk.bf16.gmra.mxu3 %vm2320_vm0, %v2290_v61 }
 0x3cd   :  { %v2238_v32 = vpop.f32.mrf.mxu2 }
 0x3ce   :  { %v2239_v42 = vadd.f32 %v2238_v32, %v6129_v21 }
 0x3d0   :  { %v2269_v2 = vmax.f32 %v2239_v42, 0.0 }
 0x3d5   :  { %v2240_v55 = vpop.f32.mrf.mxu2 }
 0x3d6   :  { %v2241_v38 = vadd.f32 %v2240_v55, %v6129_v21 }
 0x3d8   :  { %v2270_v54 = vmax.f32 %v2241_v38, 0.0 }
 0x3da   :  { %v2291_v6 = vpack.c.bf16 %v2270_v54, %v2269_v2 }
 0x3dc   :  { %4696 = vmatmul.msk.bf16.gmra.mxu3 %vm2320_vm0, %v2291_v6 }
 0x3dd   :  { %v2243_v44 = vpop.f32.mrf.mxu2 }
 0x3de   :  { %v2244_v39 = vadd.f32 %v2243_v44, %v6129_v21 }
 0x3e0   :  { %v2271_v36 = vmax.f32 %v2244_v39, 0.0 }
 0x3e5   :  { %v2245_v9 = vpop.f32.mrf.mxu2 }
 0x3e6   :  { %v2246_v46 = vadd.f32 %v2245_v9, %v6129_v21 }
 0x3e8   :  { %v2272_v35 = vmax.f32 %v2246_v46, 0.0 }
 0x3ea   :  { %v2292_v50 = vpack.c.bf16 %v2272_v35, %v2271_v36 }
 0x3ec   :  { %4697 = vmatmul.msk.bf16.gmra.mxu3 %vm2320_vm0, %v2292_v50 }
 0x3ed   :  { %v2248_v24 = vpop.f32.mrf.mxu2 }
 0x3ee   :  { %v2249_v18 = vadd.f32 %v2248_v24, %v6129_v21 }
 0x3f0   :  { %v2273_v25 = vmax.f32 %v2249_v18, 0.0 }
 0x3f5   :  { %v2250_v8 = vpop.f32.mrf.mxu2 }
 0x3f6   :  { %v2251_v19 = vadd.f32 %v2250_v8, %v6129_v21 }
 0x3f8   :  { %v2274_v20 = vmax.f32 %v2251_v19, 0.0 }
 0x3fa   :  { %v2293_v43 = vpack.c.bf16 %v2274_v20, %v2273_v25 }
 0x3fc   :  { %4698 = vmatmul.msk.bf16.gmra.mxu3 %vm2320_vm0, %v2293_v43 }
 0x3fd   :  { %v2253_v62 = vpop.f32.mrf.mxu2 }
 0x3fe   :  { %v2254_v7 = vadd.f32 %v2253_v62, %v6129_v21 }
 0x400   :  { %v2275_v51 = vmax.f32 %v2254_v7, 0.0 }
 0x405   :  { %v2255_v47 = vpop.f32.mrf.mxu2 }
 0x406   :  { %v2256_v40 = vadd.f32 %v2255_v47, %v6129_v21 }
 0x408   :  { %v2276_v52 = vmax.f32 %v2256_v40, 0.0 }
 0x40a   :  { %v2294_v41 = vpack.c.bf16 %v2276_v52, %v2275_v51 }
 0x40c   :  { %4699 = vmatmul.msk.bf16.gmra.mxu3 %vm2320_vm0, %v2294_v41 }
 0x40d   :  { %v2258_v29 = vpop.f32.mrf.mxu2 }
 0x40e   :  { %v2259_v12 = vadd.f32 %v2258_v29, %v6129_v21 }
 0x410   :  { %v2277_v11 = vmax.f32 %v2259_v12, 0.0 }
 0x415   :  { %v2260_v10 = vpop.f32.mrf.mxu2 }
 0x416   :  { %v2261_v22 = vadd.f32 %v2260_v10, %v6129_v21 }
 0x418   :  { %v2278_v14 = vmax.f32 %v2261_v22, 0.0  ;;  %v4735_v22 = vld [vmem:[#allocation7 + $0x200] sm:$0xf] }
 0x41a   :  { %v2295_v33 = vpack.c.bf16 %v2278_v14, %v2277_v11  ;;  %v5249_v11 = vld [vmem:[#allocation7 + $0x204] sm:$0xf0] }
 0x41b   :  { %v4736_v14 = vor.u32 %v5249_v11, %v4735_v22  ;;  %v4759_v22 = vld [vmem:[#allocation7 + $0x240] sm:$0xf]  ;;  %v5253_v11 = vld [vmem:[#allocation7 + $0x244] sm:$0xf0] }
 0x41c   :  { %4700 = vmatmul.msk.bf16.gmra.mxu3 %vm2320_vm0, %v2295_v33 }
 0x41d   :  { %2687 = vmatpush.bf16.msra.mxu2 %v4736_v14  ;;  %v6189_v14 = vld [vmem:[#allocation10 + $0x5] ss:$0 sm:$0xff] }
 0x42f   :  { %v2354_v60 = vpop.f32.mrf.mxu3 }
 0x430   :  { %v2355_v56 = vadd.f32 %v2354_v60, %v2287_v15 }
 0x432   :  { %v2394_v59 = vmax.f32 %v2355_v56, 0.0 }
 0x437   :  { %v2356_v26 = vpop.f32.mrf.mxu3 }
 0x438   :  { %v2357_v49 = vadd.f32 %v2356_v26, %v2287_v15 }
 0x43a   :  { %v2395_v48 = vmax.f32 %v2357_v49, 0.0 }
 0x43c   :  { %v2415_v28 = vpack.c.bf16 %v2395_v48, %v2394_v59 }
 0x43e   :  { %4709 = vmatmul.msk.bf16.vlgmr.msrb.gmra.mxu0 %vm2435_vm1, %v2415_v28 }
 0x43f   :  { %v2359_v21 = vpop.f32.mrf.mxu3 }
 0x440   :  { %v2360_v30 = vadd.f32 %v2359_v21, %v2287_v15 }
 0x442   :  { %v2396_v13 = vmax.f32 %v2360_v30, 0.0 }
 0x447   :  { %v2361_v16 = vpop.f32.mrf.mxu3 }
 0x448   :  { %v2362_v34 = vadd.f32 %v2361_v16, %v2287_v15 }
 0x44a   :  { %v2397_v45 = vmax.f32 %v2362_v34, 0.0 }
 0x44c   :  { %v2416_v53 = vpack.c.bf16 %v2397_v45, %v2396_v13 }
 0x44e   :  { %4710 = vmatmul.msk.bf16.gmra.mxu0 %vm2435_vm1, %v2416_v53 }
 0x44f   :  { %v2364_v23 = vpop.f32.mrf.mxu3 }
 0x450   :  { %v2365_v27 = vadd.f32 %v2364_v23, %v2287_v15 }
 0x452   :  { %v2398_v57 = vmax.f32 %v2365_v27, 0.0 }
 0x457   :  { %v2366_v4 = vpop.f32.mrf.mxu3 }
 0x458   :  { %v2367_v5 = vadd.f32 %v2366_v4, %v2287_v15 }
 0x45a   :  { %v2399_v1 = vmax.f32 %v2367_v5, 0.0 }
 0x45c   :  { %v2417_v58 = vpack.c.bf16 %v2399_v1, %v2398_v57 }
 0x45e   :  { %4711 = vmatmul.msk.bf16.gmra.mxu0 %vm2435_vm1, %v2417_v58 }
 0x45f   :  { %v2369_v61 = vpop.f32.mrf.mxu3 }
 0x460   :  { %v2370_v32 = vadd.f32 %v2369_v61, %v2287_v15 }
 0x462   :  { %v2400_v38 = vmax.f32 %v2370_v32, 0.0 }
 0x467   :  { %v2371_v42 = vpop.f32.mrf.mxu3 }
 0x468   :  { %v2372_v55 = vadd.f32 %v2371_v42, %v2287_v15 }
 0x46a   :  { %v2401_v2 = vmax.f32 %v2372_v55, 0.0  ;;  %v4731_v55 = vld [vmem:[#allocation7 + $0x1f0] sm:$0xf] }
 0x46c   :  { %v2418_v54 = vpack.c.bf16 %v2401_v2, %v2400_v38  ;;  %v5248_v38 = vld [vmem:[#allocation7 + $0x1f4] sm:$0xf0] }
 0x46d   :  { %v4732_v2 = vor.u32 %v5248_v38, %v4731_v55 }
 0x46e   :  { %4712 = vmatmul.msk.bf16.gmra.mxu0 %vm2435_vm1, %v2418_v54 }
 0x46f   :  { %v2374_v6 = vpop.f32.mrf.mxu3  ;;  %2688 = vmatpush.bf16.msra.mxu2 %v4732_v2 }
 0x470   :  { %v2375_v44 = vadd.f32 %v2374_v6, %v2287_v15 }
 0x472   :  { %v2402_v63 = vmax.f32 %v2375_v44, 0.0 }
 0x477   :  { %v2376_v31 = vpop.f32.mrf.mxu3 }
 0x478   :  { %v2377_v3 = vadd.f32 %v2376_v31, %v2287_v15 }
 0x47a   :  { %v2403_v39 = vmax.f32 %v2377_v3, 0.0 }
 0x47c   :  { %v2419_v9 = vpack.c.bf16 %v2403_v39, %v2402_v63 }
 0x47e   :  { %4713 = vmatmul.msk.bf16.gmra.mxu0 %vm2435_vm1, %v2419_v9 }
 0x47f   :  { %v2379_v46 = vpop.f32.mrf.mxu3 }
 0x480   :  { %v2380_v36 = vadd.f32 %v2379_v46, %v2287_v15 }
 0x482   :  { %v2404_v24 = vmax.f32 %v2380_v36, 0.0 }
 0x487   :  { %v2381_v35 = vpop.f32.mrf.mxu3 }
 0x488   :  { %v2382_v50 = vadd.f32 %v2381_v35, %v2287_v15 }
 0x48a   :  { %v2405_v18 = vmax.f32 %v2382_v50, 0.0 }
 0x48c   :  { %v2420_v8 = vpack.c.bf16 %v2405_v18, %v2404_v24 }
 0x48e   :  { %4714 = vmatmul.msk.bf16.gmra.mxu0 %vm2435_vm1, %v2420_v8 }
 0x48f   :  { %v2384_v19 = vpop.f32.mrf.mxu3 }
 0x490   :  { %v2385_v25 = vadd.f32 %v2384_v19, %v2287_v15 }
 0x492   :  { %v2406_v62 = vmax.f32 %v2385_v25, 0.0 }
 0x497   :  { %v2386_v20 = vpop.f32.mrf.mxu3 }
 0x498   :  { %v2387_v43 = vadd.f32 %v2386_v20, %v2287_v15 }
 0x49a   :  { %v2407_v7 = vmax.f32 %v2387_v43, 0.0 }
 0x49c   :  { %v2421_v47 = vpack.c.bf16 %v2407_v7, %v2406_v62 }
 0x49e   :  { %4715 = vmatmul.msk.bf16.gmra.mxu0 %vm2435_vm1, %v2421_v47 }
 0x49f   :  { %v2389_v40 = vpop.f32.mrf.mxu3 }
 0x4a0   :  { %v2390_v51 = vadd.f32 %v2389_v40, %v2287_v15 }
 0x4a2   :  { %v2408_v29 = vmax.f32 %v2390_v51, 0.0 }
 0x4a7   :  { %v2391_v52 = vpop.f32.mrf.mxu3 }
 0x4a8   :  { %v2392_v41 = vadd.f32 %v2391_v52, %v2287_v15 }
 0x4aa   :  { %v2409_v12 = vmax.f32 %v2392_v41, 0.0 }
 0x4ac   :  { %v2422_v10 = vpack.c.bf16 %v2409_v12, %v2408_v29 }
 0x4ae   :  { %4716 = vmatmul.msk.bf16.gmra.mxu0 %vm2435_vm1, %v2422_v10 }
 0x4bb   :  { %v2469_v33 = vpop.f32.mrf.mxu0 }
 0x4bc   :  { %v2470_v0 = vadd.f32 %v2469_v33, %v6163_v17  ;;  %v4760_v33 = vor.u32 %v5253_v11, %v4759_v22 }
 0x4be   :  { %v2509_v56 = vmax.f32 %v2470_v0, 0.0  ;;  %2815 = vmatpush.bf16.msra.mxu3 %v4760_v33 }
 0x4c3   :  { %v2471_v37 = vpop.f32.mrf.mxu0 }
 0x4c4   :  { %v2472_v60 = vadd.f32 %v2471_v37, %v6163_v17 }
 0x4c6   :  { %v2510_v26 = vmax.f32 %v2472_v60, 0.0 }
 0x4c8   :  { %v2528_v15 = vpack.c.bf16 %v2510_v26, %v2509_v56 }
 0x4ca   :  { %4721 = vmatmul.msk.bf16.vlgmr.msrb.gmra.mxu1 %vm2542_vm2, %v2528_v15 }
 0x4cb   :  { %v2474_v49 = vpop.f32.mrf.mxu0 }
 0x4cc   :  { %v2475_v59 = vadd.f32 %v2474_v49, %v6163_v17 }
 0x4ce   :  { %v2511_v21 = vmax.f32 %v2475_v59, 0.0 }
 0x4d3   :  { %v2476_v48 = vpop.f32.mrf.mxu0 }
 0x4d4   :  { %v2477_v28 = vadd.f32 %v2476_v48, %v6163_v17 }
 0x4d6   :  { %v2512_v30 = vmax.f32 %v2477_v28, 0.0 }
 0x4d8   :  { %v2529_v16 = vpack.c.bf16 %v2512_v30, %v2511_v21 }
 0x4da   :  { %4722 = vmatmul.msk.bf16.gmra.mxu1 %vm2542_vm2, %v2529_v16 }
 0x4db   :  { %v2479_v34 = vpop.f32.mrf.mxu0 }
 0x4dc   :  { %v2480_v13 = vadd.f32 %v2479_v34, %v6163_v17  ;;  %v4755_v34 = vld [vmem:[#allocation7 + $0x230] sm:$0xf] }
 0x4de   :  { %v2513_v23 = vmax.f32 %v2480_v13, 0.0  ;;  %v5252_v13 = vld [vmem:[#allocation7 + $0x234] sm:$0xf0] }
 0x4e3   :  { %v2481_v45 = vpop.f32.mrf.mxu0 }
 0x4e4   :  { %v2482_v53 = vadd.f32 %v2481_v45, %v6163_v17  ;;  %v4756_v45 = vor.u32 %v5252_v13, %v4755_v34  ;;  %v4819_v13 = vld [vmem:[#allocation7 + $0x2b0] sm:$0xf] }
 0x4e6   :  { %v2514_v27 = vmax.f32 %v2482_v53, 0.0  ;;  %2816 = vmatpush.bf16.msra.mxu3 %v4756_v45  ;;  %v5267_v45 = vld [vmem:[#allocation7 + $0x2b4] sm:$0xf0] }
 0x4e8   :  { %v2530_v4 = vpack.c.bf16 %v2514_v27, %v2513_v23 }
 0x4ea   :  { %4723 = vmatmul.msk.bf16.gmra.mxu1 %vm2542_vm2, %v2530_v4 }
 0x4eb   :  { %v2484_v5 = vpop.f32.mrf.mxu0 }
 0x4ec   :  { %v2485_v57 = vadd.f32 %v2484_v5, %v6163_v17 }
 0x4ee   :  { %v2515_v61 = vmax.f32 %v2485_v57, 0.0 }
 0x4f3   :  { %v2486_v1 = vpop.f32.mrf.mxu0 }
 0x4f4   :  { %v2487_v58 = vadd.f32 %v2486_v1, %v6163_v17 }
 0x4f6   :  { %v2516_v32 = vmax.f32 %v2487_v58, 0.0 }
 0x4f8   :  { %v2531_v42 = vpack.c.bf16 %v2516_v32, %v2515_v61 }
 0x4fa   :  { %4724 = vmatmul.msk.bf16.gmra.mxu1 %vm2542_vm2, %v2531_v42 }
 0x4fb   :  { %v2489_v54 = vpop.f32.mrf.mxu0 }
 0x4fc   :  { %v2490_v6 = vadd.f32 %v2489_v54, %v6163_v17  ;;  %v4751_v54 = vld [vmem:[#allocation7 + $0x220] sm:$0xf] }
 0x4fe   :  { %v2517_v3 = vmax.f32 %v2490_v6, 0.0  ;;  %v5251_v6 = vld [vmem:[#allocation7 + $0x224] sm:$0xf0] }
 0x503   :  { %v2491_v44 = vpop.f32.mrf.mxu0 }
 0x504   :  { %v2492_v31 = vadd.f32 %v2491_v44, %v6163_v17  ;;  %v4752_v44 = vor.u32 %v5251_v6, %v4751_v54  ;;  %v5264_v54 = vld [vmem:[#allocation7 + $0x2a4] sm:$0xf]  ;;  %v4813_v6 = vld [vmem:[#allocation7 + $0x2a8] sm:$0xf0] }
 0x506   :  { %v2518_v63 = vmax.f32 %v2492_v31, 0.0  ;;  %2817 = vmatpush.bf16.msra.mxu3 %v4752_v44  ;;  %v4816_v44 = vor.u32 %v5264_v54, %v4813_v6 }
 0x508   :  { %v2532_v39 = vpack.c.bf16 %v2518_v63, %v2517_v3 }
 0x50a   :  { %4725 = vmatmul.msk.bf16.gmra.mxu1 %vm2542_vm2, %v2532_v39 }
 0x50b   :  { %v2494_v9 = vpop.f32.mrf.mxu0 }
 0x50c   :  { %v2495_v46 = vadd.f32 %v2494_v9, %v6163_v17 }
 0x50e   :  { %v2519_v50 = vmax.f32 %v2495_v46, 0.0 }
 0x513   :  { %v2496_v36 = vpop.f32.mrf.mxu0 }
 0x514   :  { %v2497_v35 = vadd.f32 %v2496_v36, %v6163_v17 }
 0x516   :  { %v2520_v24 = vmax.f32 %v2497_v35, 0.0 }
 0x518   :  { %v2533_v18 = vpack.c.bf16 %v2520_v24, %v2519_v50 }
 0x51a   :  { %4726 = vmatmul.msk.bf16.gmra.mxu1 %vm2542_vm2, %v2533_v18 }
 0x51b   :  { %v2499_v8 = vpop.f32.mrf.mxu0 }
 0x51c   :  { %v2500_v19 = vadd.f32 %v2499_v8, %v6163_v17 }
 0x51e   :  { %v2521_v43 = vmax.f32 %v2500_v19, 0.0 }
 0x523   :  { %v2501_v25 = vpop.f32.mrf.mxu0 }
 0x524   :  { %v2502_v20 = vadd.f32 %v2501_v25, %v6163_v17  ;;  %v4747_v25 = vld [vmem:[#allocation7 + $0x210] sm:$0xf] }
 0x526   :  { %v2522_v62 = vmax.f32 %v2502_v20, 0.0  ;;  %v5250_v20 = vld [vmem:[#allocation7 + $0x214] sm:$0xf0] }
 0x528   :  { %v2534_v7 = vpack.c.bf16 %v2522_v62, %v2521_v43  ;;  %v4748_v62 = vor.u32 %v5250_v20, %v4747_v25 }
 0x52a   :  { %4727 = vmatmul.msk.bf16.gmra.mxu1 %vm2542_vm2, %v2534_v7  ;;  %2818 = vmatpush.bf16.msra.mxu3 %v4748_v62 }
 0x52b   :  { %v2504_v47 = vpop.f32.mrf.mxu0 }
 0x52c   :  { %v2505_v40 = vadd.f32 %v2504_v47, %v6163_v17 }
 0x52e   :  { %v2523_v41 = vmax.f32 %v2505_v40, 0.0 }
 0x533   :  { %v2506_v51 = vpop.f32.mrf.mxu0 }
 0x534   :  { %v2507_v52 = vadd.f32 %v2506_v51, %v6163_v17 }
 0x536   :  { %v2524_v29 = vmax.f32 %v2507_v52, 0.0 }
 0x538   :  { %v2535_v12 = vpack.c.bf16 %v2524_v29, %v2523_v41 }
 0x53a   :  { %4728 = vmatmul.msk.bf16.gmra.mxu1 %vm2542_vm2, %v2535_v12 }
 0x547   :  { %v2576_v10 = vpop.f32.mrf.mxu1 }
 0x548   :  { %v2577_v0 = vadd.f32 %v2576_v10, %v6189_v14 }
 0x54a   :  { %v2616_v56 = vmax.f32 %v2577_v0, 0.0 }
 0x54f   :  { %v2578_v37 = vpop.f32.mrf.mxu1 }
 0x550   :  { %v2579_v60 = vadd.f32 %v2578_v37, %v6189_v14 }
 0x552   :  { %v2617_v26 = vmax.f32 %v2579_v60, 0.0  ;;  %v4827_v60 = vld [vmem:[#allocation7 + $0x2c0] sm:$0xf] }
 0x554   :  { %v2637_v17 = vpack.c.bf16 %v2617_v26, %v2616_v56  ;;  %v5269_v56 = vld [vmem:[#allocation7 + $0x2c4] sm:$0xf0]  ;;  %v6215_v26 = vld [vmem:[#allocation10 + $0x6] ss:$0 sm:$0xff] }
 0x556   :  { %4737 = vmatmul.msk.bf16.vlgmr.msra.gmra.mxu2 %vm2435_vm1, %v2637_v17  ;;  %v4828_v17 = vor.u32 %v5269_v56, %v4827_v60 }
 0x557   :  { %v2581_v15 = vpop.f32.mrf.mxu1 }
 0x558   :  { %v2582_v49 = vadd.f32 %v2581_v15, %v6189_v14  ;;  %v5268_v15 = vld [vmem:[#allocation7 + $0x2c4] sm:$0xf]  ;;  %2987 = vmatpush.bf16.msra.mxu0 %v4828_v17  ;;  %v4787_v17 = vld [vmem:[#allocation7 + $0x270] sm:$0xf] }
 0x55a   :  { %v2618_v28 = vmax.f32 %v2582_v49, 0.0  ;;  %v4829_v49 = vld [vmem:[#allocation7 + $0x2c8] sm:$0xf0] }
 0x55f   :  { %v2583_v59 = vpop.f32.mrf.mxu1 }
 0x560   :  { %v2584_v48 = vadd.f32 %v2583_v59, %v6189_v14  ;;  %v4832_v59 = vor.u32 %v5268_v15, %v4829_v49  ;;  %v5259_v15 = vld [vmem:[#allocation7 + $0x274] sm:$0xf0] }
 0x561   :  { %v4788_v49 = vor.u32 %v5259_v15, %v4787_v17  ;;  %v5294_v15 = vld [vmem:[#allocation8 + $0xc4] sm:$0xf] }
 0x562   :  { %v2619_v21 = vmax.f32 %v2584_v48, 0.0  ;;  %3036 = vmatpush.bf16.msra.mxu1 %v4832_v59  ;;  %v5258_v59 = vld [vmem:[#allocation7 + $0x274] sm:$0xf] }
 0x564   :  { %v2638_v30 = vpack.c.bf16 %v2619_v21, %v2618_v28 }
 0x566   :  { %4738 = vmatmul.msk.bf16.gmra.mxu2 %vm2435_vm1, %v2638_v30 }
 0x567   :  { %v2586_v16 = vpop.f32.mrf.mxu1 }
 0x568   :  { %v2587_v53 = vadd.f32 %v2586_v16, %v6189_v14 }
 0x56a   :  { %v2620_v4 = vmax.f32 %v2587_v53, 0.0  ;;  %v4820_v53 = vor.u32 %v5267_v45, %v4819_v13  ;;  %v4779_v45 = vld [vmem:[#allocation7 + $0x260] sm:$0xf] }
 0x56c   :  { %2988 = vmatpush.bf16.msra.mxu0 %v4820_v53  ;;  %v5257_v53 = vld [vmem:[#allocation7 + $0x264] sm:$0xf0] }
 0x56f   :  { %v2588_v23 = vpop.f32.mrf.mxu1 }
 0x570   :  { %v2589_v27 = vadd.f32 %v2588_v23, %v6189_v14  ;;  %v5266_v23 = vld [vmem:[#allocation7 + $0x2b4] sm:$0xf] }
 0x572   :  { %v2621_v5 = vmax.f32 %v2589_v27, 0.0  ;;  %v4821_v27 = vld [vmem:[#allocation7 + $0x2b8] sm:$0xf0] }
 0x574   :  { %v2639_v57 = vpack.c.bf16 %v2621_v5, %v2620_v4  ;;  %v4824_v4 = vor.u32 %v5266_v23, %v4821_v27  ;;  %v5256_v23 = vld [vmem:[#allocation7 + $0x264] sm:$0xf] }
 0x576   :  { %4739 = vmatmul.msk.bf16.gmra.mxu2 %vm2435_vm1, %v2639_v57  ;;  %3037 = vmatpush.bf16.msra.mxu1 %v4824_v4  ;;  %v4780_v4 = vor.u32 %v5257_v53, %v4779_v45  ;;  %v4915_v45 = vld [vmem:[#allocation8 + $0xa0] sm:$0xf]  ;;  %v5292_v53 = vld [vmem:[#allocation8 + $0xac] sm:$0xf0] }
 0x577   :  { %v2591_v1 = vpop.f32.mrf.mxu1 }
 0x578   :  { %v2592_v58 = vadd.f32 %v2591_v1, %v6189_v14 }
 0x57a   :  { %v2622_v42 = vmax.f32 %v2592_v58, 0.0  ;;  %3038 = vmatpush.bf16.msra.mxu1 %v4816_v44  ;;  %v5254_v44 = vld [vmem:[#allocation7 + $0x254] sm:$0xf] }
 0x57f   :  { %v2593_v61 = vpop.f32.mrf.mxu1 }
 0x580   :  { %v2594_v32 = vadd.f32 %v2593_v61, %v6189_v14 }
 0x582   :  { %v2623_v55 = vmax.f32 %v2594_v32, 0.0 }
 0x584   :  { %v2640_v38 = vpack.c.bf16 %v2623_v55, %v2622_v42  ;;  %v4811_v55 = vld [vmem:[#allocation7 + $0x2a0] sm:$0xf] }
 0x586   :  { %4740 = vmatmul.msk.bf16.gmra.mxu2 %vm2435_vm1, %v2640_v38  ;;  %v5265_v38 = vld [vmem:[#allocation7 + $0x2a4] sm:$0xf0] }
 0x587   :  { %v2596_v2 = vpop.f32.mrf.mxu1 }
 0x588   :  { %v2597_v31 = vadd.f32 %v2596_v2, %v6189_v14  ;;  %v4812_v2 = vor.u32 %v5265_v38, %v4811_v55 }
 0x58a   :  { %v2624_v39 = vmax.f32 %v2597_v31, 0.0  ;;  %2989 = vmatpush.bf16.msra.mxu0 %v4812_v2 }
 0x58f   :  { %v2598_v3 = vpop.f32.mrf.mxu1 }
 0x590   :  { %v2599_v63 = vadd.f32 %v2598_v3, %v6189_v14 }
 0x592   :  { %v2625_v9 = vmax.f32 %v2599_v63, 0.0 }
 0x594   :  { %v2641_v46 = vpack.c.bf16 %v2625_v9, %v2624_v39 }
 0x596   :  { %4741 = vmatmul.msk.bf16.gmra.mxu2 %vm2435_vm1, %v2641_v46 }
 0x597   :  { %v2601_v36 = vpop.f32.mrf.mxu1 }
 0x598   :  { %v2602_v35 = vadd.f32 %v2601_v36, %v6189_v14 }
 0x59a   :  { %v2626_v18 = vmax.f32 %v2602_v35, 0.0  ;;  %v4803_v35 = vld [vmem:[#allocation7 + $0x290] sm:$0xf] }
 0x59f   :  { %v2603_v50 = vpop.f32.mrf.mxu1 }
 0x5a0   :  { %v2604_v24 = vadd.f32 %v2603_v50, %v6189_v14  ;;  %v5263_v50 = vld [vmem:[#allocation7 + $0x294] sm:$0xf0] }
 0x5a2   :  { %v2627_v8 = vmax.f32 %v2604_v24, 0.0  ;;  %v4804_v24 = vor.u32 %v5263_v50, %v4803_v35  ;;  %v4947_v50 = vld [vmem:[#allocation8 + $0xe0] sm:$0xf] }
 0x5a4   :  { %v2642_v19 = vpack.c.bf16 %v2627_v8, %v2626_v18  ;;  %v5262_v18 = vld [vmem:[#allocation7 + $0x294] sm:$0xf]  ;;  %v4805_v8 = vld [vmem:[#allocation7 + $0x298] sm:$0xf0]  ;;  %2990 = vmatpush.bf16.msra.mxu0 %v4804_v24  ;;  %v5300_v24 = vld [vmem:[#allocation8 + $0xec] sm:$0xf0] }
 0x5a6   :  { %4742 = vmatmul.msk.bf16.gmra.mxu2 %vm2435_vm1, %v2642_v19  ;;  %v4808_v19 = vor.u32 %v5262_v18, %v4805_v8  ;;  %v5075_v18 = vld [vmem:[#allocation8 + $0x1e0] sm:$0xf]  ;;  %v4948_v8 = vor.u32 %v5300_v24, %v4947_v50  ;;  %v5286_v24 = vld [vmem:[#allocation8 + $0x84] sm:$0xf] }
 0x5a7   :  { %v2606_v43 = vpop.f32.mrf.mxu1 }
 0x5a8   :  { %v2607_v7 = vadd.f32 %v2606_v43, %v6189_v14  ;;  %3039 = vmatpush.bf16.msra.mxu1 %v4808_v19  ;;  %v5332_v19 = vld [vmem:[#allocation8 + $0x1ec] sm:$0xf0]  ;;  %3528 = vmatpush.bf16.msrb.mxu2 %v4948_v8 }
 0x5aa   :  { %v2628_v51 = vmax.f32 %v2607_v7, 0.0 }
 0x5af   :  { %v2608_v47 = vpop.f32.mrf.mxu1 }
 0x5b0   :  { %v2609_v40 = vadd.f32 %v2608_v47, %v6189_v14 }
 0x5b2   :  { %v2629_v52 = vmax.f32 %v2609_v40, 0.0 }
 0x5b4   :  { %v2643_v41 = vpack.c.bf16 %v2629_v52, %v2628_v51  ;;  %v4795_v51 = vld [vmem:[#allocation7 + $0x280] sm:$0xf]  ;;  %v5261_v52 = vld [vmem:[#allocation7 + $0x284] sm:$0xf0] }
 0x5b6   :  { %4743 = vmatmul.msk.bf16.gmra.mxu2 %vm2435_vm1, %v2643_v41  ;;  %v4796_v41 = vor.u32 %v5261_v52, %v4795_v51 }
 0x5b7   :  { %v2611_v29 = vpop.f32.mrf.mxu1 }
 0x5b8   :  { %v2612_v12 = vadd.f32 %v2611_v29, %v6189_v14  ;;  %v5260_v29 = vld [vmem:[#allocation7 + $0x284] sm:$0xf]  ;;  %2991 = vmatpush.bf16.msra.mxu0 %v4796_v41 }
 0x5ba   :  { %v2630_v11 = vmax.f32 %v2612_v12, 0.0  ;;  %v4797_v12 = vld [vmem:[#allocation7 + $0x288] sm:$0xf0] }
 0x5bc   :  { %2992 = vmatpush.bf16.msra.mxu0 %v4788_v49  ;;  %v4933_v49 = vld [vmem:[#allocation8 + $0xd0] sm:$0xf0] }
 0x5bf   :  { %v2613_v10 = vpop.f32.mrf.mxu1 }
 0x5c0   :  { %v2614_v22 = vadd.f32 %v2613_v10, %v6189_v14  ;;  %v4800_v10 = vor.u32 %v5260_v29, %v4797_v12  ;;  %2993 = vmatpush.bf16.msra.mxu0 %v4780_v4  ;;  %v5324_v4 = vld [vmem:[#allocation8 + $0x1ac] sm:$0xf0] }
 0x5c2   :  { %v2631_v33 = vmax.f32 %v2614_v22, 0.0  ;;  %3040 = vmatpush.bf16.msra.mxu1 %v4800_v10 }
 0x5c4   :  { %v2644_v0 = vpack.c.bf16 %v2631_v33, %v2630_v11 }
 0x5c6   :  { %4744 = vmatmul.msk.bf16.gmra.mxu2 %vm2435_vm1, %v2644_v0 }
 0x5d9   :  { %v2690_v37 = vpop.f32.mrf.mxu2 }
 0x5da   :  { %v2691_v48 = vadd.f32 %v2690_v37, %v6215_v26 }
 0x5dc   :  { %v2730_v21 = vmax.f32 %v2691_v48, 0.0  ;;  %v4789_v48 = vld [vmem:[#allocation7 + $0x278] sm:$0xf0] }
 0x5e1   :  { %v2692_v28 = vpop.f32.mrf.mxu2 }
 0x5e2   :  { %v2693_v14 = vadd.f32 %v2692_v28, %v6215_v26  ;;  %v4792_v28 = vor.u32 %v5258_v59, %v4789_v48  ;;  %v4936_v59 = vor.u32 %v5294_v15, %v4933_v49  ;;  %v5326_v48 = vld [vmem:[#allocation8 + $0x1c4] sm:$0xf] }
 0x5e4   :  { %v2731_v30 = vmax.f32 %v2693_v14, 0.0  ;;  %3041 = vmatpush.bf16.msra.mxu1 %v4792_v28  ;;  %v5061_v28 = vld [vmem:[#allocation8 + $0x1d0] sm:$0xf0] }
 0x5e6   :  { %v2755_v16 = vpack.c.bf16 %v2731_v30, %v2730_v21 }
 0x5e8   :  { %4761 = vmatmul.msk.bf16.vlgmr.msra.gmra.mxu3 %vm2320_vm0, %v2755_v16 }
 0x5e9   :  { %v2695_v34 = vpop.f32.mrf.mxu2 }
 0x5ea   :  { %v2696_v5 = vadd.f32 %v2695_v34, %v6215_v26 }
 0x5ec   :  { %v2732_v58 = vmax.f32 %v2696_v5, 0.0  ;;  %v4781_v5 = vld [vmem:[#allocation7 + $0x268] sm:$0xf0] }
 0x5f1   :  { %v2697_v57 = vpop.f32.mrf.mxu2 }
 0x5f2   :  { %v2698_v1 = vadd.f32 %v2697_v57, %v6215_v26  ;;  %v4771_v57 = vld [vmem:[#allocation7 + $0x250] sm:$0xf] }
 0x5f4   :  { %v2733_v61 = vmax.f32 %v2698_v1, 0.0  ;;  %v5255_v1 = vld [vmem:[#allocation7 + $0x254] sm:$0xf0] }
 0x5f6   :  { %v2756_v32 = vpack.c.bf16 %v2733_v61, %v2732_v58  ;;  %v4784_v58 = vor.u32 %v5256_v23, %v4781_v5  ;;  %v4772_v61 = vor.u32 %v5255_v1, %v4771_v57  ;;  %v4916_v23 = vor.u32 %v5292_v53, %v4915_v45 }
 0x5f8   :  { %4762 = vmatmul.msk.bf16.gmra.mxu3 %vm2320_vm0, %v2756_v32  ;;  %3042 = vmatpush.bf16.msra.mxu1 %v4784_v58  ;;  %v5290_v58 = vld [vmem:[#allocation8 + $0xa4] sm:$0xf] }
 0x5f9   :  { %v2700_v42 = vpop.f32.mrf.mxu2  ;;  %2994 = vmatpush.bf16.msra.mxu0 %v4772_v61  ;;  %v4917_v61 = vld [vmem:[#allocation8 + $0xb0] sm:$0xf0] }
 0x5fa   :  { %v2701_v31 = vadd.f32 %v2700_v42, %v6215_v26 }
 0x5fc   :  { %v2734_v39 = vmax.f32 %v2701_v31, 0.0  ;;  %v4773_v31 = vld [vmem:[#allocation7 + $0x258] sm:$0xf0] }
 0x601   :  { %v2702_v3 = vpop.f32.mrf.mxu2 }
 0x602   :  { %v2703_v63 = vadd.f32 %v2702_v3, %v6215_v26  ;;  %v4776_v3 = vor.u32 %v5254_v44, %v4773_v31 }
 0x604   :  { %v2735_v9 = vmax.f32 %v2703_v63, 0.0  ;;  %3043 = vmatpush.bf16.msra.mxu1 %v4776_v3  ;;  %v4899_v3 = vld [vmem:[#allocation8 + $0x80] sm:$0xf] }
 0x606   :  { %v2757_v46 = vpack.c.bf16 %v2735_v9, %v2734_v39 }
 0x608   :  { %4763 = vmatmul.msk.bf16.gmra.mxu3 %vm2320_vm0, %v2757_v46 }
 0x609   :  { %v2705_v36 = vpop.f32.mrf.mxu2 }
 0x60a   :  { %v2706_v25 = vadd.f32 %v2705_v36, %v6215_v26 }
 0x60c   :  { %v2736_v62 = vmax.f32 %v2706_v25, 0.0  ;;  %v5076_v25 = vor.u32 %v5332_v19, %v5075_v18  ;;  %v4901_v18 = vld [vmem:[#allocation8 + $0x90] sm:$0xf0]  ;;  %v5318_v19 = vld [vmem:[#allocation8 + $0x184] sm:$0xf] }
 0x60d   :  { %v4904_v8 = vor.u32 %v5286_v24, %v4901_v18  ;;  %v5272_v24 = vld [vmem:[#allocation8 + $0xc] sm:$0xf0] }
 0x60e   :  { %3577 = vmatpush.bf16.msrb.mxu3 %v5076_v25  ;;  %v5029_v25 = vld [vmem:[#allocation8 + $0x190] sm:$0xf0] }
 0x611   :  { %v2707_v20 = vpop.f32.mrf.mxu2 }
 0x612   :  { %v2708_v43 = vadd.f32 %v2707_v20, %v6215_v26 }
 0x614   :  { %v2737_v7 = vmax.f32 %v2708_v43, 0.0  ;;  %v5298_v43 = vld [vmem:[#allocation8 + $0xe4] sm:$0xf] }
 0x616   :  { %v2758_v47 = vpack.c.bf16 %v2737_v7, %v2736_v62  ;;  %v4949_v62 = vld [vmem:[#allocation8 + $0xf0] sm:$0xf0]  ;;  %v6241_v7 = vld [vmem:[#allocation10 + $0x7] ss:$0 sm:$0xff] }
 0x618   :  { %4764 = vmatmul.msk.bf16.gmra.mxu3 %vm2320_vm0, %v2758_v47  ;;  %v4952_v47 = vor.u32 %v5298_v43, %v4949_v62 }
 0x619   :  { %v2710_v40 = vpop.f32.mrf.mxu2 }
 0x61a   :  { %v2711_v22 = vadd.f32 %v2710_v40, %v6215_v26  ;;  %v5077_v40 = vld [vmem:[#allocation8 + $0x1f0] sm:$0xf0]  ;;  %3626 = vmatpush.bf16.msrb.mxu0 %v4952_v47 }
 0x61c   :  { %v2738_v0 = vmax.f32 %v2711_v22, 0.0  ;;  %v4931_v22 = vld [vmem:[#allocation8 + $0xc0] sm:$0xf] }
 0x61e   :  { %3627 = vmatpush.bf16.msrb.mxu0 %v4936_v59 }
 0x621   :  { %v2712_v11 = vpop.f32.mrf.mxu2 }
 0x622   :  { %v2713_v33 = vadd.f32 %v2712_v11, %v6215_v26  ;;  %v5296_v11 = vld [vmem:[#allocation8 + $0xcc] sm:$0xf0] }
 0x624   :  { %v2739_v37 = vmax.f32 %v2713_v33, 0.0  ;;  %v4932_v33 = vor.u32 %v5296_v11, %v4931_v22 }
 0x626   :  { %v2759_v60 = vpack.c.bf16 %v2739_v37, %v2738_v0  ;;  %v5059_v0 = vld [vmem:[#allocation8 + $0x1c0] sm:$0xf]  ;;  %v5328_v37 = vld [vmem:[#allocation8 + $0x1cc] sm:$0xf0]  ;;  %3529 = vmatpush.bf16.msrb.mxu2 %v4932_v33  ;;  %v5282_v33 = vld [vmem:[#allocation8 + $0x64] sm:$0xf] }
 0x628   :  { %4765 = vmatmul.msk.bf16.gmra.mxu3 %vm2320_vm0, %v2759_v60 }
 0x629   :  { %v2715_v56 = vpop.f32.mrf.mxu2 }
 0x62a   :  { %v2716_v14 = vadd.f32 %v2715_v56, %v6215_v26  ;;  %v5060_v56 = vor.u32 %v5328_v37, %v5059_v0  ;;  %3530 = vmatpush.bf16.msrb.mxu2 %v4916_v23  ;;  %v4885_v0 = vld [vmem:[#allocation8 + $0x70] sm:$0xf0]  ;;  %v5278_v23 = vld [vmem:[#allocation8 + $0x44] sm:$0xf] }
 0x62b   :  { %v4888_v37 = vor.u32 %v5282_v33, %v4885_v0 }
 0x62c   :  { %v2740_v16 = vmax.f32 %v2716_v14, 0.0  ;;  %3578 = vmatpush.bf16.msrb.mxu3 %v5060_v56  ;;  %v5064_v14 = vor.u32 %v5326_v48, %v5061_v28  ;;  %v5013_v56 = vld [vmem:[#allocation8 + $0x170] sm:$0xf0] }
 0x631   :  { %v2717_v21 = vpop.f32.mrf.mxu2 }
 0x632   :  { %v2718_v30 = vadd.f32 %v2717_v21, %v6215_v26 }
 0x634   :  { %v2741_v34 = vmax.f32 %v2718_v30, 0.0 }
 0x636   :  { %v2760_v13 = vpack.c.bf16 %v2741_v34, %v2740_v16 }
 0x638   :  { %4766 = vmatmul.msk.bf16.gmra.mxu3 %vm2320_vm0, %v2760_v13 }
 0x639   :  { %v2720_v27 = vpop.f32.mrf.mxu2 }
 0x63a   :  { %v2721_v32 = vadd.f32 %v2720_v27, %v6215_v26  ;;  %v5043_v27 = vld [vmem:[#allocation8 + $0x1a0] sm:$0xf] }
 0x63b   :  { %v5044_v57 = vor.u32 %v5324_v4, %v5043_v27  ;;  %v4869_v27 = vld [vmem:[#allocation8 + $0x50] sm:$0xf0] }
 0x63c   :  { %v2742_v38 = vmax.f32 %v2721_v32, 0.0  ;;  %v4920_v32 = vor.u32 %v5290_v58, %v4917_v61  ;;  %v4872_v4 = vor.u32 %v5278_v23, %v4869_v27  ;;  %v4939_v27 = vld [vmem:[#allocation8 + $0xc8] sm:$0xf] }
 0x63d   :  { %3579 = vmatpush.bf16.msrb.mxu3 %v5044_v57  ;;  %v4997_v57 = vld [vmem:[#allocation8 + $0x150] sm:$0xf0] }
 0x63e   :  { %3628 = vmatpush.bf16.msrb.mxu0 %v4920_v32 }
 0x641   :  { %v2722_v42 = vpop.f32.mrf.mxu2 }
 0x642   :  { %v2723_v55 = vadd.f32 %v2722_v42, %v6215_v26  ;;  %v5322_v42 = vld [vmem:[#allocation8 + $0x1a4] sm:$0xf]  ;;  %3629 = vmatpush.bf16.msrb.mxu0 %v4904_v8 }
 0x644   :  { %v2743_v2 = vmax.f32 %v2723_v55, 0.0  ;;  %v5045_v55 = vld [vmem:[#allocation8 + $0x1b0] sm:$0xf0] }
 0x646   :  { %v2761_v54 = vpack.c.bf16 %v2743_v2, %v2742_v38  ;;  %v5048_v38 = vor.u32 %v5322_v42, %v5045_v55  ;;  %3630 = vmatpush.bf16.msrb.mxu0 %v4888_v37 }
 0x648   :  { %4767 = vmatmul.msk.bf16.gmra.mxu3 %vm2320_vm0, %v2761_v54 }
 0x649   :  { %v2725_v6 = vpop.f32.mrf.mxu2 }
 0x64a   :  { %v2726_v63 = vadd.f32 %v2725_v6, %v6215_v26  ;;  %3631 = vmatpush.bf16.msrb.mxu0 %v4872_v4  ;;  %v5297_v4 = vld [vmem:[#allocation8 + $0xd4] sm:$0xf0] }
 0x64c   :  { %v2744_v46 = vmax.f32 %v2726_v63, 0.0  ;;  %v5288_v63 = vld [vmem:[#allocation8 + $0x8c] sm:$0xf0] }
 0x651   :  { %v2727_v39 = vpop.f32.mrf.mxu2 }
 0x652   :  { %v2728_v9 = vadd.f32 %v2727_v39, %v6215_v26  ;;  %v5330_v26 = vld [vmem:[#allocation8 + $0x1e4] sm:$0xf]  ;;  %v4900_v39 = vor.u32 %v5288_v63, %v4899_v3 }
 0x653   :  { %v5080_v51 = vor.u32 %v5330_v26, %v5077_v40  ;;  %v5274_v63 = vld [vmem:[#allocation8 + $0x24] sm:$0xf] }
 0x654   :  { %v2745_v36 = vmax.f32 %v2728_v9, 0.0  ;;  %v5027_v9 = vld [vmem:[#allocation8 + $0x180] sm:$0xf]  ;;  %3531 = vmatpush.bf16.msrb.mxu2 %v4900_v39  ;;  %v4853_v39 = vld [vmem:[#allocation8 + $0x30] sm:$0xf0] }
 0x655   :  { %3675 = vmatpush.bf16.msrb.mxu1 %v5080_v51  ;;  %v4883_v51 = vld [vmem:[#allocation8 + $0x60] sm:$0xf] }
 0x656   :  { %v2762_v35 = vpack.c.bf16 %v2745_v36, %v2744_v46  ;;  %v5320_v46 = vld [vmem:[#allocation8 + $0x18c] sm:$0xf0] }
 0x658   :  { %4768 = vmatmul.msk.bf16.gmra.mxu3 %vm2320_vm0, %v2762_v35  ;;  %v5028_v35 = vor.u32 %v5320_v46, %v5027_v9  ;;  %v5306_v9 = vld [vmem:[#allocation8 + $0x124] sm:$0xf] }
 0x659   :  { %3676 = vmatpush.bf16.msrb.mxu1 %v5064_v14  ;;  %v4867_v14 = vld [vmem:[#allocation8 + $0x40] sm:$0xf] }
 0x65a   :  { %3580 = vmatpush.bf16.msrb.mxu3 %v5028_v35  ;;  %v4981_v35 = vld [vmem:[#allocation8 + $0x130] sm:$0xf0] }
 0x65b   :  { %v4984_v18 = vor.u32 %v5306_v9, %v4981_v35 }
 0x65d   :  { %3677 = vmatpush.bf16.msrb.mxu1 %v5048_v38  ;;  %v4851_v38 = vld [vmem:[#allocation8 + $0x20] sm:$0xf] }
 0x66b   :  { %v2820_v20 = vpop.f32.mrf.mxu3 }
 0x66c   :  { %v2821_v52 = vadd.f32 %v2820_v20, %v6241_v7  ;;  %v5032_v20 = vor.u32 %v5318_v19, %v5029_v25 }
 0x66e   :  { %v2860_v12 = vmax.f32 %v2821_v52, 0.0  ;;  %3678 = vmatpush.bf16.msrb.mxu1 %v5032_v20  ;;  %v5284_v52 = vld [vmem:[#allocation8 + $0x6c] sm:$0xf0] }
 0x673   :  { %v2822_v41 = vpop.f32.mrf.mxu3 }
 0x674   :  { %v2823_v29 = vadd.f32 %v2822_v41, %v6241_v7  ;;  %v4884_v41 = vor.u32 %v5284_v52, %v4883_v51  ;;  %v5270_v51 = vld [vmem:[#allocation8 + $0x4] sm:$0xf] }
 0x676   :  { %v2861_v10 = vmax.f32 %v2823_v29, 0.0  ;;  %v5011_v29 = vld [vmem:[#allocation8 + $0x160] sm:$0xf]  ;;  %3532 = vmatpush.bf16.msrb.mxu2 %v4884_v41 }
 0x678   :  { %v2894_v60 = vpack.c.bf16 %v2861_v10, %v2860_v12  ;;  %v5316_v12 = vld [vmem:[#allocation8 + $0x16c] sm:$0xf0] }
 0x679   :  { %v5012_v22 = vor.u32 %v5316_v12, %v5011_v29  ;;  %v4837_v29 = vld [vmem:[#allocation8 + $0x10] sm:$0xf0]  ;;  %v5302_v12 = vld [vmem:[#allocation8 + $0x104] sm:$0xf] }
 0x67a   :  { %2995 = vmatmul.bf16.vlgmr.msra.gmra.mxu0 %v2894_v60  ;;  %3044 = vmatmul.bf16.vlgmr.msra.gmra.mxu1 %v2894_v60  ;;  %v5314_v60 = vld [vmem:[#allocation8 + $0x164] sm:$0xf] }
 0x67b   :  { %v2825_v17 = vpop.f32.mrf.mxu3  ;;  %3581 = vmatpush.bf16.msrb.mxu3 %v5012_v22  ;;  %v4840_v22 = vor.u32 %v5270_v51, %v4837_v29  ;;  %v4925_v51 = vld [vmem:[#allocation8 + $0xb8] sm:$0xf0] }
 0x67c   :  { %v2826_v21 = vadd.f32 %v2825_v17, %v6241_v7  ;;  %v5016_v17 = vor.u32 %v5314_v60, %v5013_v56  ;;  %v5053_v29 = vld [vmem:[#allocation8 + $0x1b8] sm:$0xf0] }
 0x67e   :  { %v2862_v34 = vmax.f32 %v2826_v21, 0.0  ;;  %3679 = vmatpush.bf16.msrb.mxu1 %v5016_v17  ;;  %v5280_v21 = vld [vmem:[#allocation8 + $0x4c] sm:$0xf0]  ;;  %v4955_v17 = vld [vmem:[#allocation8 + $0xe8] sm:$0xf] }
 0x683   :  { %v2827_v30 = vpop.f32.mrf.mxu3 }
 0x684   :  { %v2828_v16 = vadd.f32 %v2827_v30, %v6241_v7  ;;  %v4868_v30 = vor.u32 %v5280_v21, %v4867_v14  ;;  %v5299_v14 = vld [vmem:[#allocation8 + $0xec] sm:$0xf] }
 0x686   :  { %v2863_v13 = vmax.f32 %v2828_v16, 0.0  ;;  %v4995_v16 = vld [vmem:[#allocation8 + $0x140] sm:$0xf]  ;;  %3533 = vmatpush.bf16.msrb.mxu2 %v4868_v30  ;;  %v4957_v30 = vld [vmem:[#allocation8 + $0xf8] sm:$0xf0] }
 0x688   :  { %v2895_v5 = vpack.c.bf16 %v2863_v13, %v2862_v34  ;;  %v5312_v34 = vld [vmem:[#allocation8 + $0x14c] sm:$0xf0] }
 0x689   :  { %v4996_v45 = vor.u32 %v5312_v34, %v4995_v16  ;;  %v5331_v16 = vld [vmem:[#allocation8 + $0x1ec] sm:$0xf]  ;;  %v5085_v34 = vld [vmem:[#allocation8 + $0x1f8] sm:$0xf0] }
 0x68a   :  { %3000 = vmatmul.bf16.gmra.mxu0 %v2895_v5  ;;  %3049 = vmatmul.bf16.gmra.mxu1 %v2895_v5  ;;  %v5310_v5 = vld [vmem:[#allocation8 + $0x144] sm:$0xf] }
 0x68b   :  { %v2830_v1 = vpop.f32.mrf.mxu3  ;;  %3582 = vmatpush.bf16.msrb.mxu3 %v4996_v45  ;;  %v5088_v45 = vor.u32 %v5331_v16, %v5085_v34  ;;  %v5035_v16 = vld [vmem:[#allocation8 + $0x188] sm:$0xf]  ;;  %v5321_v34 = vld [vmem:[#allocation8 + $0x194] sm:$0xf0] }
 0x68c   :  { %v2831_v2 = vadd.f32 %v2830_v1, %v6241_v7  ;;  %v5000_v1 = vor.u32 %v5310_v5, %v4997_v57  ;;  %v4940_v5 = vor.u32 %v5297_v4, %v4939_v27  ;;  %v5037_v27 = vld [vmem:[#allocation8 + $0x198] sm:$0xf0] }
 0x68e   :  { %v2864_v44 = vmax.f32 %v2831_v2, 0.0  ;;  %3680 = vmatpush.bf16.msrb.mxu1 %v5000_v1  ;;  %v5276_v2 = vld [vmem:[#allocation8 + $0x2c] sm:$0xf0] }
 0x692   :  { %3681 = vmatpush.bf16.msrb.mxu1 %v4984_v18 }
 0x693   :  { %v2832_v54 = vpop.f32.mrf.mxu3 }
 0x694   :  { %v2833_v6 = vadd.f32 %v2832_v54, %v6241_v7  ;;  %v4852_v54 = vor.u32 %v5276_v2, %v4851_v38  ;;  %v5327_v38 = vld [vmem:[#allocation8 + $0x1cc] sm:$0xf] }
 0x696   :  { %v2865_v31 = vmax.f32 %v2833_v6, 0.0  ;;  %v4979_v6 = vld [vmem:[#allocation8 + $0x120] sm:$0xf]  ;;  %3534 = vmatpush.bf16.msrb.mxu2 %v4852_v54  ;;  %v5069_v54 = vld [vmem:[#allocation8 + $0x1d8] sm:$0xf0] }
 0x698   :  { %v2896_v36 = vpack.c.bf16 %v2865_v31, %v2864_v44  ;;  %v5308_v44 = vld [vmem:[#allocation8 + $0x12c] sm:$0xf0] }
 0x699   :  { %v4980_v3 = vor.u32 %v5308_v44, %v4979_v6  ;;  %v5072_v6 = vor.u32 %v5327_v38, %v5069_v54 }
 0x69a   :  { %3005 = vmatmul.bf16.gmra.mxu0 %v2896_v36  ;;  %3054 = vmatmul.bf16.gmra.mxu1 %v2896_v36  ;;  %v4856_v36 = vor.u32 %v5274_v63, %v4853_v39 }
 0x69b   :  { %v2835_v50 = vpop.f32.mrf.mxu3  ;;  %3583 = vmatpush.bf16.msrb.mxu3 %v4980_v3 }
 0x69c   :  { %v2836_v43 = vadd.f32 %v2835_v50, %v6241_v7  ;;  %v4835_v50 = vld [vmem:[#allocation8] sm:$0xf]  ;;  %3632 = vmatpush.bf16.msrb.mxu0 %v4856_v36 }
 0x69d   :  { %v4836_v8 = vor.u32 %v5272_v24, %v4835_v50 }
 0x69e   :  { %v2866_v26 = vmax.f32 %v2836_v43, 0.0 }
 0x69f   :  { %3535 = vmatpush.bf16.msrb.mxu2 %v4836_v8 }
 0x6a0   :  { %3633 = vmatpush.bf16.msrb.mxu0 %v4840_v22 }
 0x6a3   :  { %v2837_v62 = vpop.f32.mrf.mxu3 }
 0x6a4   :  { %v2838_v47 = vadd.f32 %v2837_v62, %v6241_v7 }
 0x6a6   :  { %v2867_v40 = vmax.f32 %v2838_v47, 0.0 }
 0x6a8   :  { %v2897_v10 = vpack.c.bf16 %v2867_v40, %v2866_v26  ;;  %v4963_v26 = vld [vmem:[#allocation8 + $0x100] sm:$0xf]  ;;  %v5304_v40 = vld [vmem:[#allocation8 + $0x10c] sm:$0xf0] }
 0x6a9   :  { %v4964_v41 = vor.u32 %v5304_v40, %v4963_v26  ;;  %v5291_v40 = vld [vmem:[#allocation8 + $0xac] sm:$0xf] }
 0x6aa   :  { %3010 = vmatmul.bf16.gmra.mxu0 %v2897_v10  ;;  %3059 = vmatmul.bf16.gmra.mxu1 %v2897_v10  ;;  %v4965_v10 = vld [vmem:[#allocation8 + $0x110] sm:$0xf0] }
 0x6ab   :  { %v2840_v11 = vpop.f32.mrf.mxu3  ;;  %3584 = vmatpush.bf16.msrb.mxu3 %v4964_v41  ;;  %v4928_v41 = vor.u32 %v5291_v40, %v4925_v51 }
 0x6ac   :  { %v2841_v15 = vadd.f32 %v2840_v11, %v6241_v7  ;;  %v4968_v11 = vor.u32 %v5302_v12, %v4965_v10 }
 0x6ae   :  { %v2868_v48 = vmax.f32 %v2841_v15, 0.0  ;;  %3682 = vmatpush.bf16.msrb.mxu1 %v4968_v11  ;;  %v5301_v15 = vld [vmem:[#allocation8 + $0xf4] sm:$0xf0] }
 0x6b2   :  { %3871 = vmatpush.bf16.msra.mxu1 %v5088_v45  ;;  %v5287_v45 = vld [vmem:[#allocation8 + $0x8c] sm:$0xf] }
 0x6b3   :  { %v2842_v49 = vpop.f32.mrf.mxu3 }
 0x6b4   :  { %v2843_v59 = vadd.f32 %v2842_v49, %v6241_v7 }
 0x6b6   :  { %v2869_v28 = vmax.f32 %v2843_v59, 0.0  ;;  %v4956_v59 = vor.u32 %v5301_v15, %v4955_v17  ;;  %3872 = vmatpush.bf16.msra.mxu1 %v5072_v6 }
 0x6b8   :  { %v2898_v13 = vpack.c.bf16 %v2869_v28, %v2868_v48  ;;  %v5083_v48 = vld [vmem:[#allocation8 + $0x1e8] sm:$0xf]  ;;  %v5333_v28 = vld [vmem:[#allocation8 + $0x1f4] sm:$0xf0]  ;;  %3724 = vmatpush.bf16.msra.mxu2 %v4956_v59 }
 0x6b9   :  { %v5084_v21 = vor.u32 %v5333_v28, %v5083_v48 }
 0x6ba   :  { %3015 = vmatmul.bf16.gmra.mxu0 %v2898_v13  ;;  %3064 = vmatmul.bf16.gmra.mxu1 %v2898_v13  ;;  %v4960_v13 = vor.u32 %v5299_v14, %v4957_v30  ;;  %v4907_v14 = vld [vmem:[#allocation8 + $0x88] sm:$0xf] }
 0x6bb   :  { %v2845_v53 = vpop.f32.mrf.mxu3  ;;  %3773 = vmatpush.bf16.msra.mxu3 %v5084_v21  ;;  %v5289_v21 = vld [vmem:[#allocation8 + $0x94] sm:$0xf0] }
 0x6bc   :  { %v2846_v58 = vadd.f32 %v2845_v53, %v6241_v7  ;;  %3822 = vmatpush.bf16.msra.mxu0 %v4960_v13  ;;  %3725 = vmatpush.bf16.msra.mxu2 %v4940_v5  ;;  %v4908_v30 = vor.u32 %v5289_v21, %v4907_v14  ;;  %v5036_v13 = vor.u32 %v5321_v34, %v5035_v16  ;;  %v5279_v14 = vld [vmem:[#allocation8 + $0x4c] sm:$0xf]  ;;  %v4877_v21 = vld [vmem:[#allocation8 + $0x58] sm:$0xf0] }
 0x6bd   :  { %v4880_v16 = vor.u32 %v5279_v14, %v4877_v21  ;;  %v5005_v34 = vld [vmem:[#allocation8 + $0x158] sm:$0xf0]  ;;  %v5303_v21 = vld [vmem:[#allocation8 + $0x10c] sm:$0xf] }
 0x6be   :  { %v2870_v42 = vmax.f32 %v2846_v58, 0.0  ;;  %v5067_v58 = vld [vmem:[#allocation8 + $0x1c8] sm:$0xf] }
 0x6c3   :  { %v2847_v61 = vpop.f32.mrf.mxu3 }
 0x6c4   :  { %v2848_v32 = vadd.f32 %v2847_v61, %v6241_v7  ;;  %v5329_v61 = vld [vmem:[#allocation8 + $0x1d4] sm:$0xf0] }
 0x6c6   :  { %v2871_v55 = vmax.f32 %v2848_v32, 0.0  ;;  %v5068_v32 = vor.u32 %v5329_v61, %v5067_v58 }
 0x6c8   :  { %v2899_v31 = vpack.c.bf16 %v2871_v55, %v2870_v42  ;;  %v5295_v42 = vld [vmem:[#allocation8 + $0xcc] sm:$0xf]  ;;  %v4941_v55 = vld [vmem:[#allocation8 + $0xd8] sm:$0xf0]  ;;  %3774 = vmatpush.bf16.msra.mxu3 %v5068_v32 }
 0x6c9   :  { %v4944_v2 = vor.u32 %v5295_v42, %v4941_v55 }
 0x6ca   :  { %3020 = vmatmul.bf16.gmra.mxu0 %v2899_v31  ;;  %3069 = vmatmul.bf16.gmra.mxu1 %v2899_v31 }
 0x6cb   :  { %v2850_v46 = vpop.f32.mrf.mxu3  ;;  %3823 = vmatpush.bf16.msra.mxu0 %v4944_v2 }
 0x6cc   :  { %v2851_v19 = vadd.f32 %v2850_v46, %v6241_v7 }
 0x6ce   :  { %v2872_v43 = vmax.f32 %v2851_v19, 0.0 }
 0x6cf   :  { %3824 = vmatpush.bf16.msra.mxu0 %v4928_v41 }
 0x6d3   :  { %v2852_v25 = vpop.f32.mrf.mxu3 }
 0x6d4   :  { %v2853_v20 = vadd.f32 %v2852_v25, %v6241_v7  ;;  %v4923_v25 = vld [vmem:[#allocation8 + $0xa8] sm:$0xf] }
 0x6d6   :  { %v2873_v62 = vmax.f32 %v2853_v20, 0.0  ;;  %v5293_v20 = vld [vmem:[#allocation8 + $0xb4] sm:$0xf0] }
 0x6d8   :  { %v2900_v47 = vpack.c.bf16 %v2873_v62, %v2872_v43  ;;  %v4924_v43 = vor.u32 %v5293_v20, %v4923_v25  ;;  %v5051_v62 = vld [vmem:[#allocation8 + $0x1a8] sm:$0xf]  ;;  %v5315_v25 = vld [vmem:[#allocation8 + $0x16c] sm:$0xf] }
 0x6da   :  { %3025 = vmatmul.bf16.gmra.mxu0 %v2900_v47  ;;  %3074 = vmatmul.bf16.gmra.mxu1 %v2900_v47  ;;  %v5325_v47 = vld [vmem:[#allocation8 + $0x1b4] sm:$0xf0] }
 0x6db   :  { %v2855_v52 = vpop.f32.mrf.mxu3  ;;  %3726 = vmatpush.bf16.msra.mxu2 %v4924_v43  ;;  %v5052_v26 = vor.u32 %v5325_v47, %v5051_v62  ;;  %v5021_v43 = vld [vmem:[#allocation8 + $0x178] sm:$0xf0] }
 0x6dc   :  { %v2856_v33 = vadd.f32 %v2855_v52, %v6241_v7  ;;  %v5323_v52 = vld [vmem:[#allocation8 + $0x1ac] sm:$0xf]  ;;  %v5024_v62 = vor.u32 %v5315_v25, %v5021_v43 }
 0x6dd   :  { %3775 = vmatpush.bf16.msra.mxu3 %v5052_v26  ;;  %v5056_v12 = vor.u32 %v5323_v52, %v5053_v29 }
 0x6de   :  { %v2874_v60 = vmax.f32 %v2856_v33, 0.0 }
 0x6df   :  { %3873 = vmatpush.bf16.msra.mxu1 %v5056_v12  ;;  %3727 = vmatpush.bf16.msra.mxu2 %v4908_v30  ;;  %v5311_v30 = vld [vmem:[#allocation8 + $0x14c] sm:$0xf] }
 0x6e1   :  { %3776 = vmatpush.bf16.msra.mxu3 %v5036_v13  ;;  %v5008_v13 = vor.u32 %v5311_v30, %v5005_v34  ;;  %v4973_v30 = vld [vmem:[#allocation8 + $0x118] sm:$0xf0] }
 0x6e3   :  { %v2857_v0 = vpop.f32.mrf.mxu3 }
 0x6e4   :  { %v2858_v37 = vadd.f32 %v2857_v0, %v6241_v7  ;;  %v2893_v7 = vld [vmem:[#allocation10 + $0x20] ss:$8 sm:$0x3] }
 0x6e5   :  { %v6259_v57 = vperm.slane %v2893_v7, 0  ;;  %v6261_v1 = vperm.slane %v2893_v7, 1  ;;  %v4909_v7 = vld [vmem:[#allocation8 + $0x98] sm:$0xf0] }
 0x6e6   :  { %v2875_v56 = vmax.f32 %v2858_v37, 0.0 }
 0x6e8   :  { %v2901_v49 = vpack.c.bf16 %v2875_v56, %v2874_v60 }
 0x6ea   :  { %3030 = vmatmul.bf16.gmra.mxu0 %v2901_v49  ;;  %3079 = vmatmul.bf16.gmra.mxu1 %v2901_v49 }
 0x6f7   :  { %v2996_v53 = vpop.f32.mrf.mxu0  ;;  %v3045_v23 = vpop.f32.mrf.mxu1 }
 0x6f8   :  { %v2997_v44 = vadd.f32 %v2996_v53, %v6259_v57  ;;  %v3046_v31 = vadd.f32 %v3045_v23, %v6261_v1  ;;  %v5319_v53 = vld [vmem:[#allocation8 + $0x18c] sm:$0xf]  ;;  %v4912_v23 = vor.u32 %v5287_v45, %v4909_v7 }
 0x6f9   :  { %v5040_v4 = vor.u32 %v5319_v53, %v5037_v27 }
 0x6fa   :  { %v3085_v46 = vmax.f32 %v2997_v44, 0.0  ;;  %v3086_v36 = vmax.f32 %v3046_v31, 0.0  ;;  %3825 = vmatpush.bf16.msra.mxu0 %v4912_v23 }
 0x6fb   :  { %3874 = vmatpush.bf16.msra.mxu1 %v5040_v4 }
 0x6ff   :  { %v2998_v3 = vpop.f32.mrf.mxu0  ;;  %v3047_v63 = vpop.f32.mrf.mxu1  ;;  %3875 = vmatpush.bf16.msra.mxu1 %v5024_v62 }
 0x700   :  { %v2999_v39 = vadd.f32 %v2998_v3, %v6259_v57  ;;  %v3048_v9 = vadd.f32 %v3047_v63, %v6261_v1 }
 0x702   :  { %v3087_v35 = vmax.f32 %v2999_v39, 0.0  ;;  %v3088_v50 = vmax.f32 %v3048_v9, 0.0  ;;  %v4891_v39 = vld [vmem:[#allocation8 + $0x68] sm:$0xf]  ;;  %v5285_v9 = vld [vmem:[#allocation8 + $0x74] sm:$0xf0] }
 0x703   :  { %3876 = vmatpush.bf16.msra.mxu1 %v5008_v13 }
 0x704   :  { %v6267_v24 = vpack.c.bf16 %v3087_v35, %v3085_v46  ;;  %v6269_v18 = vpack.c.bf16 %v3088_v50, %v3086_v36  ;;  %v4892_v46 = vor.u32 %v5285_v9, %v4891_v39  ;;  %v5019_v36 = vld [vmem:[#allocation8 + $0x168] sm:$0xf]  ;;  %v5317_v35 = vld [vmem:[#allocation8 + $0x174] sm:$0xf0] }
 0x705   :  { %v5020_v50 = vor.u32 %v5317_v35, %v5019_v36  ;;  %v5309_v39 = vld [vmem:[#allocation8 + $0x134] sm:$0xf0]  ;;  %v4861_v36 = vld [vmem:[#allocation8 + $0x38] sm:$0xf0]  ;;  %v5307_v35 = vld [vmem:[#allocation8 + $0x12c] sm:$0xf] }
 0x706   :  { %3536 = vmatmul.bf16.vlgmr.msrb.gmra.mxu2 %v6267_v24  ;;  %3585 = vmatmul.bf16.vlgmr.msrb.gmra.mxu3 %v6269_v18 }
 0x707   :  { %3634 = vmatmul.bf16.vlgmr.msrb.gmra.mxu0 %v6267_v24  ;;  %3683 = vmatmul.bf16.vlgmr.msrb.gmra.mxu1 %v6269_v18  ;;  %v3001_v8 = vpop.f32.mrf.mxu0  ;;  %v3050_v19 = vpop.f32.mrf.mxu1 }
 0x708   :  { %v3002_v10 = vadd.f32 %v3001_v8, %v6259_v57  ;;  %v3051_v22 = vadd.f32 %v3050_v19, %v6261_v1  ;;  %3728 = vmatpush.bf16.msra.mxu2 %v4892_v46  ;;  %v5283_v8 = vld [vmem:[#allocation8 + $0x6c] sm:$0xf]  ;;  %v4893_v19 = vld [vmem:[#allocation8 + $0x78] sm:$0xf0]  ;;  %3777 = vmatpush.bf16.msra.mxu3 %v5020_v50 }
 0x709   :  { %v4896_v20 = vor.u32 %v5283_v8, %v4893_v19  ;;  %v5275_v46 = vld [vmem:[#allocation8 + $0x2c] sm:$0xf]  ;;  %v4989_v8 = vld [vmem:[#allocation8 + $0x138] sm:$0xf0] }
 0x70a   :  { %v3089_v60 = vmax.f32 %v3002_v10, 0.0  ;;  %v3090_v56 = vmax.f32 %v3051_v22, 0.0  ;;  %v4864_v50 = vor.u32 %v5275_v46, %v4861_v36  ;;  %v4992_v19 = vor.u32 %v5307_v35, %v4989_v8 }
 0x70b   :  { %3826 = vmatpush.bf16.msra.mxu0 %v4896_v20 }
 0x70c   :  { %3877 = vmatpush.bf16.msra.mxu1 %v4992_v19 }
 0x70f   :  { %v3003_v11 = vpop.f32.mrf.mxu0  ;;  %v3052_v33 = vpop.f32.mrf.mxu1  ;;  %3827 = vmatpush.bf16.msra.mxu0 %v4880_v16  ;;  %v4976_v16 = vor.u32 %v5303_v21, %v4973_v30 }
 0x710   :  { %v3004_v0 = vadd.f32 %v3003_v11, %v6259_v57  ;;  %v3053_v37 = vadd.f32 %v3052_v33, %v6261_v1 }
 0x711   :  { %3878 = vmatpush.bf16.msra.mxu1 %v4976_v16 }
 0x712   :  { %v3091_v17 = vmax.f32 %v3004_v0, 0.0  ;;  %v3092_v15 = vmax.f32 %v3053_v37, 0.0 }
 0x713   :  { %3828 = vmatpush.bf16.msra.mxu0 %v4864_v50 }
 0x714   :  { %v6279_v49 = vpack.c.bf16 %v3091_v17, %v3089_v60  ;;  %v6281_v59 = vpack.c.bf16 %v3092_v15, %v3090_v56  ;;  %v4875_v60 = vld [vmem:[#allocation8 + $0x48] sm:$0xf]  ;;  %v5281_v56 = vld [vmem:[#allocation8 + $0x54] sm:$0xf0] }
 0x715   :  { %v4876_v17 = vor.u32 %v5281_v56, %v4875_v60  ;;  %v5003_v15 = vld [vmem:[#allocation8 + $0x148] sm:$0xf] }
 0x716   :  { %3541 = vmatmul.bf16.gmra.mxu2 %v6279_v49  ;;  %3590 = vmatmul.bf16.gmra.mxu3 %v6281_v59  ;;  %v4971_v60 = vld [vmem:[#allocation8 + $0x108] sm:$0xf] }
 0x717   :  { %3639 = vmatmul.bf16.gmra.mxu0 %v6279_v49  ;;  %3688 = vmatmul.bf16.gmra.mxu1 %v6281_v59  ;;  %v3006_v48 = vpop.f32.mrf.mxu0  ;;  %v3055_v28 = vpop.f32.mrf.mxu1 }
 0x718   :  { %v3007_v5 = vadd.f32 %v3006_v48, %v6259_v57  ;;  %v3056_v58 = vadd.f32 %v3055_v28, %v6261_v1  ;;  %3729 = vmatpush.bf16.msra.mxu2 %v4876_v17  ;;  %v5313_v48 = vld [vmem:[#allocation8 + $0x154] sm:$0xf0] }
 0x719   :  { %v5004_v28 = vor.u32 %v5313_v48, %v5003_v15  ;;  %v5305_v17 = vld [vmem:[#allocation8 + $0x114] sm:$0xf0]  ;;  %v5271_v15 = vld [vmem:[#allocation8 + $0xc] sm:$0xf]  ;;  %v4845_v48 = vld [vmem:[#allocation8 + $0x18] sm:$0xf0] }
 0x71a   :  { %v3093_v38 = vmax.f32 %v3007_v5, 0.0  ;;  %v3094_v2 = vmax.f32 %v3056_v58, 0.0  ;;  %v4848_v14 = vor.u32 %v5271_v15, %v4845_v48 }
 0x71b   :  { %3778 = vmatpush.bf16.msra.mxu3 %v5004_v28  ;;  %v4972_v28 = vor.u32 %v5305_v17, %v4971_v60 }
 0x71c   :  { %3829 = vmatpush.bf16.msra.mxu0 %v4848_v14 }
 0x71f   :  { %v3008_v61 = vpop.f32.mrf.mxu0  ;;  %v3057_v32 = vpop.f32.mrf.mxu1 }
 0x720   :  { %v3009_v42 = vadd.f32 %v3008_v61, %v6259_v57  ;;  %v3058_v55 = vadd.f32 %v3057_v32, %v6261_v1 }
 0x722   :  { %v3095_v54 = vmax.f32 %v3009_v42, 0.0  ;;  %v3096_v6 = vmax.f32 %v3058_v55, 0.0 }
 0x724   :  { %v6291_v44 = vpack.c.bf16 %v3095_v54, %v3093_v38  ;;  %v6293_v31 = vpack.c.bf16 %v3096_v6, %v3094_v2  ;;  %v4859_v54 = vld [vmem:[#allocation8 + $0x28] sm:$0xf]  ;;  %v5277_v6 = vld [vmem:[#allocation8 + $0x34] sm:$0xf0] }
 0x726   :  { %3546 = vmatmul.bf16.gmra.mxu2 %v6291_v44  ;;  %3595 = vmatmul.bf16.gmra.mxu3 %v6293_v31 }
 0x727   :  { %3644 = vmatmul.bf16.gmra.mxu0 %v6291_v44  ;;  %3693 = vmatmul.bf16.gmra.mxu1 %v6293_v31  ;;  %v3011_v3 = vpop.f32.mrf.mxu0  ;;  %v3060_v63 = vpop.f32.mrf.mxu1 }
 0x728   :  { %v3012_v47 = vadd.f32 %v3011_v3, %v6259_v57  ;;  %v3061_v26 = vadd.f32 %v3060_v63, %v6261_v1  ;;  %v4860_v3 = vor.u32 %v5277_v6, %v4859_v54  ;;  %v4987_v63 = vld [vmem:[#allocation8 + $0x128] sm:$0xf] }
 0x729   :  { %v4988_v9 = vor.u32 %v5309_v39, %v4987_v63 }
 0x72a   :  { %v3097_v29 = vmax.f32 %v3012_v47, 0.0  ;;  %v3098_v12 = vmax.f32 %v3061_v26, 0.0  ;;  %3730 = vmatpush.bf16.msra.mxu2 %v4860_v3 }
 0x72b   :  { %3779 = vmatpush.bf16.msra.mxu3 %v4988_v9 }
 0x72f   :  { %v3013_v40 = vpop.f32.mrf.mxu0  ;;  %v3062_v51 = vpop.f32.mrf.mxu1  ;;  %3780 = vmatpush.bf16.msra.mxu3 %v4972_v28 }
 0x730   :  { %v3014_v52 = vadd.f32 %v3013_v40, %v6259_v57  ;;  %v3063_v41 = vadd.f32 %v3062_v51, %v6261_v1 }
 0x732   :  { %v3099_v10 = vmax.f32 %v3014_v52, 0.0  ;;  %v3100_v22 = vmax.f32 %v3063_v41, 0.0 }
 0x734   :  { %v6303_v11 = vpack.c.bf16 %v3099_v10, %v3097_v29  ;;  %v6305_v33 = vpack.c.bf16 %v3100_v22, %v3098_v12 }
 0x736   :  { %3551 = vmatmul.bf16.gmra.mxu2 %v6303_v11  ;;  %3600 = vmatmul.bf16.gmra.mxu3 %v6305_v33 }
 0x737   :  { %3649 = vmatmul.bf16.gmra.mxu0 %v6303_v11  ;;  %3698 = vmatmul.bf16.gmra.mxu1 %v6305_v33  ;;  %v3016_v0 = vpop.f32.mrf.mxu0  ;;  %v3065_v37 = vpop.f32.mrf.mxu1 }
 0x738   :  { %v3017_v45 = vadd.f32 %v3016_v0, %v6259_v57  ;;  %v3066_v7 = vadd.f32 %v3065_v37, %v6261_v1  ;;  %v4843_v0 = vld [vmem:[#allocation8 + $0x8] sm:$0xf]  ;;  %v5273_v37 = vld [vmem:[#allocation8 + $0x14] sm:$0xf0] }
 0x739   :  { %v4844_v56 = vor.u32 %v5273_v37, %v4843_v0 }
 0x73a   :  { %v3101_v5 = vmax.f32 %v3017_v45, 0.0  ;;  %v3102_v58 = vmax.f32 %v3066_v7, 0.0 }
 0x73b   :  { %3731 = vmatpush.bf16.msra.mxu2 %v4844_v56 }
 0x73f   :  { %v3018_v53 = vpop.f32.mrf.mxu0  ;;  %v3067_v23 = vpop.f32.mrf.mxu1 }
 0x740   :  { %v3019_v27 = vadd.f32 %v3018_v53, %v6259_v57  ;;  %v3068_v4 = vadd.f32 %v3067_v23, %v6261_v1 }
 0x742   :  { %v3103_v61 = vmax.f32 %v3019_v27, 0.0  ;;  %v3104_v32 = vmax.f32 %v3068_v4, 0.0 }
 0x744   :  { %v6315_v42 = vpack.c.bf16 %v3103_v61, %v3101_v5  ;;  %v6317_v55 = vpack.c.bf16 %v3104_v32, %v3102_v58 }
 0x746   :  { %3556 = vmatmul.bf16.gmra.mxu2 %v6315_v42  ;;  %3605 = vmatmul.bf16.gmra.mxu3 %v6317_v55 }
 0x747   :  { %3654 = vmatmul.bf16.gmra.mxu0 %v6315_v42  ;;  %3703 = vmatmul.bf16.gmra.mxu1 %v6317_v55  ;;  %v3021_v38 = vpop.f32.mrf.mxu0  ;;  %v3070_v2 = vpop.f32.mrf.mxu1 }
 0x748   :  { %v3022_v25 = vadd.f32 %v3021_v38, %v6259_v57  ;;  %v3071_v20 = vadd.f32 %v3070_v2, %v6261_v1 }
 0x74a   :  { %v3105_v40 = vmax.f32 %v3022_v25, 0.0  ;;  %v3106_v51 = vmax.f32 %v3071_v20, 0.0  ;;  %v6359_v25 = vld [vmem:[#allocation10 + $0x21] ss:$8 sm:$0xf] }
 0x74f   :  { %v3023_v43 = vpop.f32.mrf.mxu0  ;;  %v3072_v62 = vpop.f32.mrf.mxu1 }
 0x750   :  { %v3024_v47 = vadd.f32 %v3023_v43, %v6259_v57  ;;  %v3073_v26 = vadd.f32 %v3072_v62, %v6261_v1  ;;  %v6368_v62 = vperm.slane %v6359_v25, 0 }
 0x752   :  { %v3107_v52 = vmax.f32 %v3024_v47, 0.0  ;;  %v3108_v41 = vmax.f32 %v3073_v26, 0.0 }
 0x754   :  { %v6327_v29 = vpack.c.bf16 %v3107_v52, %v3105_v40  ;;  %v6329_v12 = vpack.c.bf16 %v3108_v41, %v3106_v51 }
 0x756   :  { %3561 = vmatmul.bf16.gmra.mxu2 %v6327_v29  ;;  %3610 = vmatmul.bf16.gmra.mxu3 %v6329_v12 }
 0x757   :  { %3659 = vmatmul.bf16.gmra.mxu0 %v6327_v29  ;;  %3708 = vmatmul.bf16.gmra.mxu1 %v6329_v12  ;;  %v3026_v10 = vpop.f32.mrf.mxu0  ;;  %v3075_v22 = vpop.f32.mrf.mxu1 }
 0x758   :  { %v3027_v34 = vadd.f32 %v3026_v10, %v6259_v57  ;;  %v3076_v13 = vadd.f32 %v3075_v22, %v6261_v1 }
 0x75a   :  { %v3109_v27 = vmax.f32 %v3027_v34, 0.0  ;;  %v3110_v4 = vmax.f32 %v3076_v13, 0.0 }
 0x75f   :  { %v3028_v45 = vpop.f32.mrf.mxu0  ;;  %v3077_v7 = vpop.f32.mrf.mxu1 }
 0x760   :  { %v3029_v53 = vadd.f32 %v3028_v45, %v6259_v57  ;;  %v3078_v23 = vadd.f32 %v3077_v7, %v6261_v1 }
 0x762   :  { %v3111_v5 = vmax.f32 %v3029_v53, 0.0  ;;  %v3112_v58 = vmax.f32 %v3078_v23, 0.0 }
 0x764   :  { %v6339_v61 = vpack.c.bf16 %v3111_v5, %v3109_v27  ;;  %v6341_v32 = vpack.c.bf16 %v3112_v58, %v3110_v4 }
 0x766   :  { %3566 = vmatmul.bf16.gmra.mxu2 %v6339_v61  ;;  %3615 = vmatmul.bf16.gmra.mxu3 %v6341_v32 }
 0x767   :  { %3664 = vmatmul.bf16.gmra.mxu0 %v6339_v61  ;;  %3713 = vmatmul.bf16.gmra.mxu1 %v6341_v32  ;;  %v3031_v38 = vpop.f32.mrf.mxu0  ;;  %v3080_v2 = vpop.f32.mrf.mxu1 }
 0x768   :  { %v3032_v54 = vadd.f32 %v3031_v38, %v6259_v57  ;;  %v3081_v6 = vadd.f32 %v3080_v2, %v6261_v1 }
 0x76a   :  { %v3113_v46 = vmax.f32 %v3032_v54, 0.0  ;;  %v3114_v36 = vmax.f32 %v3081_v6, 0.0 }
 0x76f   :  { %v3033_v3 = vpop.f32.mrf.mxu0  ;;  %v3082_v63 = vpop.f32.mrf.mxu1 }
 0x770   :  { %v3034_v39 = vadd.f32 %v3033_v3, %v6259_v57  ;;  %v3083_v9 = vadd.f32 %v3082_v63, %v6261_v1  ;;  %v6362_v57 = vperm.slane %v6359_v25, 1 }
 0x772   :  { %v3115_v35 = vmax.f32 %v3034_v39, 0.0  ;;  %v3116_v50 = vmax.f32 %v3083_v9, 0.0 }
 0x774   :  { %v6351_v8 = vpack.c.bf16 %v3115_v35, %v3113_v46  ;;  %v6353_v19 = vpack.c.bf16 %v3116_v50, %v3114_v36 }
 0x776   :  { %3571 = vmatmul.bf16.gmra.mxu2 %v6351_v8  ;;  %3620 = vmatmul.bf16.gmra.mxu3 %v6353_v19 }
 0x777   :  { %3669 = vmatmul.bf16.gmra.mxu0 %v6351_v8  ;;  %3718 = vmatmul.bf16.gmra.mxu1 %v6353_v19 }
 0x784   :  { %v3635_v1 = vpop.f32.mrf.mxu0  ;;  %v3684_v20 = vpop.f32.mrf.mxu1 }
 0x785   :  { %v3636_v43 = vadd.f32 %v3635_v1, %v6362_v57 }
 0x786   :  { %3732 = vmatmul.bf16.vlgmr.msra.gmra.mxu2 %v6267_v24  ;;  %3781 = vmatmul.bf16.vlgmr.msra.gmra.mxu3 %v6269_v18 }
 0x787   :  { %v3685_v47 = vadd.f32 %v3684_v20, %v3636_v43  ;;  %3830 = vmatmul.bf16.vlgmr.msra.gmra.mxu0 %v6267_v24  ;;  %3879 = vmatmul.bf16.vlgmr.msra.gmra.mxu1 %v6269_v18 }
 0x789   :  { %v3921_v26 = vmax.f32 %v3685_v47, 0.0  ;;  %v3537_v40 = vpop.f32.mrf.mxu2  ;;  %v3586_v51 = vpop.f32.mrf.mxu3 }
 0x78a   :  { %v3538_v52 = vadd.f32 %v3537_v40, %v6368_v62 }
 0x78b   :  { %3985 = vst [vmem:[#allocation11 + $0x8] sm:$0xff] %v3921_v26 }
 0x78c   :  { %v3587_v41 = vadd.f32 %v3586_v51, %v3538_v52  ;;  %v3637_v10 = vpop.f32.mrf.mxu0  ;;  %v3686_v22 = vpop.f32.mrf.mxu1 }
 0x78d   :  { %v3638_v0 = vadd.f32 %v3637_v10, %v6362_v57 }
 0x78e   :  { %v3920_v37 = vmax.f32 %v3587_v41, 0.0 }
 0x78f   :  { %v3687_v60 = vadd.f32 %v3686_v22, %v3638_v0 }
 0x790   :  { %3984 = vst [vmem:[#allocation11] sm:$0xff] %v3920_v37 }
 0x791   :  { %v3925_v56 = vmax.f32 %v3687_v60, 0.0  ;;  %v3539_v17 = vpop.f32.mrf.mxu2  ;;  %v3588_v15 = vpop.f32.mrf.mxu3 }
 0x792   :  { %v3540_v24 = vadd.f32 %v3539_v17, %v6368_v62 }
 0x793   :  { %3989 = vst [vmem:[#allocation11 + $0x28] sm:$0xff] %v3925_v56 }
 0x794   :  { %v3589_v18 = vadd.f32 %v3588_v15, %v3540_v24  ;;  %v3640_v48 = vpop.f32.mrf.mxu0  ;;  %v3689_v28 = vpop.f32.mrf.mxu1 }
 0x795   :  { %v3641_v14 = vadd.f32 %v3640_v48, %v6362_v57 }
 0x796   :  { %v3924_v21 = vmax.f32 %v3589_v18, 0.0  ;;  %3737 = vmatmul.bf16.gmra.mxu2 %v6279_v49  ;;  %3786 = vmatmul.bf16.gmra.mxu3 %v6281_v59 }
 0x797   :  { %v3690_v30 = vadd.f32 %v3689_v28, %v3641_v14  ;;  %3835 = vmatmul.bf16.gmra.mxu0 %v6279_v49  ;;  %3884 = vmatmul.bf16.gmra.mxu1 %v6281_v59 }
 0x798   :  { %3988 = vst [vmem:[#allocation11 + $0x20] sm:$0xff] %v3924_v21 }
 0x799   :  { %v3929_v16 = vmax.f32 %v3690_v30, 0.0  ;;  %v3542_v34 = vpop.f32.mrf.mxu2  ;;  %v3591_v13 = vpop.f32.mrf.mxu3 }
 0x79a   :  { %v3543_v45 = vadd.f32 %v3542_v34, %v6368_v62 }
 0x79b   :  { %3993 = vst [vmem:[#allocation11 + $0x48] sm:$0xff] %v3929_v16 }
 0x79c   :  { %v3592_v7 = vadd.f32 %v3591_v13, %v3543_v45  ;;  %v3642_v53 = vpop.f32.mrf.mxu0  ;;  %v3691_v23 = vpop.f32.mrf.mxu1 }
 0x79d   :  { %v3643_v27 = vadd.f32 %v3642_v53, %v6362_v57 }
 0x79e   :  { %v3928_v4 = vmax.f32 %v3592_v7, 0.0 }
 0x79f   :  { %v3692_v5 = vadd.f32 %v3691_v23, %v3643_v27 }
 0x7a0   :  { %3992 = vst [vmem:[#allocation11 + $0x40] sm:$0xff] %v3928_v4 }
 0x7a1   :  { %v3933_v58 = vmax.f32 %v3692_v5, 0.0  ;;  %v3544_v38 = vpop.f32.mrf.mxu2  ;;  %v3593_v49 = vpop.f32.mrf.mxu3 }
 0x7a2   :  { %v3545_v59 = vadd.f32 %v3544_v38, %v6368_v62 }
 0x7a3   :  { %3997 = vst [vmem:[#allocation11 + $0x68] sm:$0xff] %v3933_v58 }
 0x7a4   :  { %v3594_v2 = vadd.f32 %v3593_v49, %v3545_v59  ;;  %v3645_v54 = vpop.f32.mrf.mxu0  ;;  %v3694_v6 = vpop.f32.mrf.mxu1 }
 0x7a5   :  { %v3646_v3 = vadd.f32 %v3645_v54, %v6362_v57 }
 0x7a6   :  { %v3932_v63 = vmax.f32 %v3594_v2, 0.0  ;;  %3742 = vmatmul.bf16.gmra.mxu2 %v6291_v44  ;;  %3791 = vmatmul.bf16.gmra.mxu3 %v6293_v31 }
 0x7a7   :  { %v3695_v39 = vadd.f32 %v3694_v6, %v3646_v3  ;;  %3840 = vmatmul.bf16.gmra.mxu0 %v6291_v44  ;;  %3889 = vmatmul.bf16.gmra.mxu1 %v6293_v31 }
 0x7a8   :  { %3996 = vst [vmem:[#allocation11 + $0x60] sm:$0xff] %v3932_v63 }
 0x7a9   :  { %v3937_v9 = vmax.f32 %v3695_v39, 0.0  ;;  %v3547_v46 = vpop.f32.mrf.mxu2  ;;  %v3596_v36 = vpop.f32.mrf.mxu3 }
 0x7aa   :  { %v3548_v35 = vadd.f32 %v3547_v46, %v6368_v62 }
 0x7ab   :  { %4001 = vst [vmem:[#allocation11 + $0x88] sm:$0xff] %v3937_v9 }
 0x7ac   :  { %v3597_v50 = vadd.f32 %v3596_v36, %v3548_v35  ;;  %v3647_v1 = vpop.f32.mrf.mxu0  ;;  %v3696_v20 = vpop.f32.mrf.mxu1 }
 0x7ad   :  { %v3648_v43 = vadd.f32 %v3647_v1, %v6362_v57 }
 0x7ae   :  { %v3936_v47 = vmax.f32 %v3597_v50, 0.0 }
 0x7af   :  { %v3697_v26 = vadd.f32 %v3696_v20, %v3648_v43 }
 0x7b0   :  { %4000 = vst [vmem:[#allocation11 + $0x80] sm:$0xff] %v3936_v47 }
 0x7b1   :  { %v3941_v40 = vmax.f32 %v3697_v26, 0.0  ;;  %v3549_v51 = vpop.f32.mrf.mxu2  ;;  %v3598_v44 = vpop.f32.mrf.mxu3 }
 0x7b2   :  { %v3550_v31 = vadd.f32 %v3549_v51, %v6368_v62 }
 0x7b3   :  { %4005 = vst [vmem:[#allocation11 + $0xa8] sm:$0xff] %v3941_v40 }
 0x7b4   :  { %v3599_v52 = vadd.f32 %v3598_v44, %v3550_v31  ;;  %v3650_v41 = vpop.f32.mrf.mxu0  ;;  %v3699_v10 = vpop.f32.mrf.mxu1 }
 0x7b5   :  { %v3651_v22 = vadd.f32 %v3650_v41, %v6362_v57 }
 0x7b6   :  { %v3940_v0 = vmax.f32 %v3599_v52, 0.0  ;;  %3747 = vmatmul.bf16.gmra.mxu2 %v6303_v11  ;;  %3796 = vmatmul.bf16.gmra.mxu3 %v6305_v33 }
 0x7b7   :  { %v3700_v37 = vadd.f32 %v3699_v10, %v3651_v22  ;;  %3845 = vmatmul.bf16.gmra.mxu0 %v6303_v11  ;;  %3894 = vmatmul.bf16.gmra.mxu1 %v6305_v33 }
 0x7b8   :  { %4004 = vst [vmem:[#allocation11 + $0xa0] sm:$0xff] %v3940_v0 }
 0x7b9   :  { %v3945_v60 = vmax.f32 %v3700_v37, 0.0  ;;  %v3552_v56 = vpop.f32.mrf.mxu2  ;;  %v3601_v17 = vpop.f32.mrf.mxu3 }
 0x7ba   :  { %v3553_v15 = vadd.f32 %v3552_v56, %v6368_v62 }
 0x7bb   :  { %4009 = vst [vmem:[#allocation11 + $0xc8] sm:$0xff] %v3945_v60 }
 0x7bc   :  { %v3602_v24 = vadd.f32 %v3601_v17, %v3553_v15  ;;  %v3652_v18 = vpop.f32.mrf.mxu0  ;;  %v3701_v48 = vpop.f32.mrf.mxu1 }
 0x7bd   :  { %v3653_v28 = vadd.f32 %v3652_v18, %v6362_v57 }
 0x7be   :  { %v3944_v14 = vmax.f32 %v3602_v24, 0.0 }
 0x7bf   :  { %v3702_v21 = vadd.f32 %v3701_v48, %v3653_v28 }
 0x7c0   :  { %4008 = vst [vmem:[#allocation11 + $0xc0] sm:$0xff] %v3944_v14 }
 0x7c1   :  { %v3949_v30 = vmax.f32 %v3702_v21, 0.0  ;;  %v3554_v16 = vpop.f32.mrf.mxu2  ;;  %v3603_v11 = vpop.f32.mrf.mxu3 }
 0x7c2   :  { %v3555_v33 = vadd.f32 %v3554_v16, %v6368_v62 }
 0x7c3   :  { %4013 = vst [vmem:[#allocation11 + $0xe8] sm:$0xff] %v3949_v30 }
 0x7c4   :  { %v3604_v34 = vadd.f32 %v3603_v11, %v3555_v33  ;;  %v3655_v13 = vpop.f32.mrf.mxu0  ;;  %v3704_v45 = vpop.f32.mrf.mxu1 }
 0x7c5   :  { %v3656_v7 = vadd.f32 %v3655_v13, %v6362_v57 }
 0x7c6   :  { %v3948_v53 = vmax.f32 %v3604_v34, 0.0  ;;  %3752 = vmatmul.bf16.gmra.mxu2 %v6315_v42  ;;  %3801 = vmatmul.bf16.gmra.mxu3 %v6317_v55 }
 0x7c7   :  { %v3705_v23 = vadd.f32 %v3704_v45, %v3656_v7  ;;  %3850 = vmatmul.bf16.gmra.mxu0 %v6315_v42  ;;  %3899 = vmatmul.bf16.gmra.mxu1 %v6317_v55 }
 0x7c8   :  { %4012 = vst [vmem:[#allocation11 + $0xe0] sm:$0xff] %v3948_v53 }
 0x7c9   :  { %v3953_v27 = vmax.f32 %v3705_v23, 0.0  ;;  %v3557_v4 = vpop.f32.mrf.mxu2  ;;  %v3606_v5 = vpop.f32.mrf.mxu3 }
 0x7ca   :  { %v3558_v58 = vadd.f32 %v3557_v4, %v6368_v62 }
 0x7cb   :  { %4017 = vst [vmem:[#allocation11 + $0x108] sm:$0xff] %v3953_v27 }
 0x7cc   :  { %v3607_v38 = vadd.f32 %v3606_v5, %v3558_v58  ;;  %v3657_v49 = vpop.f32.mrf.mxu0  ;;  %v3706_v59 = vpop.f32.mrf.mxu1 }
 0x7cd   :  { %v3658_v2 = vadd.f32 %v3657_v49, %v6362_v57 }
 0x7ce   :  { %v3952_v54 = vmax.f32 %v3607_v38, 0.0 }
 0x7cf   :  { %v3707_v6 = vadd.f32 %v3706_v59, %v3658_v2 }
 0x7d0   :  { %4016 = vst [vmem:[#allocation11 + $0x100] sm:$0xff] %v3952_v54 }
 0x7d1   :  { %v3957_v3 = vmax.f32 %v3707_v6, 0.0  ;;  %v3559_v63 = vpop.f32.mrf.mxu2  ;;  %v3608_v42 = vpop.f32.mrf.mxu3 }
 0x7d2   :  { %v3560_v55 = vadd.f32 %v3559_v63, %v6368_v62 }
 0x7d3   :  { %4021 = vst [vmem:[#allocation11 + $0x128] sm:$0xff] %v3957_v3 }
 0x7d4   :  { %v3609_v39 = vadd.f32 %v3608_v42, %v3560_v55  ;;  %v3660_v9 = vpop.f32.mrf.mxu0  ;;  %v3709_v46 = vpop.f32.mrf.mxu1 }
 0x7d5   :  { %v3661_v36 = vadd.f32 %v3660_v9, %v6362_v57 }
 0x7d6   :  { %v3956_v35 = vmax.f32 %v3609_v39, 0.0  ;;  %3757 = vmatmul.bf16.gmra.mxu2 %v6327_v29  ;;  %3806 = vmatmul.bf16.gmra.mxu3 %v6329_v12 }
 0x7d7   :  { %v3710_v50 = vadd.f32 %v3709_v46, %v3661_v36  ;;  %3855 = vmatmul.bf16.gmra.mxu0 %v6327_v29  ;;  %3904 = vmatmul.bf16.gmra.mxu1 %v6329_v12 }
 0x7d8   :  { %4020 = vst [vmem:[#allocation11 + $0x120] sm:$0xff] %v3956_v35 }
 0x7d9   :  { %v3961_v1 = vmax.f32 %v3710_v50, 0.0  ;;  %v3562_v20 = vpop.f32.mrf.mxu2  ;;  %v3611_v43 = vpop.f32.mrf.mxu3 }
 0x7da   :  { %v3563_v47 = vadd.f32 %v3562_v20, %v6368_v62 }
 0x7db   :  { %4025 = vst [vmem:[#allocation11 + $0x148] sm:$0xff] %v3961_v1 }
 0x7dc   :  { %v3612_v26 = vadd.f32 %v3611_v43, %v3563_v47  ;;  %v3662_v40 = vpop.f32.mrf.mxu0  ;;  %v3711_v51 = vpop.f32.mrf.mxu1 }
 0x7dd   :  { %v3663_v44 = vadd.f32 %v3662_v40, %v6362_v57 }
 0x7de   :  { %v3960_v31 = vmax.f32 %v3612_v26, 0.0 }
 0x7df   :  { %v3712_v52 = vadd.f32 %v3711_v51, %v3663_v44 }
 0x7e0   :  { %4024 = vst [vmem:[#allocation11 + $0x140] sm:$0xff] %v3960_v31 }
 0x7e1   :  { %v3965_v41 = vmax.f32 %v3712_v52, 0.0  ;;  %v3564_v10 = vpop.f32.mrf.mxu2  ;;  %v3613_v29 = vpop.f32.mrf.mxu3 }
 0x7e2   :  { %v3565_v12 = vadd.f32 %v3564_v10, %v6368_v62 }
 0x7e3   :  { %4029 = vst [vmem:[#allocation11 + $0x168] sm:$0xff] %v3965_v41 }
 0x7e4   :  { %v3614_v22 = vadd.f32 %v3613_v29, %v3565_v12  ;;  %v3665_v0 = vpop.f32.mrf.mxu0  ;;  %v3714_v37 = vpop.f32.mrf.mxu1 }
 0x7e5   :  { %v3666_v60 = vadd.f32 %v3665_v0, %v6362_v57 }
 0x7e6   :  { %v3964_v56 = vmax.f32 %v3614_v22, 0.0  ;;  %3762 = vmatmul.bf16.gmra.mxu2 %v6339_v61  ;;  %3811 = vmatmul.bf16.gmra.mxu3 %v6341_v32 }
 0x7e7   :  { %v3715_v17 = vadd.f32 %v3714_v37, %v3666_v60  ;;  %3860 = vmatmul.bf16.gmra.mxu0 %v6339_v61  ;;  %3909 = vmatmul.bf16.gmra.mxu1 %v6341_v32 }
 0x7e8   :  { %4028 = vst [vmem:[#allocation11 + $0x160] sm:$0xff] %v3964_v56 }
 0x7e9   :  { %v3969_v15 = vmax.f32 %v3715_v17, 0.0  ;;  %v3567_v24 = vpop.f32.mrf.mxu2  ;;  %v3616_v18 = vpop.f32.mrf.mxu3 }
 0x7ea   :  { %v3568_v48 = vadd.f32 %v3567_v24, %v6368_v62 }
 0x7eb   :  { %4033 = vst [vmem:[#allocation11 + $0x188] sm:$0xff] %v3969_v15 }
 0x7ec   :  { %v3617_v28 = vadd.f32 %v3616_v18, %v3568_v48  ;;  %v3667_v14 = vpop.f32.mrf.mxu0  ;;  %v3716_v21 = vpop.f32.mrf.mxu1 }
 0x7ed   :  { %v3668_v30 = vadd.f32 %v3667_v14, %v6362_v57 }
 0x7ee   :  { %v3968_v16 = vmax.f32 %v3617_v28, 0.0 }
 0x7ef   :  { %v3717_v11 = vadd.f32 %v3716_v21, %v3668_v30 }
 0x7f0   :  { %4032 = vst [vmem:[#allocation11 + $0x180] sm:$0xff] %v3968_v16 }
 0x7f1   :  { %v3973_v33 = vmax.f32 %v3717_v11, 0.0  ;;  %v3569_v34 = vpop.f32.mrf.mxu2  ;;  %v3618_v61 = vpop.f32.mrf.mxu3 }
 0x7f2   :  { %v3570_v32 = vadd.f32 %v3569_v34, %v6368_v62 }
 0x7f3   :  { %4037 = vst [vmem:[#allocation11 + $0x1a8] sm:$0xff] %v3973_v33 }
 0x7f4   :  { %v3619_v13 = vadd.f32 %v3618_v61, %v3570_v32  ;;  %v3670_v45 = vpop.f32.mrf.mxu0  ;;  %v3719_v7 = vpop.f32.mrf.mxu1 }
 0x7f5   :  { %v3671_v53 = vadd.f32 %v3670_v45, %v6362_v57 }
 0x7f6   :  { %v3972_v23 = vmax.f32 %v3619_v13, 0.0  ;;  %3767 = vmatmul.bf16.gmra.mxu2 %v6351_v8  ;;  %3816 = vmatmul.bf16.gmra.mxu3 %v6353_v19 }
 0x7f7   :  { %v3720_v27 = vadd.f32 %v3719_v7, %v3671_v53  ;;  %3865 = vmatmul.bf16.gmra.mxu0 %v6351_v8  ;;  %3914 = vmatmul.bf16.gmra.mxu1 %v6353_v19  ;;  %v6431_v19 = vperm.slane %v6359_v25, 3 }
 0x7f8   :  { %4036 = vst [vmem:[#allocation11 + $0x1a0] sm:$0xff] %v3972_v23 }
 0x7f9   :  { %v3977_v4 = vmax.f32 %v3720_v27, 0.0  ;;  %v3572_v5 = vpop.f32.mrf.mxu2  ;;  %v3621_v58 = vpop.f32.mrf.mxu3 }
 0x7fa   :  { %v3573_v38 = vadd.f32 %v3572_v5, %v6368_v62 }
 0x7fb   :  { %4041 = vst [vmem:[#allocation11 + $0x1c8] sm:$0xff] %v3977_v4 }
 0x7fc   :  { %v3622_v49 = vadd.f32 %v3621_v58, %v3573_v38  ;;  %v3672_v59 = vpop.f32.mrf.mxu0  ;;  %v3721_v2 = vpop.f32.mrf.mxu1 }
 0x7fd   :  { %v3673_v54 = vadd.f32 %v3672_v59, %v6362_v57  ;;  %v6436_v57 = vperm.slane %v6359_v25, 2 }
 0x7fe   :  { %v3976_v6 = vmax.f32 %v3622_v49, 0.0 }
 0x7ff   :  { %v3722_v3 = vadd.f32 %v3721_v2, %v3673_v54 }
 0x800   :  { %4040 = vst [vmem:[#allocation11 + $0x1c0] sm:$0xff] %v3976_v6 }
 0x801   :  { %v3981_v63 = vmax.f32 %v3722_v3, 0.0  ;;  %v3574_v42 = vpop.f32.mrf.mxu2  ;;  %v3623_v8 = vpop.f32.mrf.mxu3 }
 0x802   :  { %v3575_v55 = vadd.f32 %v3574_v42, %v6368_v62 }
 0x803   :  { %4045 = vst [vmem:[#allocation11 + $0x1e8] sm:$0xff] %v3981_v63 }
 0x804   :  { %v3624_v39 = vadd.f32 %v3623_v8, %v3575_v55  ;;  %v3831_v9 = vpop.f32.mrf.mxu0  ;;  %v3880_v46 = vpop.f32.mrf.mxu1 }
 0x805   :  { %v3832_v36 = vadd.f32 %v3831_v9, %v6431_v19 }
 0x806   :  { %v3980_v35 = vmax.f32 %v3624_v39, 0.0 }
 0x807   :  { %v3881_v50 = vadd.f32 %v3880_v46, %v3832_v36 }
 0x808   :  { %4044 = vst [vmem:[#allocation11 + $0x1e0] sm:$0xff] %v3980_v35 }
 0x809   :  { %v3923_v1 = vmax.f32 %v3881_v50, 0.0  ;;  %v3733_v20 = vpop.f32.mrf.mxu2  ;;  %v3782_v43 = vpop.f32.mrf.mxu3 }
 0x80a   :  { %v3734_v47 = vadd.f32 %v3733_v20, %v6436_v57 }
 0x80b   :  { %3987 = vst [vmem:[#allocation11 + $0x18] sm:$0xff] %v3923_v1 }
 0x80c   :  { %v3783_v26 = vadd.f32 %v3782_v43, %v3734_v47  ;;  %v3833_v62 = vpop.f32.mrf.mxu0  ;;  %v3882_v40 = vpop.f32.mrf.mxu1 }
 0x80d   :  { %v3834_v51 = vadd.f32 %v3833_v62, %v6431_v19 }
 0x80e   :  { %v3922_v44 = vmax.f32 %v3783_v26, 0.0 }
 0x80f   :  { %v3883_v31 = vadd.f32 %v3882_v40, %v3834_v51 }
 0x810   :  { %3986 = vst [vmem:[#allocation11 + $0x10] sm:$0xff] %v3922_v44 }
 0x811   :  { %v3927_v52 = vmax.f32 %v3883_v31, 0.0  ;;  %v3735_v41 = vpop.f32.mrf.mxu2  ;;  %v3784_v25 = vpop.f32.mrf.mxu3 }
 0x812   :  { %v3736_v10 = vadd.f32 %v3735_v41, %v6436_v57 }
 0x813   :  { %3991 = vst [vmem:[#allocation11 + $0x38] sm:$0xff] %v3927_v52 }
 0x814   :  { %v3785_v29 = vadd.f32 %v3784_v25, %v3736_v10  ;;  %v3836_v12 = vpop.f32.mrf.mxu0  ;;  %v3885_v22 = vpop.f32.mrf.mxu1 }
 0x815   :  { %v3837_v0 = vadd.f32 %v3836_v12, %v6431_v19 }
 0x816   :  { %v3926_v37 = vmax.f32 %v3785_v29, 0.0 }
 0x817   :  { %v3886_v60 = vadd.f32 %v3885_v22, %v3837_v0 }
 0x818   :  { %3990 = vst [vmem:[#allocation11 + $0x30] sm:$0xff] %v3926_v37 }
 0x819   :  { %v3931_v56 = vmax.f32 %v3886_v60, 0.0  ;;  %v3738_v17 = vpop.f32.mrf.mxu2  ;;  %v3787_v15 = vpop.f32.mrf.mxu3 }
 0x81a   :  { %v3739_v24 = vadd.f32 %v3738_v17, %v6436_v57 }
 0x81b   :  { %3995 = vst [vmem:[#allocation11 + $0x58] sm:$0xff] %v3931_v56 }
 0x81c   :  { %v3788_v18 = vadd.f32 %v3787_v15, %v3739_v24  ;;  %v3838_v48 = vpop.f32.mrf.mxu0  ;;  %v3887_v28 = vpop.f32.mrf.mxu1 }
 0x81d   :  { %v3839_v14 = vadd.f32 %v3838_v48, %v6431_v19 }
 0x81e   :  { %v3930_v21 = vmax.f32 %v3788_v18, 0.0 }
 0x81f   :  { %v3888_v30 = vadd.f32 %v3887_v28, %v3839_v14 }
 0x820   :  { %3994 = vst [vmem:[#allocation11 + $0x50] sm:$0xff] %v3930_v21 }
 0x821   :  { %v3935_v16 = vmax.f32 %v3888_v30, 0.0  ;;  %v3740_v11 = vpop.f32.mrf.mxu2  ;;  %v3789_v33 = vpop.f32.mrf.mxu3 }
 0x822   :  { %v3741_v34 = vadd.f32 %v3740_v11, %v6436_v57 }
 0x823   :  { %3999 = vst [vmem:[#allocation11 + $0x78] sm:$0xff] %v3935_v16 }
 0x824   :  { %v3790_v61 = vadd.f32 %v3789_v33, %v3741_v34  ;;  %v3841_v32 = vpop.f32.mrf.mxu0  ;;  %v3890_v13 = vpop.f32.mrf.mxu1 }
 0x825   :  { %v3842_v45 = vadd.f32 %v3841_v32, %v6431_v19 }
 0x826   :  { %v3934_v7 = vmax.f32 %v3790_v61, 0.0 }
 0x827   :  { %v3891_v53 = vadd.f32 %v3890_v13, %v3842_v45 }
 0x828   :  { %3998 = vst [vmem:[#allocation11 + $0x70] sm:$0xff] %v3934_v7 }
 0x829   :  { %v3939_v23 = vmax.f32 %v3891_v53, 0.0  ;;  %v3743_v27 = vpop.f32.mrf.mxu2  ;;  %v3792_v4 = vpop.f32.mrf.mxu3 }
 0x82a   :  { %v3744_v5 = vadd.f32 %v3743_v27, %v6436_v57 }
 0x82b   :  { %4003 = vst [vmem:[#allocation11 + $0x98] sm:$0xff] %v3939_v23 }
 0x82c   :  { %v3793_v58 = vadd.f32 %v3792_v4, %v3744_v5  ;;  %v3843_v38 = vpop.f32.mrf.mxu0  ;;  %v3892_v49 = vpop.f32.mrf.mxu1 }
 0x82d   :  { %v3844_v59 = vadd.f32 %v3843_v38, %v6431_v19 }
 0x82e   :  { %v3938_v2 = vmax.f32 %v3793_v58, 0.0 }
 0x82f   :  { %v3893_v54 = vadd.f32 %v3892_v49, %v3844_v59 }
 0x830   :  { %4002 = vst [vmem:[#allocation11 + $0x90] sm:$0xff] %v3938_v2 }
 0x831   :  { %v3943_v6 = vmax.f32 %v3893_v54, 0.0  ;;  %v3745_v3 = vpop.f32.mrf.mxu2  ;;  %v3794_v63 = vpop.f32.mrf.mxu3 }
 0x832   :  { %v3746_v42 = vadd.f32 %v3745_v3, %v6436_v57 }
 0x833   :  { %4007 = vst [vmem:[#allocation11 + $0xb8] sm:$0xff] %v3943_v6 }
 0x834   :  { %v3795_v8 = vadd.f32 %v3794_v63, %v3746_v42  ;;  %v3846_v55 = vpop.f32.mrf.mxu0  ;;  %v3895_v39 = vpop.f32.mrf.mxu1 }
 0x835   :  { %v3847_v9 = vadd.f32 %v3846_v55, %v6431_v19 }
 0x836   :  { %v3942_v46 = vmax.f32 %v3795_v8, 0.0 }
 0x837   :  { %v3896_v36 = vadd.f32 %v3895_v39, %v3847_v9 }
 0x838   :  { %4006 = vst [vmem:[#allocation11 + $0xb0] sm:$0xff] %v3942_v46 }
 0x839   :  { %v3947_v35 = vmax.f32 %v3896_v36, 0.0  ;;  %v3748_v50 = vpop.f32.mrf.mxu2  ;;  %v3797_v1 = vpop.f32.mrf.mxu3 }
 0x83a   :  { %v3749_v20 = vadd.f32 %v3748_v50, %v6436_v57 }
 0x83b   :  { %4011 = vst [vmem:[#allocation11 + $0xd8] sm:$0xff] %v3947_v35 }
 0x83c   :  { %v3798_v43 = vadd.f32 %v3797_v1, %v3749_v20  ;;  %v3848_v47 = vpop.f32.mrf.mxu0  ;;  %v3897_v26 = vpop.f32.mrf.mxu1 }
 0x83d   :  { %v3849_v62 = vadd.f32 %v3848_v47, %v6431_v19 }
 0x83e   :  { %v3946_v40 = vmax.f32 %v3798_v43, 0.0 }
 0x83f   :  { %v3898_v51 = vadd.f32 %v3897_v26, %v3849_v62 }
 0x840   :  { %4010 = vst [vmem:[#allocation11 + $0xd0] sm:$0xff] %v3946_v40 }
 0x841   :  { %v3951_v44 = vmax.f32 %v3898_v51, 0.0  ;;  %v3750_v31 = vpop.f32.mrf.mxu2  ;;  %v3799_v52 = vpop.f32.mrf.mxu3 }
 0x842   :  { %v3751_v41 = vadd.f32 %v3750_v31, %v6436_v57 }
 0x843   :  { %4015 = vst [vmem:[#allocation11 + $0xf8] sm:$0xff] %v3951_v44 }
 0x844   :  { %v3800_v25 = vadd.f32 %v3799_v52, %v3751_v41  ;;  %v3851_v10 = vpop.f32.mrf.mxu0  ;;  %v3900_v29 = vpop.f32.mrf.mxu1 }
 0x845   :  { %v3852_v12 = vadd.f32 %v3851_v10, %v6431_v19 }
 0x846   :  { %v3950_v22 = vmax.f32 %v3800_v25, 0.0 }
 0x847   :  { %v3901_v0 = vadd.f32 %v3900_v29, %v3852_v12 }
 0x848   :  { %4014 = vst [vmem:[#allocation11 + $0xf0] sm:$0xff] %v3950_v22 }
 0x849   :  { %v3955_v37 = vmax.f32 %v3901_v0, 0.0  ;;  %v3753_v60 = vpop.f32.mrf.mxu2  ;;  %v3802_v56 = vpop.f32.mrf.mxu3 }
 0x84a   :  { %v3754_v17 = vadd.f32 %v3753_v60, %v6436_v57 }
 0x84b   :  { %4019 = vst [vmem:[#allocation11 + $0x118] sm:$0xff] %v3955_v37 }
 0x84c   :  { %v3803_v15 = vadd.f32 %v3802_v56, %v3754_v17  ;;  %v3853_v24 = vpop.f32.mrf.mxu0  ;;  %v3902_v18 = vpop.f32.mrf.mxu1 }
 0x84d   :  { %v3854_v48 = vadd.f32 %v3853_v24, %v6431_v19 }
 0x84e   :  { %v3954_v28 = vmax.f32 %v3803_v15, 0.0 }
 0x84f   :  { %v3903_v14 = vadd.f32 %v3902_v18, %v3854_v48 }
 0x850   :  { %4018 = vst [vmem:[#allocation11 + $0x110] sm:$0xff] %v3954_v28 }
 0x851   :  { %v3959_v21 = vmax.f32 %v3903_v14, 0.0  ;;  %v3755_v30 = vpop.f32.mrf.mxu2  ;;  %v3804_v16 = vpop.f32.mrf.mxu3 }
 0x852   :  { %v3756_v11 = vadd.f32 %v3755_v30, %v6436_v57 }
 0x853   :  { %4023 = vst [vmem:[#allocation11 + $0x138] sm:$0xff] %v3959_v21 }
 0x854   :  { %v3805_v33 = vadd.f32 %v3804_v16, %v3756_v11  ;;  %v3856_v34 = vpop.f32.mrf.mxu0  ;;  %v3905_v61 = vpop.f32.mrf.mxu1 }
 0x855   :  { %v3857_v32 = vadd.f32 %v3856_v34, %v6431_v19 }
 0x856   :  { %v3958_v13 = vmax.f32 %v3805_v33, 0.0 }
 0x857   :  { %v3906_v45 = vadd.f32 %v3905_v61, %v3857_v32 }
 0x858   :  { %4022 = vst [vmem:[#allocation11 + $0x130] sm:$0xff] %v3958_v13 }
 0x859   :  { %v3963_v7 = vmax.f32 %v3906_v45, 0.0  ;;  %v3758_v53 = vpop.f32.mrf.mxu2  ;;  %v3807_v23 = vpop.f32.mrf.mxu3 }
 0x85a   :  { %v3759_v27 = vadd.f32 %v3758_v53, %v6436_v57 }
 0x85b   :  { %4027 = vst [vmem:[#allocation11 + $0x158] sm:$0xff] %v3963_v7 }
 0x85c   :  { %v3808_v4 = vadd.f32 %v3807_v23, %v3759_v27  ;;  %v3858_v5 = vpop.f32.mrf.mxu0  ;;  %v3907_v58 = vpop.f32.mrf.mxu1 }
 0x85d   :  { %v3859_v38 = vadd.f32 %v3858_v5, %v6431_v19 }
 0x85e   :  { %v3962_v49 = vmax.f32 %v3808_v4, 0.0 }
 0x85f   :  { %v3908_v59 = vadd.f32 %v3907_v58, %v3859_v38 }
 0x860   :  { %4026 = vst [vmem:[#allocation11 + $0x150] sm:$0xff] %v3962_v49 }
 0x861   :  { %v3967_v2 = vmax.f32 %v3908_v59, 0.0  ;;  %v3760_v54 = vpop.f32.mrf.mxu2  ;;  %v3809_v6 = vpop.f32.mrf.mxu3 }
 0x862   :  { %v3761_v3 = vadd.f32 %v3760_v54, %v6436_v57 }
 0x863   :  { %4031 = vst [vmem:[#allocation11 + $0x178] sm:$0xff] %v3967_v2 }
 0x864   :  { %v3810_v63 = vadd.f32 %v3809_v6, %v3761_v3  ;;  %v3861_v42 = vpop.f32.mrf.mxu0  ;;  %v3910_v8 = vpop.f32.mrf.mxu1 }
 0x865   :  { %v3862_v55 = vadd.f32 %v3861_v42, %v6431_v19 }
 0x866   :  { %v3966_v39 = vmax.f32 %v3810_v63, 0.0 }
 0x867   :  { %v3911_v9 = vadd.f32 %v3910_v8, %v3862_v55 }
 0x868   :  { %4030 = vst [vmem:[#allocation11 + $0x170] sm:$0xff] %v3966_v39 }
 0x869   :  { %v3971_v46 = vmax.f32 %v3911_v9, 0.0  ;;  %v3763_v36 = vpop.f32.mrf.mxu2  ;;  %v3812_v35 = vpop.f32.mrf.mxu3 }
 0x86a   :  { %v3764_v50 = vadd.f32 %v3763_v36, %v6436_v57 }
 0x86b   :  { %4035 = vst [vmem:[#allocation11 + $0x198] sm:$0xff] %v3971_v46 }
 0x86c   :  { %v3813_v1 = vadd.f32 %v3812_v35, %v3764_v50  ;;  %v3863_v20 = vpop.f32.mrf.mxu0  ;;  %v3912_v43 = vpop.f32.mrf.mxu1 }
 0x86d   :  { %v3864_v47 = vadd.f32 %v3863_v20, %v6431_v19 }
 0x86e   :  { %v3970_v26 = vmax.f32 %v3813_v1, 0.0 }
 0x86f   :  { %v3913_v62 = vadd.f32 %v3912_v43, %v3864_v47 }
 0x870   :  { %4034 = vst [vmem:[#allocation11 + $0x190] sm:$0xff] %v3970_v26 }
 0x871   :  { %v3975_v40 = vmax.f32 %v3913_v62, 0.0  ;;  %v3765_v51 = vpop.f32.mrf.mxu2  ;;  %v3814_v44 = vpop.f32.mrf.mxu3 }
 0x872   :  { %v3766_v31 = vadd.f32 %v3765_v51, %v6436_v57 }
 0x873   :  { %4039 = vst [vmem:[#allocation11 + $0x1b8] sm:$0xff] %v3975_v40 }
 0x874   :  { %v3815_v52 = vadd.f32 %v3814_v44, %v3766_v31  ;;  %v3866_v41 = vpop.f32.mrf.mxu0  ;;  %v3915_v25 = vpop.f32.mrf.mxu1 }
 0x875   :  { %v3867_v10 = vadd.f32 %v3866_v41, %v6431_v19 }
 0x876   :  { %v3974_v29 = vmax.f32 %v3815_v52, 0.0 }
 0x877   :  { %v3916_v12 = vadd.f32 %v3915_v25, %v3867_v10 }
 0x878   :  { %4038 = vst [vmem:[#allocation11 + $0x1b0] sm:$0xff] %v3974_v29 }
 0x879   :  { %v3979_v22 = vmax.f32 %v3916_v12, 0.0  ;;  %v3768_v0 = vpop.f32.mrf.mxu2  ;;  %v3817_v37 = vpop.f32.mrf.mxu3 }
 0x87a   :  { %v3769_v60 = vadd.f32 %v3768_v0, %v6436_v57 }
 0x87b   :  { %4043 = vst [vmem:[#allocation11 + $0x1d8] sm:$0xff] %v3979_v22 }
 0x87c   :  { %v3818_v56 = vadd.f32 %v3817_v37, %v3769_v60  ;;  %v3868_v17 = vpop.f32.mrf.mxu0  ;;  %v3917_v18 = vpop.f32.mrf.mxu1 }
 0x87d   :  { %v3869_v15 = vadd.f32 %v3868_v17, %v6431_v19 }
 0x87e   :  { %v3978_v24 = vmax.f32 %v3818_v56, 0.0 }
 0x87f   :  { %v3918_v48 = vadd.f32 %v3917_v18, %v3869_v15 }
 0x880   :  { %4042 = vst [vmem:[#allocation11 + $0x1d0] sm:$0xff] %v3978_v24 }
 0x881   :  { %v3983_v28 = vmax.f32 %v3918_v48, 0.0  ;;  %v3770_v14 = vpop.f32.mrf.mxu2  ;;  %v3819_v30 = vpop.f32.mrf.mxu3 }
 0x882   :  { %v3771_v21 = vadd.f32 %v3770_v14, %v6436_v57 }
 0x883   :  { %4047 = vst [vmem:[#allocation11 + $0x1f8] sm:$0xff] %v3983_v28 }
 0x884   :  { %v3820_v16 = vadd.f32 %v3819_v30, %v3771_v21 }
 0x886   :  { %v3982_v11 = vmax.f32 %v3820_v16, 0.0 }
 0x888   :  { %4046 = vst [vmem:[#allocation11 + $0x1f0] sm:$0xff] %v3982_v11 }
 0x889   :  { %4060 = dma.vmem_to_hbm [thread:$0]  %s4053_s4, 8192, %s4055_s25, [#allocation4], %s5528_s21, %s5528_s21, %s5529_s22  }
 0x88a   :  { %5515 = dma.done.wait [#allocation4], 8192  }
 0x88b   :  { %5516 = vsyncadd [#allocation4], 4294959104 }
 0x88c   :  { %4065 = vsyncpa [#allocation3], 1 }
 0x88d   :  { %4066 = vsyncpa [#allocation6], 1 }
 0x88e   :  { %4067 = vsyncpa [#allocation9], 1 }
 0x88f   :  { %4068 = vsyncpa [#allocation4], 1 }

</bundles_post_ra>
